<compile_context>
chip_gen: v7x
topology: tpu7x:2x2x1
jax: 0.10.0
libtpu: 0.0.40
codegen_flags: <defaults>
</compile_context>

<pallas_src>
import jax
import jax.numpy as jnp
from jax import lax
from jax.experimental import pallas as pl
from jax.experimental.pallas import tpu as pltpu

FILTER_SIZES = (2, 4, 6, 8, 10, 12, 16, 20)
PAD_TOKEN = 257


def _round_up(x, m):
    return ((x + m - 1) // m) * m


# ----------------------------------------------------------------------------
# Kernel 1: fused bidirectional GRU + word attention, feature-major (N on lanes).
#   x_ref    : (L, E, TN)  bf16 embeddings, time-major, feature rows, batch lanes
#   mask_ref : (L, TN)     f32  1.0 where token != PAD
#   wih_ref  : (6G, E)  bf16  [Wih_f; Wih_b]
#   whh_ref  : (6G, 2G) bf16  block-diag(Whh_f, Whh_b)
#   bif/bib  : (3G, 1)  f32   bih + [bhh_r; bhh_z; 0]   (hoisted recurrent bias)
#   bnf/bnb  : (G, 1)   f32   bhh_n (applied inside r * (gh_n + bhh_n))
#   fcw_ref  : (2G, 2G) bf16  word_fc weight (out, in)
#   fcb_ref  : (2G, 1)  f32,  q_ref : (2G, 1) f32 word query
#   sv_ref   : (2G, TN) f32   sentence vectors (output, feature-major)
# ----------------------------------------------------------------------------
def gru_attn_kernel(x_ref, mask_ref,
                    wih_ref, whh_ref, bif_ref, bib_ref, bnf_ref, bnb_ref,
                    fcw_ref, fcb_ref, q_ref,
                    sv_ref,
                    gi_f_scr, gi_b_scr, wo_f_scr, wo_b_scr):
    L, E, TN = x_ref.shape
    G3 = gi_f_scr.shape[1]
    G = G3 // 3
    G2 = 2 * G

    wih = wih_ref[...]
    whh = whh_ref[...]
    bif = bif_ref[...]
    bib = bib_ref[...]
    bnf = bnf_ref[...]
    bnb = bnb_ref[...]

    # Hoisted input projection: both directions in one (6G, E) x (E, TN) MXU
    # matmul per time step; results parked in VMEM scratch (out of the serial
    # recurrence chain).
    for t in range(L):                                      # static, writes to scratch
        g = jnp.dot(wih, x_ref[t], preferred_element_type=jnp.float32)  # (6G, TN)
        gi_f_scr[t] = g[:G3] + bif
        gi_b_scr[t] = g[G3:] + bib

    # Interleaved fwd/bwd recurrence: one fused block-diag h@Whh matmul/step.
    def step(t, h):
        tb = L - 1 - t
        gh = jnp.dot(whh, h.astype(jnp.bfloat16),
                     preferred_element_type=jnp.float32)                # (6G, TN)
        gi_f = gi_f_scr[t]
        gi_b = gi_b_scr[tb]
        h_f, h_b = h[:G], h[G:]
        # forward direction (time t) -- lane-dense (G, TN) gate slabs
        r = jax.nn.sigmoid(gi_f[:G] + gh[:G])
        z = jax.nn.sigmoid(gi_f[G:G2] + gh[G:G2])
        n = jnp.tanh(gi_f[G2:] + r * (gh[G2:G3] + bnf))
        h_f = (1.0 - z) * n + z * h_f
        # backward direction (time tb)
        r = jax.nn.sigmoid(gi_b[:G] + gh[G3:G3 + G])
        z = jax.nn.sigmoid(gi_b[G:G2] + gh[G3 + G:G3 + G2])
        n = jnp.tanh(gi_b[G2:] + r * (gh[G3 + G2:] + bnb))
        h_b = (1.0 - z) * n + z * h_b
        wo_f_scr[t] = h_f.astype(wo_f_scr.dtype)
        wo_b_scr[tb] = h_b.astype(wo_b_scr.dtype)
        return jnp.concatenate([h_f, h_b], axis=0)

    lax.fori_loop(0, L, step, jnp.zeros((G2, TN), jnp.float32), unroll=True)

    # Word attention: fc + tanh + query reduce, all feature-major / lane-dense.
    fcw = fcw_ref[...]
    fcb = fcb_ref[...]
    q = q_ref[...]
    rows = []
    for t in range(L):                                      # static, L is small
        wo_t = jnp.concatenate([wo_f_scr[t], wo_b_scr[t]], axis=0)      # (2G, TN) bf16
        att = jnp.tanh(jnp.dot(fcw, wo_t, preferred_element_type=jnp.float32) + fcb)
        rows.append(jnp.sum(q * att, axis=0, keepdims=True))            # (1, TN)
    logits = jnp.concatenate(rows, axis=0)                              # (L, TN)

    # Softmax over time, PAD mask, renormalize (matches the torch code).
    m = jnp.max(logits, axis=0, keepdims=True)
    e = jnp.exp(logits - m)
    w = e * pl.reciprocal(jnp.sum(e, axis=0, keepdims=True), approx=True)
    w = w * mask_ref[...]
    w = w * pl.reciprocal(jnp.sum(w, axis=0, keepdims=True) + 1e-4, approx=True)

    # Weighted sum over time -> sentence vectors.
    w3 = w[:, None, :]                                                  # (L, 1, TN)
    sv_f = jnp.sum(wo_f_scr[...].astype(jnp.float32) * w3, axis=0)      # (G, TN)
    sv_b = jnp.sum(wo_b_scr[...].astype(jnp.float32) * w3, axis=0)
    sv_ref[...] = jnp.concatenate([sv_f, sv_b], axis=0)                 # (2G, TN)


def gru_attn_pallas(x_bf16, mask_ln, wih_m, whh_m, bif, bib, bnf, bnb,
                    fcw, fcb, q, tn):
    L, E, n_pad = x_bf16.shape
    G2 = fcw.shape[0]
    G = G2 // 2
    G3 = 3 * G
    weights = [wih_m, whh_m, bif, bib, bnf, bnb, fcw, fcb, q]
    w_specs = [pl.BlockSpec(w.shape, lambda i: (0, 0)) for w in weights]
    return pl.pallas_call(
        gru_attn_kernel,
        out_shape=jax.ShapeDtypeStruct((G2, n_pad), jnp.float32),
        grid=(n_pad // tn,),
        in_specs=[pl.BlockSpec((L, E, tn), lambda i: (0, 0, i)),
                  pl.BlockSpec((L, tn), lambda i: (0, i))] + w_specs,
        out_specs=pl.BlockSpec((G2, tn), lambda i: (0, i)),
        scratch_shapes=[pltpu.VMEM((L, G3, tn), jnp.float32),   # gi fwd
                        pltpu.VMEM((L, G3, tn), jnp.float32),   # gi bwd
                        pltpu.VMEM((L, G, tn), jnp.bfloat16),   # wo fwd
                        pltpu.VMEM((L, G, tn), jnp.bfloat16)],  # wo bwd
        compiler_params=pltpu.CompilerParams(
            dimension_semantics=("parallel",)),
    )(x_bf16, mask_ln, *weights)


# ----------------------------------------------------------------------------
# Kernel 2: merged conv bank (im2col) + ReLU + masked global max pool + fc,
# gridded over blocks of `nb` samples so the im2col buffer pipelines.
#   x_ref    : (nb*P_pad, max_fs*D) bf16   im2col'ed sentence vectors
#   w_ref    : (max_fs*D, 8F)       bf16   merged, zero-padded conv weights
#   b_ref    : (1, 8F) f32,  mask_ref : (P_pad, 8F) f32  valid-position mask
#   fcw_ref  : (8F, 2) f32,  fcb_ref : (1, 2) f32
#   out_ref  : (nb, 2) f32
# ----------------------------------------------------------------------------
def conv_fc_kernel(x_ref, w_ref, b_ref, mask_ref, fcw_ref, fcb_ref, out_ref):
    P_pad, F8 = mask_ref.shape
    nb = out_ref.shape[0]
    acc = jnp.dot(x_ref[...], w_ref[...],
                  preferred_element_type=jnp.float32)                    # (nb*P_pad, 8F)
    acc = jnp.maximum(acc + b_ref[...], 0.0)                             # ReLU
    acc = acc.reshape(nb, P_pad, F8) * mask_ref[...]                     # kill invalid pos.
    pooled = jnp.max(acc, axis=1)                                        # (nb, 8F)
    out_ref[...] = (jnp.dot(pooled, fcw_ref[...],
                            preferred_element_type=jnp.float32) + fcb_ref[...])


def conv_fc_pallas(xcol, w_col, b_merged, mask_conv, fcw, fcb, nb):
    BPpad, K = xcol.shape
    P_pad, _ = mask_conv.shape
    B_pad = BPpad // P_pad
    n_out = fcw.shape[1]
    weights = [w_col, b_merged, mask_conv, fcw, fcb]
    w_specs = [pl.BlockSpec(w.shape, lambda i: (0, 0)) for w in weights]
    return pl.pallas_call(
        conv_fc_kernel,
        out_shape=jax.ShapeDtypeStruct((B_pad, n_out), jnp.float32),
        grid=(B_pad // nb,),
        in_specs=[pl.BlockSpec((nb * P_pad, K), lambda i: (i, 0))] + w_specs,
        out_specs=pl.BlockSpec((nb, n_out), lambda i: (i, 0)),
        compiler_params=pltpu.CompilerParams(
            dimension_semantics=("parallel",)),
    )(xcol, *weights)


# ----------------------------------------------------------------------------
# Full forward (Pallas path).
# ----------------------------------------------------------------------------
def bvts_cnn_forward(ids, params, filter_sizes=FILTER_SIZES):
    B, S, L = ids.shape
    N = B * S
    G = params["gru_f"]["whh"].shape[1]
    G3 = 3 * G
    D = 2 * G
    max_fs = max(filter_sizes)
    if S < max_fs:
        raise ValueError(f"sentence_num={S} must be >= max filter size {max_fs}")

    ids_flat = ids.reshape(N, L)
    emb = jnp.take(params["embed"], ids_flat, axis=0)                     # (N,L,E) glue
    x_eln = jnp.transpose(emb, (1, 2, 0)).astype(jnp.bfloat16)            # (L,E,N) feat-major
    mask_ln = jnp.swapaxes((ids_flat != PAD_TOKEN).astype(jnp.float32), 0, 1)

    # N sits on lanes: tiles are multiples of 128; cap 1024 (fits v7x 64 MiB VMEM);
    # split into >=2 tiles when possible so v7x's 2 TCs both get work.
    n_pad = _round_up(N, 128)
    if n_pad <= 128:
        tn = n_pad
    else:
        tn = min(1024, 128 * max(1, (n_pad // 128) // 2))
        n_pad = _round_up(n_pad, tn)
    if n_pad != N:
        x_eln = jnp.pad(x_eln, ((0, 0), (0, 0), (0, n_pad - N)))
        mask_ln = jnp.pad(mask_ln, ((0, 0), (0, n_pad - N)))    # padded cols: all-PAD

    bf16 = lambda a: a.astype(jnp.bfloat16)
    f32 = lambda a: a.astype(jnp.float32)

    pf, pb = params["gru_f"], params["gru_b"]
    wih_m = bf16(jnp.concatenate([pf["wih"], pb["wih"]], axis=0))         # (6G, E)
    whh_m = jnp.zeros((2 * G3, D), jnp.float32)
    whh_m = whh_m.at[:G3, :G].set(pf["whh"]).at[G3:, G:].set(pb["whh"])
    whh_m = bf16(whh_m)                                                   # block-diag (6G, 2G)

    def bias_col(p):
        # bih + [bhh_r; bhh_z; 0]; bhh_n is applied inside r*(gh_n + bhh_n).
        hoist = jnp.concatenate([p["bhh"][:2 * G], jnp.zeros((G,), jnp.float32)])
        return f32(p["bih"] + hoist)[:, None]                             # (3G, 1)

    bif, bib = bias_col(pf), bias_col(pb)
    bnf = f32(pf["bhh"][2 * G:])[:, None]
    bnb = f32(pb["bhh"][2 * G:])[:, None]
    fcw = bf16(params["fc_w"])                                            # (D, D)
    fcb = f32(params["fc_b"])[:, None]
    q = f32(params["query"].reshape(D, 1))

    sv_fm = gru_attn_pallas(x_eln, mask_ln, wih_m, whh_m, bif, bib, bnf, bnb,
                            fcw, fcb, q, tn)                              # (D, n_pad)
    sv_bsd = sv_fm[:, :N].T.reshape(B, S, D)                              # glue transpose

    # ---- conv / pool / fc stage: merged weights + batch im2col (glue) ----
    Fn = params["convs"][0][0].shape[0]
    F8 = Fn * len(filter_sizes)
    P_pad = _round_up(S, 8)
    nb = max(8, ((1024 // max(P_pad, 1)) // 8) * 8)      # ~<=1024 im2col rows / tile
    nb = min(nb, _round_up(B, 8))
    B_pad = _round_up(B, nb)

    s_full = P_pad + max_fs - 1
    sv_pad = jnp.pad(sv_bsd, ((0, B_pad - B), (0, s_full - S), (0, 0)))   # (B_pad, s_full, D)
    xcol = jnp.concatenate([sv_pad[:, i:i + P_pad, :] for i in range(max_fs)],
                           axis=-1).reshape(B_pad * P_pad, max_fs * D)    # im2col (glue)

    w_list, b_list = [], []
    for fs, (cw, cb) in zip(filter_sizes, params["convs"]):
        w = jnp.transpose(cw[:, 0], (1, 2, 0))                            # (fs, D, F)
        w_list.append(jnp.pad(w, ((0, max_fs - fs), (0, 0), (0, 0))))
        b_list.append(cb)
    w_col = jnp.concatenate(w_list, axis=-1).reshape(max_fs * D, F8)      # (max_fs*D, 8F)
    b_merged = jnp.concatenate(b_list)[None, :].astype(jnp.float32)       # (1, 8F)

    pos = jnp.arange(P_pad, dtype=jnp.int32)[:, None]
    lim = jnp.repeat(jnp.asarray([S - fs for fs in filter_sizes], jnp.int32), Fn)
    mask_conv = (pos <= lim[None, :]).astype(jnp.float32)                 # (P_pad, 8F)

    # Dropout is an identity in eval mode.
    out = conv_fc_pallas(bf16(xcol), bf16(w_col), b_merged, mask_conv,
                         params["out_w"].T.astype(jnp.float32),
                         params["out_b"][None, :].astype(jnp.float32), nb)
    return out[:B]                                                        # (B, 2)


# ----------------------------------------------------------------------------
# Pure-JAX f32 reference (mirrors the PyTorch forward) for validation.
# ----------------------------------------------------------------------------
def reference_forward(ids, params, filter_sizes=FILTER_SIZES):
    B, S, L = ids.shape
    N = B * S
    ids_flat = ids.reshape(N, L)
    emb = params["embed"][ids_flat]                                       # (N, L, E)
    G = params["gru_f"]["whh"].shape[1]

    def gru_dir(xs, p):
        def step(h, x_t):
            gi = x_t @ p["wih"].T + p["bih"]
            gh = h @ p["whh"].T + p["bhh"]
            r = jax.nn.sigmoid(gi[:, :G] + gh[:, :G])
            z = jax.nn.sigmoid(gi[:, G:2 * G] + gh[:, G:2 * G])
            n = jnp.tanh(gi[:, 2 * G:] + r * gh[:, 2 * G:])
            h_new = (1.0 - z) * n + z * h
            return h_new, h_new

        _, hs = lax.scan(step, jnp.zeros((xs.shape[0], G), jnp.float32),
                         jnp.swapaxes(xs, 0, 1))
        return jnp.swapaxes(hs, 0, 1)

    h_f = gru_dir(emb, params["gru_f"])
    h_b = gru_dir(emb[:, ::-1, :], params["gru_b"])[:, ::-1, :]
    wo = jnp.concatenate([h_f, h_b], axis=-1)                             # (N, L, 2G)

    att = jnp.tanh(wo @ params["fc_w"].T + params["fc_b"])
    wgt = att @ params["query"]                                           # (N, L, 1)
    wgt = jax.nn.softmax(wgt, axis=1)
    wgt = jnp.where(ids_flat[:, :, None] != PAD_TOKEN, wgt, 0.0)
    wgt = wgt / (jnp.sum(wgt, axis=1, keepdims=True) + 1e-4)
    sv = jnp.sum(wgt * wo, axis=1).reshape(B, S, 2 * G)

    pooled = []
    for fs, (cw, cb) in zip(filter_sizes, params["convs"]):
        P = S - fs + 1
        win = jnp.stack([sv[:, p:p + fs, :] for p in range(P)], axis=1)
        conv = jnp.einsum("bpid,fid->bpf", win, cw[:, 0]) + cb
        pooled.append(jnp.max(jax.nn.relu(conv), axis=1))
    cat = jnp.concatenate(pooled, axis=-1)
    return cat @ params["out_w"].T + params["out_b"]


# ----------------------------------------------------------------------------
# Deterministic parameter init (synthetic; no checkpoint loading).
# ----------------------------------------------------------------------------
def init_params(key, vocab_size, embed_dim, gru_size, filter_num, filter_sizes):
    D = 2 * gru_size
    keys = iter(jax.random.split(key, 64))

    def nrm(shape, scale=0.1):
        return (scale * jax.random.normal(next(keys), shape)).astype(jnp.float32)

    def gru_params():
        return {"wih": nrm((3 * gru_size, embed_dim)),
                "whh": nrm((3 * gru_size, gru_size)),
                "bih": nrm((3 * gru_size,)),
                "bhh": nrm((3 * gru_size,))}

    return {
        "embed": nrm((vocab_size, embed_dim), 0.5),
        "gru_f": gru_params(),
        "gru_b": gru_params(),
        "fc_w": nrm((D, D)),
        "fc_b": nrm((D,)),
        "query": nrm((D, 1), 0.3),
        "convs": [(nrm((filter_num, 1, fs, D)), nrm((filter_num,)))
                  for fs in filter_sizes],
        "out_w": nrm((2, 8 * filter_num)),
        "out_b": nrm((2,)),
    }


if __name__ == "__main__":
    import numpy as np

    key = jax.random.PRNGKey(0)
    B, S, L = 2, 24, 8            # batch, sentence_num (>= max filter 20), sentence_len
    V, E, G, Fn = 300, 16, 16, 4  # vocab, embed_dim, gru_size, filter_num

    k_ids, k_param = jax.random.split(key)
    ids = jax.random.randint(k_ids, (B, S, L), 0, PAD_TOKEN, dtype=jnp.int32)
    ids = ids.at[:, :, -2:].set(PAD_TOKEN)   # deterministic PAD positions (masked in attention)

    params = init_params(k_param, V, E, G, Fn, FILTER_SIZES)

    out = jax.block_until_ready(bvts_cnn_forward(ids, params))
    assert out.shape == (B, 2), out.shape

    ref = jax.block_until_ready(reference_forward(ids, params))
    out_np, ref_np = np.asarray(out), np.asarray(ref)
    # Tolerance sized for bf16 MXU operands / bf16 wo scratch vs the f32 reference.
    if not np.allclose(out_np, ref_np, rtol=5e-2, atol=3e-2):
        raise AssertionError(
            f"kernel/reference mismatch, max abs diff = {np.max(np.abs(out_np - ref_np))}")

    print("KERNEL_OK")
</pallas_src>

<mosaic_0001>
module attributes {stable_mosaic.version = 11 : i64} {
  func.func @gru_attn_kernel(%arg0: i32, %arg1: memref<8x16x128xbf16, #tpu.memory_space<vmem>>, %arg2: memref<8x128xf32, #tpu.memory_space<vmem>>, %arg3: memref<96x16xbf16, #tpu.memory_space<vmem>>, %arg4: memref<96x32xbf16, #tpu.memory_space<vmem>>, %arg5: memref<48x1xf32, #tpu.memory_space<vmem>>, %arg6: memref<48x1xf32, #tpu.memory_space<vmem>>, %arg7: memref<16x1xf32, #tpu.memory_space<vmem>>, %arg8: memref<16x1xf32, #tpu.memory_space<vmem>>, %arg9: memref<32x32xbf16, #tpu.memory_space<vmem>>, %arg10: memref<32x1xf32, #tpu.memory_space<vmem>>, %arg11: memref<32x1xf32, #tpu.memory_space<vmem>>, %arg12: memref<32x128xf32, #tpu.memory_space<vmem>>, %arg13: memref<8x48x128xf32, #tpu.memory_space<vmem>>, %arg14: memref<8x48x128xf32, #tpu.memory_space<vmem>>, %arg15: memref<8x16x128xbf16, #tpu.memory_space<vmem>>, %arg16: memref<8x16x128xbf16, #tpu.memory_space<vmem>>) attributes {dimension_semantics = [#tpu.dimension_semantics<parallel>], iteration_bounds = array<i64: 1>, scalar_prefetch = 0 : i64, scratch_operands = 4 : i64, tpu.core_type = #tpu.core_type<tc>, window_params = [{transform_indices = @transform_0, window_bounds = array<i64: 8, 16, 128>}, {transform_indices = @transform_1, window_bounds = array<i64: 8, 128>}, {pipeline_mode = #tpu.pipeline_mode<synchronous>, transform_indices = @transform_2, window_bounds = array<i64: 96, 16>}, {pipeline_mode = #tpu.pipeline_mode<synchronous>, transform_indices = @transform_3, window_bounds = array<i64: 96, 32>}, {pipeline_mode = #tpu.pipeline_mode<synchronous>, transform_indices = @transform_4, window_bounds = array<i64: 48, 1>}, {pipeline_mode = #tpu.pipeline_mode<synchronous>, transform_indices = @transform_5, window_bounds = array<i64: 48, 1>}, {pipeline_mode = #tpu.pipeline_mode<synchronous>, transform_indices = @transform_6, window_bounds = array<i64: 16, 1>}, {pipeline_mode = #tpu.pipeline_mode<synchronous>, transform_indices = @transform_7, window_bounds = array<i64: 16, 1>}, {pipeline_mode = #tpu.pipeline_mode<synchronous>, transform_indices = @transform_8, window_bounds = array<i64: 32, 32>}, {pipeline_mode = #tpu.pipeline_mode<synchronous>, transform_indices = @transform_9, window_bounds = array<i64: 32, 1>}, {pipeline_mode = #tpu.pipeline_mode<synchronous>, transform_indices = @transform_10, window_bounds = array<i64: 32, 1>}, {transform_indices = @transform_11, window_bounds = array<i64: 32, 128>}]} {
    %c0 = arith.constant 0 : index
    %c0_0 = arith.constant 0 : index
    %0 = vector.load %arg3[%c0, %c0_0] : memref<96x16xbf16, #tpu.memory_space<vmem>>, vector<96x16xbf16>
    %c0_1 = arith.constant 0 : index
    %c0_2 = arith.constant 0 : index
    %1 = vector.load %arg4[%c0_1, %c0_2] : memref<96x32xbf16, #tpu.memory_space<vmem>>, vector<96x32xbf16>
    %c0_3 = arith.constant 0 : index
    %c0_4 = arith.constant 0 : index
    %2 = vector.load %arg5[%c0_3, %c0_4] : memref<48x1xf32, #tpu.memory_space<vmem>>, vector<48x1xf32>
    %c0_5 = arith.constant 0 : index
    %c0_6 = arith.constant 0 : index
    %3 = vector.load %arg6[%c0_5, %c0_6] : memref<48x1xf32, #tpu.memory_space<vmem>>, vector<48x1xf32>
    %c0_7 = arith.constant 0 : index
    %c0_8 = arith.constant 0 : index
    %4 = vector.load %arg7[%c0_7, %c0_8] : memref<16x1xf32, #tpu.memory_space<vmem>>, vector<16x1xf32>
    %c0_9 = arith.constant 0 : index
    %c0_10 = arith.constant 0 : index
    %5 = vector.load %arg8[%c0_9, %c0_10] : memref<16x1xf32, #tpu.memory_space<vmem>>, vector<16x1xf32>
    %c0_11 = arith.constant 0 : index
    %c0_12 = arith.constant 0 : index
    %c0_13 = arith.constant 0 : index
    %6 = vector.load %arg1[%c0_11, %c0_12, %c0_13] : memref<8x16x128xbf16, #tpu.memory_space<vmem>>, vector<1x16x128xbf16>
    %7 = vector.shape_cast %6 : vector<1x16x128xbf16> to vector<16x128xbf16>
    %cst = arith.constant dense<0.000000e+00> : vector<96x128xf32>
    %8 = tpu.matmul %0, %7, %cst {dimension_numbers = #tpu.dot_dimension_numbers<[1], [0], [0], [1], [0, 0, 1, 1], [], []>} : vector<96x16xbf16>, vector<16x128xbf16>, vector<96x128xf32> -> vector<96x128xf32>
    %9 = vector.extract_strided_slice %8 {offsets = [0, 0], sizes = [48, 128], strides = [1, 1]} : vector<96x128xf32> to vector<48x128xf32>
    %10 = vector.broadcast %2 : vector<48x1xf32> to vector<48x128xf32>
    %11 = arith.addf %9, %10 : vector<48x128xf32>
    %c0_14 = arith.constant 0 : index
    %c0_15 = arith.constant 0 : index
    %c0_16 = arith.constant 0 : index
    %12 = vector.load %arg13[%c0_14, %c0_15, %c0_16] : memref<8x48x128xf32, #tpu.memory_space<vmem>>, vector<1x48x128xf32>
    %13 = vector.shape_cast %12 : vector<1x48x128xf32> to vector<48x128xf32>
    %14 = vector.shape_cast %11 : vector<48x128xf32> to vector<1x48x128xf32>
    tpu.vector_store %arg13[%c0_14, %c0_15, %c0_16], %14 {strides = array<i32>} : memref<8x48x128xf32, #tpu.memory_space<vmem>>, vector<1x48x128xf32>,
    %15 = vector.extract_strided_slice %8 {offsets = [48, 0], sizes = [48, 128], strides = [1, 1]} : vector<96x128xf32> to vector<48x128xf32>
    %16 = vector.broadcast %3 : vector<48x1xf32> to vector<48x128xf32>
    %17 = arith.addf %15, %16 : vector<48x128xf32>
    %c0_17 = arith.constant 0 : index
    %c0_18 = arith.constant 0 : index
    %c0_19 = arith.constant 0 : index
    %18 = vector.load %arg14[%c0_17, %c0_18, %c0_19] : memref<8x48x128xf32, #tpu.memory_space<vmem>>, vector<1x48x128xf32>
    %19 = vector.shape_cast %18 : vector<1x48x128xf32> to vector<48x128xf32>
    %20 = vector.shape_cast %17 : vector<48x128xf32> to vector<1x48x128xf32>
    tpu.vector_store %arg14[%c0_17, %c0_18, %c0_19], %20 {strides = array<i32>} : memref<8x48x128xf32, #tpu.memory_space<vmem>>, vector<1x48x128xf32>,
    %c1 = arith.constant 1 : index
    %c0_20 = arith.constant 0 : index
    %c0_21 = arith.constant 0 : index
    %21 = vector.load %arg1[%c1, %c0_20, %c0_21] : memref<8x16x128xbf16, #tpu.memory_space<vmem>>, vector<1x16x128xbf16>
    %22 = vector.shape_cast %21 : vector<1x16x128xbf16> to vector<16x128xbf16>
    %cst_22 = arith.constant dense<0.000000e+00> : vector<96x128xf32>
    %23 = tpu.matmul %0, %22, %cst_22 {dimension_numbers = #tpu.dot_dimension_numbers<[1], [0], [0], [1], [0, 0, 1, 1], [], []>} : vector<96x16xbf16>, vector<16x128xbf16>, vector<96x128xf32> -> vector<96x128xf32>
    %24 = vector.extract_strided_slice %23 {offsets = [0, 0], sizes = [48, 128], strides = [1, 1]} : vector<96x128xf32> to vector<48x128xf32>
    %25 = vector.broadcast %2 : vector<48x1xf32> to vector<48x128xf32>
    %26 = arith.addf %24, %25 : vector<48x128xf32>
    %c1_23 = arith.constant 1 : index
    %c0_24 = arith.constant 0 : index
    %c0_25 = arith.constant 0 : index
    %27 = vector.load %arg13[%c1_23, %c0_24, %c0_25] : memref<8x48x128xf32, #tpu.memory_space<vmem>>, vector<1x48x128xf32>
    %28 = vector.shape_cast %27 : vector<1x48x128xf32> to vector<48x128xf32>
    %29 = vector.shape_cast %26 : vector<48x128xf32> to vector<1x48x128xf32>
    tpu.vector_store %arg13[%c1_23, %c0_24, %c0_25], %29 {strides = array<i32>} : memref<8x48x128xf32, #tpu.memory_space<vmem>>, vector<1x48x128xf32>,
    %30 = vector.extract_strided_slice %23 {offsets = [48, 0], sizes = [48, 128], strides = [1, 1]} : vector<96x128xf32> to vector<48x128xf32>
    %31 = vector.broadcast %3 : vector<48x1xf32> to vector<48x128xf32>
    %32 = arith.addf %30, %31 : vector<48x128xf32>
    %c1_26 = arith.constant 1 : index
    %c0_27 = arith.constant 0 : index
    %c0_28 = arith.constant 0 : index
    %33 = vector.load %arg14[%c1_26, %c0_27, %c0_28] : memref<8x48x128xf32, #tpu.memory_space<vmem>>, vector<1x48x128xf32>
    %34 = vector.shape_cast %33 : vector<1x48x128xf32> to vector<48x128xf32>
    %35 = vector.shape_cast %32 : vector<48x128xf32> to vector<1x48x128xf32>
    tpu.vector_store %arg14[%c1_26, %c0_27, %c0_28], %35 {strides = array<i32>} : memref<8x48x128xf32, #tpu.memory_space<vmem>>, vector<1x48x128xf32>,
    %c2 = arith.constant 2 : index
    %c0_29 = arith.constant 0 : index
    %c0_30 = arith.constant 0 : index
    %36 = vector.load %arg1[%c2, %c0_29, %c0_30] : memref<8x16x128xbf16, #tpu.memory_space<vmem>>, vector<1x16x128xbf16>
    %37 = vector.shape_cast %36 : vector<1x16x128xbf16> to vector<16x128xbf16>
    %cst_31 = arith.constant dense<0.000000e+00> : vector<96x128xf32>
    %38 = tpu.matmul %0, %37, %cst_31 {dimension_numbers = #tpu.dot_dimension_numbers<[1], [0], [0], [1], [0, 0, 1, 1], [], []>} : vector<96x16xbf16>, vector<16x128xbf16>, vector<96x128xf32> -> vector<96x128xf32>
    %39 = vector.extract_strided_slice %38 {offsets = [0, 0], sizes = [48, 128], strides = [1, 1]} : vector<96x128xf32> to vector<48x128xf32>
    %40 = vector.broadcast %2 : vector<48x1xf32> to vector<48x128xf32>
    %41 = arith.addf %39, %40 : vector<48x128xf32>
    %c2_32 = arith.constant 2 : index
    %c0_33 = arith.constant 0 : index
    %c0_34 = arith.constant 0 : index
    %42 = vector.load %arg13[%c2_32, %c0_33, %c0_34] : memref<8x48x128xf32, #tpu.memory_space<vmem>>, vector<1x48x128xf32>
    %43 = vector.shape_cast %42 : vector<1x48x128xf32> to vector<48x128xf32>
    %44 = vector.shape_cast %41 : vector<48x128xf32> to vector<1x48x128xf32>
    tpu.vector_store %arg13[%c2_32, %c0_33, %c0_34], %44 {strides = array<i32>} : memref<8x48x128xf32, #tpu.memory_space<vmem>>, vector<1x48x128xf32>,
    %45 = vector.extract_strided_slice %38 {offsets = [48, 0], sizes = [48, 128], strides = [1, 1]} : vector<96x128xf32> to vector<48x128xf32>
    %46 = vector.broadcast %3 : vector<48x1xf32> to vector<48x128xf32>
    %47 = arith.addf %45, %46 : vector<48x128xf32>
    %c2_35 = arith.constant 2 : index
    %c0_36 = arith.constant 0 : index
    %c0_37 = arith.constant 0 : index
    %48 = vector.load %arg14[%c2_35, %c0_36, %c0_37] : memref<8x48x128xf32, #tpu.memory_space<vmem>>, vector<1x48x128xf32>
    %49 = vector.shape_cast %48 : vector<1x48x128xf32> to vector<48x128xf32>
    %50 = vector.shape_cast %47 : vector<48x128xf32> to vector<1x48x128xf32>
    tpu.vector_store %arg14[%c2_35, %c0_36, %c0_37], %50 {strides = array<i32>} : memref<8x48x128xf32, #tpu.memory_space<vmem>>, vector<1x48x128xf32>,
    %c3 = arith.constant 3 : index
    %c0_38 = arith.constant 0 : index
    %c0_39 = arith.constant 0 : index
    %51 = vector.load %arg1[%c3, %c0_38, %c0_39] : memref<8x16x128xbf16, #tpu.memory_space<vmem>>, vector<1x16x128xbf16>
    %52 = vector.shape_cast %51 : vector<1x16x128xbf16> to vector<16x128xbf16>
    %cst_40 = arith.constant dense<0.000000e+00> : vector<96x128xf32>
    %53 = tpu.matmul %0, %52, %cst_40 {dimension_numbers = #tpu.dot_dimension_numbers<[1], [0], [0], [1], [0, 0, 1, 1], [], []>} : vector<96x16xbf16>, vector<16x128xbf16>, vector<96x128xf32> -> vector<96x128xf32>
    %54 = vector.extract_strided_slice %53 {offsets = [0, 0], sizes = [48, 128], strides = [1, 1]} : vector<96x128xf32> to vector<48x128xf32>
    %55 = vector.broadcast %2 : vector<48x1xf32> to vector<48x128xf32>
    %56 = arith.addf %54, %55 : vector<48x128xf32>
    %c3_41 = arith.constant 3 : index
    %c0_42 = arith.constant 0 : index
    %c0_43 = arith.constant 0 : index
    %57 = vector.load %arg13[%c3_41, %c0_42, %c0_43] : memref<8x48x128xf32, #tpu.memory_space<vmem>>, vector<1x48x128xf32>
    %58 = vector.shape_cast %57 : vector<1x48x128xf32> to vector<48x128xf32>
    %59 = vector.shape_cast %56 : vector<48x128xf32> to vector<1x48x128xf32>
    tpu.vector_store %arg13[%c3_41, %c0_42, %c0_43], %59 {strides = array<i32>} : memref<8x48x128xf32, #tpu.memory_space<vmem>>, vector<1x48x128xf32>,
    %60 = vector.extract_strided_slice %53 {offsets = [48, 0], sizes = [48, 128], strides = [1, 1]} : vector<96x128xf32> to vector<48x128xf32>
    %61 = vector.broadcast %3 : vector<48x1xf32> to vector<48x128xf32>
    %62 = arith.addf %60, %61 : vector<48x128xf32>
    %c3_44 = arith.constant 3 : index
    %c0_45 = arith.constant 0 : index
    %c0_46 = arith.constant 0 : index
    %63 = vector.load %arg14[%c3_44, %c0_45, %c0_46] : memref<8x48x128xf32, #tpu.memory_space<vmem>>, vector<1x48x128xf32>
    %64 = vector.shape_cast %63 : vector<1x48x128xf32> to vector<48x128xf32>
    %65 = vector.shape_cast %62 : vector<48x128xf32> to vector<1x48x128xf32>
    tpu.vector_store %arg14[%c3_44, %c0_45, %c0_46], %65 {strides = array<i32>} : memref<8x48x128xf32, #tpu.memory_space<vmem>>, vector<1x48x128xf32>,
    %c4 = arith.constant 4 : index
    %c0_47 = arith.constant 0 : index
    %c0_48 = arith.constant 0 : index
    %66 = vector.load %arg1[%c4, %c0_47, %c0_48] : memref<8x16x128xbf16, #tpu.memory_space<vmem>>, vector<1x16x128xbf16>
    %67 = vector.shape_cast %66 : vector<1x16x128xbf16> to vector<16x128xbf16>
    %cst_49 = arith.constant dense<0.000000e+00> : vector<96x128xf32>
    %68 = tpu.matmul %0, %67, %cst_49 {dimension_numbers = #tpu.dot_dimension_numbers<[1], [0], [0], [1], [0, 0, 1, 1], [], []>} : vector<96x16xbf16>, vector<16x128xbf16>, vector<96x128xf32> -> vector<96x128xf32>
    %69 = vector.extract_strided_slice %68 {offsets = [0, 0], sizes = [48, 128], strides = [1, 1]} : vector<96x128xf32> to vector<48x128xf32>
    %70 = vector.broadcast %2 : vector<48x1xf32> to vector<48x128xf32>
    %71 = arith.addf %69, %70 : vector<48x128xf32>
    %c4_50 = arith.constant 4 : index
    %c0_51 = arith.constant 0 : index
    %c0_52 = arith.constant 0 : index
    %72 = vector.load %arg13[%c4_50, %c0_51, %c0_52] : memref<8x48x128xf32, #tpu.memory_space<vmem>>, vector<1x48x128xf32>
    %73 = vector.shape_cast %72 : vector<1x48x128xf32> to vector<48x128xf32>
    %74 = vector.shape_cast %71 : vector<48x128xf32> to vector<1x48x128xf32>
    tpu.vector_store %arg13[%c4_50, %c0_51, %c0_52], %74 {strides = array<i32>} : memref<8x48x128xf32, #tpu.memory_space<vmem>>, vector<1x48x128xf32>,
    %75 = vector.extract_strided_slice %68 {offsets = [48, 0], sizes = [48, 128], strides = [1, 1]} : vector<96x128xf32> to vector<48x128xf32>
    %76 = vector.broadcast %3 : vector<48x1xf32> to vector<48x128xf32>
    %77 = arith.addf %75, %76 : vector<48x128xf32>
    %c4_53 = arith.constant 4 : index
    %c0_54 = arith.constant 0 : index
    %c0_55 = arith.constant 0 : index
    %78 = vector.load %arg14[%c4_53, %c0_54, %c0_55] : memref<8x48x128xf32, #tpu.memory_space<vmem>>, vector<1x48x128xf32>
    %79 = vector.shape_cast %78 : vector<1x48x128xf32> to vector<48x128xf32>
    %80 = vector.shape_cast %77 : vector<48x128xf32> to vector<1x48x128xf32>
    tpu.vector_store %arg14[%c4_53, %c0_54, %c0_55], %80 {strides = array<i32>} : memref<8x48x128xf32, #tpu.memory_space<vmem>>, vector<1x48x128xf32>,
    %c5 = arith.constant 5 : index
    %c0_56 = arith.constant 0 : index
    %c0_57 = arith.constant 0 : index
    %81 = vector.load %arg1[%c5, %c0_56, %c0_57] : memref<8x16x128xbf16, #tpu.memory_space<vmem>>, vector<1x16x128xbf16>
    %82 = vector.shape_cast %81 : vector<1x16x128xbf16> to vector<16x128xbf16>
    %cst_58 = arith.constant dense<0.000000e+00> : vector<96x128xf32>
    %83 = tpu.matmul %0, %82, %cst_58 {dimension_numbers = #tpu.dot_dimension_numbers<[1], [0], [0], [1], [0, 0, 1, 1], [], []>} : vector<96x16xbf16>, vector<16x128xbf16>, vector<96x128xf32> -> vector<96x128xf32>
    %84 = vector.extract_strided_slice %83 {offsets = [0, 0], sizes = [48, 128], strides = [1, 1]} : vector<96x128xf32> to vector<48x128xf32>
    %85 = vector.broadcast %2 : vector<48x1xf32> to vector<48x128xf32>
    %86 = arith.addf %84, %85 : vector<48x128xf32>
    %c5_59 = arith.constant 5 : index
    %c0_60 = arith.constant 0 : index
    %c0_61 = arith.constant 0 : index
    %87 = vector.load %arg13[%c5_59, %c0_60, %c0_61] : memref<8x48x128xf32, #tpu.memory_space<vmem>>, vector<1x48x128xf32>
    %88 = vector.shape_cast %87 : vector<1x48x128xf32> to vector<48x128xf32>
    %89 = vector.shape_cast %86 : vector<48x128xf32> to vector<1x48x128xf32>
    tpu.vector_store %arg13[%c5_59, %c0_60, %c0_61], %89 {strides = array<i32>} : memref<8x48x128xf32, #tpu.memory_space<vmem>>, vector<1x48x128xf32>,
    %90 = vector.extract_strided_slice %83 {offsets = [48, 0], sizes = [48, 128], strides = [1, 1]} : vector<96x128xf32> to vector<48x128xf32>
    %91 = vector.broadcast %3 : vector<48x1xf32> to vector<48x128xf32>
    %92 = arith.addf %90, %91 : vector<48x128xf32>
    %c5_62 = arith.constant 5 : index
    %c0_63 = arith.constant 0 : index
    %c0_64 = arith.constant 0 : index
    %93 = vector.load %arg14[%c5_62, %c0_63, %c0_64] : memref<8x48x128xf32, #tpu.memory_space<vmem>>, vector<1x48x128xf32>
    %94 = vector.shape_cast %93 : vector<1x48x128xf32> to vector<48x128xf32>
    %95 = vector.shape_cast %92 : vector<48x128xf32> to vector<1x48x128xf32>
    tpu.vector_store %arg14[%c5_62, %c0_63, %c0_64], %95 {strides = array<i32>} : memref<8x48x128xf32, #tpu.memory_space<vmem>>, vector<1x48x128xf32>,
    %c6 = arith.constant 6 : index
    %c0_65 = arith.constant 0 : index
    %c0_66 = arith.constant 0 : index
    %96 = vector.load %arg1[%c6, %c0_65, %c0_66] : memref<8x16x128xbf16, #tpu.memory_space<vmem>>, vector<1x16x128xbf16>
    %97 = vector.shape_cast %96 : vector<1x16x128xbf16> to vector<16x128xbf16>
    %cst_67 = arith.constant dense<0.000000e+00> : vector<96x128xf32>
    %98 = tpu.matmul %0, %97, %cst_67 {dimension_numbers = #tpu.dot_dimension_numbers<[1], [0], [0], [1], [0, 0, 1, 1], [], []>} : vector<96x16xbf16>, vector<16x128xbf16>, vector<96x128xf32> -> vector<96x128xf32>
    %99 = vector.extract_strided_slice %98 {offsets = [0, 0], sizes = [48, 128], strides = [1, 1]} : vector<96x128xf32> to vector<48x128xf32>
    %100 = vector.broadcast %2 : vector<48x1xf32> to vector<48x128xf32>
    %101 = arith.addf %99, %100 : vector<48x128xf32>
    %c6_68 = arith.constant 6 : index
    %c0_69 = arith.constant 0 : index
    %c0_70 = arith.constant 0 : index
    %102 = vector.load %arg13[%c6_68, %c0_69, %c0_70] : memref<8x48x128xf32, #tpu.memory_space<vmem>>, vector<1x48x128xf32>
    %103 = vector.shape_cast %102 : vector<1x48x128xf32> to vector<48x128xf32>
    %104 = vector.shape_cast %101 : vector<48x128xf32> to vector<1x48x128xf32>
    tpu.vector_store %arg13[%c6_68, %c0_69, %c0_70], %104 {strides = array<i32>} : memref<8x48x128xf32, #tpu.memory_space<vmem>>, vector<1x48x128xf32>,
    %105 = vector.extract_strided_slice %98 {offsets = [48, 0], sizes = [48, 128], strides = [1, 1]} : vector<96x128xf32> to vector<48x128xf32>
    %106 = vector.broadcast %3 : vector<48x1xf32> to vector<48x128xf32>
    %107 = arith.addf %105, %106 : vector<48x128xf32>
    %c6_71 = arith.constant 6 : index
    %c0_72 = arith.constant 0 : index
    %c0_73 = arith.constant 0 : index
    %108 = vector.load %arg14[%c6_71, %c0_72, %c0_73] : memref<8x48x128xf32, #tpu.memory_space<vmem>>, vector<1x48x128xf32>
    %109 = vector.shape_cast %108 : vector<1x48x128xf32> to vector<48x128xf32>
    %110 = vector.shape_cast %107 : vector<48x128xf32> to vector<1x48x128xf32>
    tpu.vector_store %arg14[%c6_71, %c0_72, %c0_73], %110 {strides = array<i32>} : memref<8x48x128xf32, #tpu.memory_space<vmem>>, vector<1x48x128xf32>,
    %c7 = arith.constant 7 : index
    %c0_74 = arith.constant 0 : index
    %c0_75 = arith.constant 0 : index
    %111 = vector.load %arg1[%c7, %c0_74, %c0_75] : memref<8x16x128xbf16, #tpu.memory_space<vmem>>, vector<1x16x128xbf16>
    %112 = vector.shape_cast %111 : vector<1x16x128xbf16> to vector<16x128xbf16>
    %cst_76 = arith.constant dense<0.000000e+00> : vector<96x128xf32>
    %113 = tpu.matmul %0, %112, %cst_76 {dimension_numbers = #tpu.dot_dimension_numbers<[1], [0], [0], [1], [0, 0, 1, 1], [], []>} : vector<96x16xbf16>, vector<16x128xbf16>, vector<96x128xf32> -> vector<96x128xf32>
    %114 = vector.extract_strided_slice %113 {offsets = [0, 0], sizes = [48, 128], strides = [1, 1]} : vector<96x128xf32> to vector<48x128xf32>
    %115 = vector.broadcast %2 : vector<48x1xf32> to vector<48x128xf32>
    %116 = arith.addf %114, %115 : vector<48x128xf32>
    %c7_77 = arith.constant 7 : index
    %c0_78 = arith.constant 0 : index
    %c0_79 = arith.constant 0 : index
    %117 = vector.load %arg13[%c7_77, %c0_78, %c0_79] : memref<8x48x128xf32, #tpu.memory_space<vmem>>, vector<1x48x128xf32>
    %118 = vector.shape_cast %117 : vector<1x48x128xf32> to vector<48x128xf32>
    %119 = vector.shape_cast %116 : vector<48x128xf32> to vector<1x48x128xf32>
    tpu.vector_store %arg13[%c7_77, %c0_78, %c0_79], %119 {strides = array<i32>} : memref<8x48x128xf32, #tpu.memory_space<vmem>>, vector<1x48x128xf32>,
    %120 = vector.extract_strided_slice %113 {offsets = [48, 0], sizes = [48, 128], strides = [1, 1]} : vector<96x128xf32> to vector<48x128xf32>
    %121 = vector.broadcast %3 : vector<48x1xf32> to vector<48x128xf32>
    %122 = arith.addf %120, %121 : vector<48x128xf32>
    %c7_80 = arith.constant 7 : index
    %c0_81 = arith.constant 0 : index
    %c0_82 = arith.constant 0 : index
    %123 = vector.load %arg14[%c7_80, %c0_81, %c0_82] : memref<8x48x128xf32, #tpu.memory_space<vmem>>, vector<1x48x128xf32>
    %124 = vector.shape_cast %123 : vector<1x48x128xf32> to vector<48x128xf32>
    %125 = vector.shape_cast %122 : vector<48x128xf32> to vector<1x48x128xf32>
    tpu.vector_store %arg14[%c7_80, %c0_81, %c0_82], %125 {strides = array<i32>} : memref<8x48x128xf32, #tpu.memory_space<vmem>>, vector<1x48x128xf32>,
    %cst_83 = arith.constant 0.000000e+00 : f32
    %126 = vector.broadcast %cst_83 : f32 to vector<32x128xf32>
    %c0_i32 = arith.constant 0 : i32
    %c7_i32 = arith.constant 7 : i32
    %127 = arith.subi %c7_i32, %c0_i32 : i32
    %128 = arith.truncf %126 : vector<32x128xf32> to vector<32x128xbf16>
    %cst_84 = arith.constant dense<0.000000e+00> : vector<96x128xf32>
    %129 = tpu.matmul %1, %128, %cst_84 {dimension_numbers = #tpu.dot_dimension_numbers<[1], [0], [0], [1], [0, 0, 1, 1], [], []>} : vector<96x32xbf16>, vector<32x128xbf16>, vector<96x128xf32> -> vector<96x128xf32>
    %130 = arith.index_cast %c0_i32 : i32 to index
    %c0_85 = arith.constant 0 : index
    %c0_86 = arith.constant 0 : index
    %131 = vector.load %arg13[%130, %c0_85, %c0_86] : memref<8x48x128xf32, #tpu.memory_space<vmem>>, vector<1x48x128xf32>
    %132 = vector.shape_cast %131 : vector<1x48x128xf32> to vector<48x128xf32>
    %133 = arith.index_cast %127 : i32 to index
    %c0_87 = arith.constant 0 : index
    %c0_88 = arith.constant 0 : index
    %134 = vector.load %arg14[%133, %c0_87, %c0_88] : memref<8x48x128xf32, #tpu.memory_space<vmem>>, vector<1x48x128xf32>
    %135 = vector.shape_cast %134 : vector<1x48x128xf32> to vector<48x128xf32>
    %136 = vector.extract_strided_slice %126 {offsets = [0, 0], sizes = [16, 128], strides = [1, 1]} : vector<32x128xf32> to vector<16x128xf32>
    %137 = vector.extract_strided_slice %126 {offsets = [16, 0], sizes = [16, 128], strides = [1, 1]} : vector<32x128xf32> to vector<16x128xf32>
    %138 = vector.extract_strided_slice %132 {offsets = [0, 0], sizes = [16, 128], strides = [1, 1]} : vector<48x128xf32> to vector<16x128xf32>
    %139 = vector.extract_strided_slice %129 {offsets = [0, 0], sizes = [16, 128], strides = [1, 1]} : vector<96x128xf32> to vector<16x128xf32>
    %140 = arith.addf %138, %139 : vector<16x128xf32>
    %141 = arith.negf %140 : vector<16x128xf32>
    %142 = math.exp %141 : vector<16x128xf32>
    %cst_89 = arith.constant 1.000000e+00 : f32
    %143 = vector.broadcast %cst_89 : f32 to vector<16x128xf32>
    %144 = arith.addf %143, %142 : vector<16x128xf32>
    %145 = arith.divf %143, %144 : vector<16x128xf32>
    %146 = vector.extract_strided_slice %132 {offsets = [16, 0], sizes = [16, 128], strides = [1, 1]} : vector<48x128xf32> to vector<16x128xf32>
    %147 = vector.extract_strided_slice %129 {offsets = [16, 0], sizes = [16, 128], strides = [1, 1]} : vector<96x128xf32> to vector<16x128xf32>
    %148 = arith.addf %146, %147 : vector<16x128xf32>
    %149 = arith.negf %148 : vector<16x128xf32>
    %150 = math.exp %149 : vector<16x128xf32>
    %cst_90 = arith.constant 1.000000e+00 : f32
    %151 = vector.broadcast %cst_90 : f32 to vector<16x128xf32>
    %152 = arith.addf %151, %150 : vector<16x128xf32>
    %153 = arith.divf %151, %152 : vector<16x128xf32>
    %154 = vector.extract_strided_slice %132 {offsets = [32, 0], sizes = [16, 128], strides = [1, 1]} : vector<48x128xf32> to vector<16x128xf32>
    %155 = vector.extract_strided_slice %129 {offsets = [32, 0], sizes = [16, 128], strides = [1, 1]} : vector<96x128xf32> to vector<16x128xf32>
    %156 = vector.broadcast %4 : vector<16x1xf32> to vector<16x128xf32>
    %157 = arith.addf %155, %156 : vector<16x128xf32>
    %158 = arith.mulf %145, %157 : vector<16x128xf32>
    %159 = arith.addf %154, %158 : vector<16x128xf32>
    %160 = math.tanh %159 : vector<16x128xf32>
    %cst_91 = arith.constant 1.000000e+00 : f32
    %161 = vector.broadcast %cst_91 : f32 to vector<16x128xf32>
    %162 = arith.subf %161, %153 : vector<16x128xf32>
    %163 = arith.mulf %162, %160 : vector<16x128xf32>
    %164 = arith.mulf %153, %136 : vector<16x128xf32>
    %165 = arith.addf %163, %164 : vector<16x128xf32>
    %166 = vector.extract_strided_slice %135 {offsets = [0, 0], sizes = [16, 128], strides = [1, 1]} : vector<48x128xf32> to vector<16x128xf32>
    %167 = vector.extract_strided_slice %129 {offsets = [48, 0], sizes = [16, 128], strides = [1, 1]} : vector<96x128xf32> to vector<16x128xf32>
    %168 = arith.addf %166, %167 : vector<16x128xf32>
    %169 = arith.negf %168 : vector<16x128xf32>
    %170 = math.exp %169 : vector<16x128xf32>
    %cst_92 = arith.constant 1.000000e+00 : f32
    %171 = vector.broadcast %cst_92 : f32 to vector<16x128xf32>
    %172 = arith.addf %171, %170 : vector<16x128xf32>
    %173 = arith.divf %171, %172 : vector<16x128xf32>
    %174 = vector.extract_strided_slice %135 {offsets = [16, 0], sizes = [16, 128], strides = [1, 1]} : vector<48x128xf32> to vector<16x128xf32>
    %175 = vector.extract_strided_slice %129 {offsets = [64, 0], sizes = [16, 128], strides = [1, 1]} : vector<96x128xf32> to vector<16x128xf32>
    %176 = arith.addf %174, %175 : vector<16x128xf32>
    %177 = arith.negf %176 : vector<16x128xf32>
    %178 = math.exp %177 : vector<16x128xf32>
    %cst_93 = arith.constant 1.000000e+00 : f32
    %179 = vector.broadcast %cst_93 : f32 to vector<16x128xf32>
    %180 = arith.addf %179, %178 : vector<16x128xf32>
    %181 = arith.divf %179, %180 : vector<16x128xf32>
    %182 = vector.extract_strided_slice %135 {offsets = [32, 0], sizes = [16, 128], strides = [1, 1]} : vector<48x128xf32> to vector<16x128xf32>
    %183 = vector.extract_strided_slice %129 {offsets = [80, 0], sizes = [16, 128], strides = [1, 1]} : vector<96x128xf32> to vector<16x128xf32>
    %184 = vector.broadcast %5 : vector<16x1xf32> to vector<16x128xf32>
    %185 = arith.addf %183, %184 : vector<16x128xf32>
    %186 = arith.mulf %173, %185 : vector<16x128xf32>
    %187 = arith.addf %182, %186 : vector<16x128xf32>
    %188 = math.tanh %187 : vector<16x128xf32>
    %cst_94 = arith.constant 1.000000e+00 : f32
    %189 = vector.broadcast %cst_94 : f32 to vector<16x128xf32>
    %190 = arith.subf %189, %181 : vector<16x128xf32>
    %191 = arith.mulf %190, %188 : vector<16x128xf32>
    %192 = arith.mulf %181, %137 : vector<16x128xf32>
    %193 = arith.addf %191, %192 : vector<16x128xf32>
    %194 = arith.truncf %165 : vector<16x128xf32> to vector<16x128xbf16>
    %195 = arith.index_cast %c0_i32 : i32 to index
    %c0_95 = arith.constant 0 : index
    %c0_96 = arith.constant 0 : index
    %196 = vector.load %arg15[%195, %c0_95, %c0_96] : memref<8x16x128xbf16, #tpu.memory_space<vmem>>, vector<1x16x128xbf16>
    %197 = vector.shape_cast %196 : vector<1x16x128xbf16> to vector<16x128xbf16>
    %198 = vector.shape_cast %194 : vector<16x128xbf16> to vector<1x16x128xbf16>
    tpu.vector_store %arg15[%195, %c0_95, %c0_96], %198 {strides = array<i32>} : memref<8x16x128xbf16, #tpu.memory_space<vmem>>, vector<1x16x128xbf16>,
    %199 = arith.truncf %193 : vector<16x128xf32> to vector<16x128xbf16>
    %200 = arith.index_cast %127 : i32 to index
    %c0_97 = arith.constant 0 : index
    %c0_98 = arith.constant 0 : index
    %201 = vector.load %arg16[%200, %c0_97, %c0_98] : memref<8x16x128xbf16, #tpu.memory_space<vmem>>, vector<1x16x128xbf16>
    %202 = vector.shape_cast %201 : vector<1x16x128xbf16> to vector<16x128xbf16>
    %203 = vector.shape_cast %199 : vector<16x128xbf16> to vector<1x16x128xbf16>
    tpu.vector_store %arg16[%200, %c0_97, %c0_98], %203 {strides = array<i32>} : memref<8x16x128xbf16, #tpu.memory_space<vmem>>, vector<1x16x128xbf16>,
    %204 = tpu.concatenate %165, %193 in 0 : vector<16x128xf32>, vector<16x128xf32> -> vector<32x128xf32>
    %c1_i32 = arith.constant 1 : i32
    %c7_i32_99 = arith.constant 7 : i32
    %205 = arith.subi %c7_i32_99, %c1_i32 : i32
    %206 = arith.truncf %204 : vector<32x128xf32> to vector<32x128xbf16>
    %cst_100 = arith.constant dense<0.000000e+00> : vector<96x128xf32>
    %207 = tpu.matmul %1, %206, %cst_100 {dimension_numbers = #tpu.dot_dimension_numbers<[1], [0], [0], [1], [0, 0, 1, 1], [], []>} : vector<96x32xbf16>, vector<32x128xbf16>, vector<96x128xf32> -> vector<96x128xf32>
    %208 = arith.index_cast %c1_i32 : i32 to index
    %c0_101 = arith.constant 0 : index
    %c0_102 = arith.constant 0 : index
    %209 = vector.load %arg13[%208, %c0_101, %c0_102] : memref<8x48x128xf32, #tpu.memory_space<vmem>>, vector<1x48x128xf32>
    %210 = vector.shape_cast %209 : vector<1x48x128xf32> to vector<48x128xf32>
    %211 = arith.index_cast %205 : i32 to index
    %c0_103 = arith.constant 0 : index
    %c0_104 = arith.constant 0 : index
    %212 = vector.load %arg14[%211, %c0_103, %c0_104] : memref<8x48x128xf32, #tpu.memory_space<vmem>>, vector<1x48x128xf32>
    %213 = vector.shape_cast %212 : vector<1x48x128xf32> to vector<48x128xf32>
    %214 = vector.extract_strided_slice %204 {offsets = [0, 0], sizes = [16, 128], strides = [1, 1]} : vector<32x128xf32> to vector<16x128xf32>
    %215 = vector.extract_strided_slice %204 {offsets = [16, 0], sizes = [16, 128], strides = [1, 1]} : vector<32x128xf32> to vector<16x128xf32>
    %216 = vector.extract_strided_slice %210 {offsets = [0, 0], sizes = [16, 128], strides = [1, 1]} : vector<48x128xf32> to vector<16x128xf32>
    %217 = vector.extract_strided_slice %207 {offsets = [0, 0], sizes = [16, 128], strides = [1, 1]} : vector<96x128xf32> to vector<16x128xf32>
    %218 = arith.addf %216, %217 : vector<16x128xf32>
    %219 = arith.negf %218 : vector<16x128xf32>
    %220 = math.exp %219 : vector<16x128xf32>
    %cst_105 = arith.constant 1.000000e+00 : f32
    %221 = vector.broadcast %cst_105 : f32 to vector<16x128xf32>
    %222 = arith.addf %221, %220 : vector<16x128xf32>
    %223 = arith.divf %221, %222 : vector<16x128xf32>
    %224 = vector.extract_strided_slice %210 {offsets = [16, 0], sizes = [16, 128], strides = [1, 1]} : vector<48x128xf32> to vector<16x128xf32>
    %225 = vector.extract_strided_slice %207 {offsets = [16, 0], sizes = [16, 128], strides = [1, 1]} : vector<96x128xf32> to vector<16x128xf32>
    %226 = arith.addf %224, %225 : vector<16x128xf32>
    %227 = arith.negf %226 : vector<16x128xf32>
    %228 = math.exp %227 : vector<16x128xf32>
    %cst_106 = arith.constant 1.000000e+00 : f32
    %229 = vector.broadcast %cst_106 : f32 to vector<16x128xf32>
    %230 = arith.addf %229, %228 : vector<16x128xf32>
    %231 = arith.divf %229, %230 : vector<16x128xf32>
    %232 = vector.extract_strided_slice %210 {offsets = [32, 0], sizes = [16, 128], strides = [1, 1]} : vector<48x128xf32> to vector<16x128xf32>
    %233 = vector.extract_strided_slice %207 {offsets = [32, 0], sizes = [16, 128], strides = [1, 1]} : vector<96x128xf32> to vector<16x128xf32>
    %234 = vector.broadcast %4 : vector<16x1xf32> to vector<16x128xf32>
    %235 = arith.addf %233, %234 : vector<16x128xf32>
    %236 = arith.mulf %223, %235 : vector<16x128xf32>
    %237 = arith.addf %232, %236 : vector<16x128xf32>
    %238 = math.tanh %237 : vector<16x128xf32>
    %cst_107 = arith.constant 1.000000e+00 : f32
    %239 = vector.broadcast %cst_107 : f32 to vector<16x128xf32>
    %240 = arith.subf %239, %231 : vector<16x128xf32>
    %241 = arith.mulf %240, %238 : vector<16x128xf32>
    %242 = arith.mulf %231, %214 : vector<16x128xf32>
    %243 = arith.addf %241, %242 : vector<16x128xf32>
    %244 = vector.extract_strided_slice %213 {offsets = [0, 0], sizes = [16, 128], strides = [1, 1]} : vector<48x128xf32> to vector<16x128xf32>
    %245 = vector.extract_strided_slice %207 {offsets = [48, 0], sizes = [16, 128], strides = [1, 1]} : vector<96x128xf32> to vector<16x128xf32>
    %246 = arith.addf %244, %245 : vector<16x128xf32>
    %247 = arith.negf %246 : vector<16x128xf32>
    %248 = math.exp %247 : vector<16x128xf32>
    %cst_108 = arith.constant 1.000000e+00 : f32
    %249 = vector.broadcast %cst_108 : f32 to vector<16x128xf32>
    %250 = arith.addf %249, %248 : vector<16x128xf32>
    %251 = arith.divf %249, %250 : vector<16x128xf32>
    %252 = vector.extract_strided_slice %213 {offsets = [16, 0], sizes = [16, 128], strides = [1, 1]} : vector<48x128xf32> to vector<16x128xf32>
    %253 = vector.extract_strided_slice %207 {offsets = [64, 0], sizes = [16, 128], strides = [1, 1]} : vector<96x128xf32> to vector<16x128xf32>
    %254 = arith.addf %252, %253 : vector<16x128xf32>
    %255 = arith.negf %254 : vector<16x128xf32>
    %256 = math.exp %255 : vector<16x128xf32>
    %cst_109 = arith.constant 1.000000e+00 : f32
    %257 = vector.broadcast %cst_109 : f32 to vector<16x128xf32>
    %258 = arith.addf %257, %256 : vector<16x128xf32>
    %259 = arith.divf %257, %258 : vector<16x128xf32>
    %260 = vector.extract_strided_slice %213 {offsets = [32, 0], sizes = [16, 128], strides = [1, 1]} : vector<48x128xf32> to vector<16x128xf32>
    %261 = vector.extract_strided_slice %207 {offsets = [80, 0], sizes = [16, 128], strides = [1, 1]} : vector<96x128xf32> to vector<16x128xf32>
    %262 = vector.broadcast %5 : vector<16x1xf32> to vector<16x128xf32>
    %263 = arith.addf %261, %262 : vector<16x128xf32>
    %264 = arith.mulf %251, %263 : vector<16x128xf32>
    %265 = arith.addf %260, %264 : vector<16x128xf32>
    %266 = math.tanh %265 : vector<16x128xf32>
    %cst_110 = arith.constant 1.000000e+00 : f32
    %267 = vector.broadcast %cst_110 : f32 to vector<16x128xf32>
    %268 = arith.subf %267, %259 : vector<16x128xf32>
    %269 = arith.mulf %268, %266 : vector<16x128xf32>
    %270 = arith.mulf %259, %215 : vector<16x128xf32>
    %271 = arith.addf %269, %270 : vector<16x128xf32>
    %272 = arith.truncf %243 : vector<16x128xf32> to vector<16x128xbf16>
    %273 = arith.index_cast %c1_i32 : i32 to index
    %c0_111 = arith.constant 0 : index
    %c0_112 = arith.constant 0 : index
    %274 = vector.load %arg15[%273, %c0_111, %c0_112] : memref<8x16x128xbf16, #tpu.memory_space<vmem>>, vector<1x16x128xbf16>
    %275 = vector.shape_cast %274 : vector<1x16x128xbf16> to vector<16x128xbf16>
    %276 = vector.shape_cast %272 : vector<16x128xbf16> to vector<1x16x128xbf16>
    tpu.vector_store %arg15[%273, %c0_111, %c0_112], %276 {strides = array<i32>} : memref<8x16x128xbf16, #tpu.memory_space<vmem>>, vector<1x16x128xbf16>,
    %277 = arith.truncf %271 : vector<16x128xf32> to vector<16x128xbf16>
    %278 = arith.index_cast %205 : i32 to index
    %c0_113 = arith.constant 0 : index
    %c0_114 = arith.constant 0 : index
    %279 = vector.load %arg16[%278, %c0_113, %c0_114] : memref<8x16x128xbf16, #tpu.memory_space<vmem>>, vector<1x16x128xbf16>
    %280 = vector.shape_cast %279 : vector<1x16x128xbf16> to vector<16x128xbf16>
    %281 = vector.shape_cast %277 : vector<16x128xbf16> to vector<1x16x128xbf16>
    tpu.vector_store %arg16[%278, %c0_113, %c0_114], %281 {strides = array<i32>} : memref<8x16x128xbf16, #tpu.memory_space<vmem>>, vector<1x16x128xbf16>,
    %282 = tpu.concatenate %243, %271 in 0 : vector<16x128xf32>, vector<16x128xf32> -> vector<32x128xf32>
    %c2_i32 = arith.constant 2 : i32
    %c7_i32_115 = arith.constant 7 : i32
    %283 = arith.subi %c7_i32_115, %c2_i32 : i32
    %284 = arith.truncf %282 : vector<32x128xf32> to vector<32x128xbf16>
    %cst_116 = arith.constant dense<0.000000e+00> : vector<96x128xf32>
    %285 = tpu.matmul %1, %284, %cst_116 {dimension_numbers = #tpu.dot_dimension_numbers<[1], [0], [0], [1], [0, 0, 1, 1], [], []>} : vector<96x32xbf16>, vector<32x128xbf16>, vector<96x128xf32> -> vector<96x128xf32>
    %286 = arith.index_cast %c2_i32 : i32 to index
    %c0_117 = arith.constant 0 : index
    %c0_118 = arith.constant 0 : index
    %287 = vector.load %arg13[%286, %c0_117, %c0_118] : memref<8x48x128xf32, #tpu.memory_space<vmem>>, vector<1x48x128xf32>
    %288 = vector.shape_cast %287 : vector<1x48x128xf32> to vector<48x128xf32>
    %289 = arith.index_cast %283 : i32 to index
    %c0_119 = arith.constant 0 : index
    %c0_120 = arith.constant 0 : index
    %290 = vector.load %arg14[%289, %c0_119, %c0_120] : memref<8x48x128xf32, #tpu.memory_space<vmem>>, vector<1x48x128xf32>
    %291 = vector.shape_cast %290 : vector<1x48x128xf32> to vector<48x128xf32>
    %292 = vector.extract_strided_slice %282 {offsets = [0, 0], sizes = [16, 128], strides = [1, 1]} : vector<32x128xf32> to vector<16x128xf32>
    %293 = vector.extract_strided_slice %282 {offsets = [16, 0], sizes = [16, 128], strides = [1, 1]} : vector<32x128xf32> to vector<16x128xf32>
    %294 = vector.extract_strided_slice %288 {offsets = [0, 0], sizes = [16, 128], strides = [1, 1]} : vector<48x128xf32> to vector<16x128xf32>
    %295 = vector.extract_strided_slice %285 {offsets = [0, 0], sizes = [16, 128], strides = [1, 1]} : vector<96x128xf32> to vector<16x128xf32>
    %296 = arith.addf %294, %295 : vector<16x128xf32>
    %297 = arith.negf %296 : vector<16x128xf32>
    %298 = math.exp %297 : vector<16x128xf32>
    %cst_121 = arith.constant 1.000000e+00 : f32
    %299 = vector.broadcast %cst_121 : f32 to vector<16x128xf32>
    %300 = arith.addf %299, %298 : vector<16x128xf32>
    %301 = arith.divf %299, %300 : vector<16x128xf32>
    %302 = vector.extract_strided_slice %288 {offsets = [16, 0], sizes = [16, 128], strides = [1, 1]} : vector<48x128xf32> to vector<16x128xf32>
    %303 = vector.extract_strided_slice %285 {offsets = [16, 0], sizes = [16, 128], strides = [1, 1]} : vector<96x128xf32> to vector<16x128xf32>
    %304 = arith.addf %302, %303 : vector<16x128xf32>
    %305 = arith.negf %304 : vector<16x128xf32>
    %306 = math.exp %305 : vector<16x128xf32>
    %cst_122 = arith.constant 1.000000e+00 : f32
    %307 = vector.broadcast %cst_122 : f32 to vector<16x128xf32>
    %308 = arith.addf %307, %306 : vector<16x128xf32>
    %309 = arith.divf %307, %308 : vector<16x128xf32>
    %310 = vector.extract_strided_slice %288 {offsets = [32, 0], sizes = [16, 128], strides = [1, 1]} : vector<48x128xf32> to vector<16x128xf32>
    %311 = vector.extract_strided_slice %285 {offsets = [32, 0], sizes = [16, 128], strides = [1, 1]} : vector<96x128xf32> to vector<16x128xf32>
    %312 = vector.broadcast %4 : vector<16x1xf32> to vector<16x128xf32>
    %313 = arith.addf %311, %312 : vector<16x128xf32>
    %314 = arith.mulf %301, %313 : vector<16x128xf32>
    %315 = arith.addf %310, %314 : vector<16x128xf32>
    %316 = math.tanh %315 : vector<16x128xf32>
    %cst_123 = arith.constant 1.000000e+00 : f32
    %317 = vector.broadcast %cst_123 : f32 to vector<16x128xf32>
    %318 = arith.subf %317, %309 : vector<16x128xf32>
    %319 = arith.mulf %318, %316 : vector<16x128xf32>
    %320 = arith.mulf %309, %292 : vector<16x128xf32>
    %321 = arith.addf %319, %320 : vector<16x128xf32>
    %322 = vector.extract_strided_slice %291 {offsets = [0, 0], sizes = [16, 128], strides = [1, 1]} : vector<48x128xf32> to vector<16x128xf32>
    %323 = vector.extract_strided_slice %285 {offsets = [48, 0], sizes = [16, 128], strides = [1, 1]} : vector<96x128xf32> to vector<16x128xf32>
    %324 = arith.addf %322, %323 : vector<16x128xf32>
    %325 = arith.negf %324 : vector<16x128xf32>
    %326 = math.exp %325 : vector<16x128xf32>
    %cst_124 = arith.constant 1.000000e+00 : f32
    %327 = vector.broadcast %cst_124 : f32 to vector<16x128xf32>
    %328 = arith.addf %327, %326 : vector<16x128xf32>
    %329 = arith.divf %327, %328 : vector<16x128xf32>
    %330 = vector.extract_strided_slice %291 {offsets = [16, 0], sizes = [16, 128], strides = [1, 1]} : vector<48x128xf32> to vector<16x128xf32>
    %331 = vector.extract_strided_slice %285 {offsets = [64, 0], sizes = [16, 128], strides = [1, 1]} : vector<96x128xf32> to vector<16x128xf32>
    %332 = arith.addf %330, %331 : vector<16x128xf32>
    %333 = arith.negf %332 : vector<16x128xf32>
    %334 = math.exp %333 : vector<16x128xf32>
    %cst_125 = arith.constant 1.000000e+00 : f32
    %335 = vector.broadcast %cst_125 : f32 to vector<16x128xf32>
    %336 = arith.addf %335, %334 : vector<16x128xf32>
    %337 = arith.divf %335, %336 : vector<16x128xf32>
    %338 = vector.extract_strided_slice %291 {offsets = [32, 0], sizes = [16, 128], strides = [1, 1]} : vector<48x128xf32> to vector<16x128xf32>
    %339 = vector.extract_strided_slice %285 {offsets = [80, 0], sizes = [16, 128], strides = [1, 1]} : vector<96x128xf32> to vector<16x128xf32>
    %340 = vector.broadcast %5 : vector<16x1xf32> to vector<16x128xf32>
    %341 = arith.addf %339, %340 : vector<16x128xf32>
    %342 = arith.mulf %329, %341 : vector<16x128xf32>
    %343 = arith.addf %338, %342 : vector<16x128xf32>
    %344 = math.tanh %343 : vector<16x128xf32>
    %cst_126 = arith.constant 1.000000e+00 : f32
    %345 = vector.broadcast %cst_126 : f32 to vector<16x128xf32>
    %346 = arith.subf %345, %337 : vector<16x128xf32>
    %347 = arith.mulf %346, %344 : vector<16x128xf32>
    %348 = arith.mulf %337, %293 : vector<16x128xf32>
    %349 = arith.addf %347, %348 : vector<16x128xf32>
    %350 = arith.truncf %321 : vector<16x128xf32> to vector<16x128xbf16>
    %351 = arith.index_cast %c2_i32 : i32 to index
    %c0_127 = arith.constant 0 : index
    %c0_128 = arith.constant 0 : index
    %352 = vector.load %arg15[%351, %c0_127, %c0_128] : memref<8x16x128xbf16, #tpu.memory_space<vmem>>, vector<1x16x128xbf16>
    %353 = vector.shape_cast %352 : vector<1x16x128xbf16> to vector<16x128xbf16>
    %354 = vector.shape_cast %350 : vector<16x128xbf16> to vector<1x16x128xbf16>
    tpu.vector_store %arg15[%351, %c0_127, %c0_128], %354 {strides = array<i32>} : memref<8x16x128xbf16, #tpu.memory_space<vmem>>, vector<1x16x128xbf16>,
    %355 = arith.truncf %349 : vector<16x128xf32> to vector<16x128xbf16>
    %356 = arith.index_cast %283 : i32 to index
    %c0_129 = arith.constant 0 : index
    %c0_130 = arith.constant 0 : index
    %357 = vector.load %arg16[%356, %c0_129, %c0_130] : memref<8x16x128xbf16, #tpu.memory_space<vmem>>, vector<1x16x128xbf16>
    %358 = vector.shape_cast %357 : vector<1x16x128xbf16> to vector<16x128xbf16>
    %359 = vector.shape_cast %355 : vector<16x128xbf16> to vector<1x16x128xbf16>
    tpu.vector_store %arg16[%356, %c0_129, %c0_130], %359 {strides = array<i32>} : memref<8x16x128xbf16, #tpu.memory_space<vmem>>, vector<1x16x128xbf16>,
    %360 = tpu.concatenate %321, %349 in 0 : vector<16x128xf32>, vector<16x128xf32> -> vector<32x128xf32>
    %c3_i32 = arith.constant 3 : i32
    %c7_i32_131 = arith.constant 7 : i32
    %361 = arith.subi %c7_i32_131, %c3_i32 : i32
    %362 = arith.truncf %360 : vector<32x128xf32> to vector<32x128xbf16>
    %cst_132 = arith.constant dense<0.000000e+00> : vector<96x128xf32>
    %363 = tpu.matmul %1, %362, %cst_132 {dimension_numbers = #tpu.dot_dimension_numbers<[1], [0], [0], [1], [0, 0, 1, 1], [], []>} : vector<96x32xbf16>, vector<32x128xbf16>, vector<96x128xf32> -> vector<96x128xf32>
    %364 = arith.index_cast %c3_i32 : i32 to index
    %c0_133 = arith.constant 0 : index
    %c0_134 = arith.constant 0 : index
    %365 = vector.load %arg13[%364, %c0_133, %c0_134] : memref<8x48x128xf32, #tpu.memory_space<vmem>>, vector<1x48x128xf32>
    %366 = vector.shape_cast %365 : vector<1x48x128xf32> to vector<48x128xf32>
    %367 = arith.index_cast %361 : i32 to index
    %c0_135 = arith.constant 0 : index
    %c0_136 = arith.constant 0 : index
    %368 = vector.load %arg14[%367, %c0_135, %c0_136] : memref<8x48x128xf32, #tpu.memory_space<vmem>>, vector<1x48x128xf32>
    %369 = vector.shape_cast %368 : vector<1x48x128xf32> to vector<48x128xf32>
    %370 = vector.extract_strided_slice %360 {offsets = [0, 0], sizes = [16, 128], strides = [1, 1]} : vector<32x128xf32> to vector<16x128xf32>
    %371 = vector.extract_strided_slice %360 {offsets = [16, 0], sizes = [16, 128], strides = [1, 1]} : vector<32x128xf32> to vector<16x128xf32>
    %372 = vector.extract_strided_slice %366 {offsets = [0, 0], sizes = [16, 128], strides = [1, 1]} : vector<48x128xf32> to vector<16x128xf32>
    %373 = vector.extract_strided_slice %363 {offsets = [0, 0], sizes = [16, 128], strides = [1, 1]} : vector<96x128xf32> to vector<16x128xf32>
    %374 = arith.addf %372, %373 : vector<16x128xf32>
    %375 = arith.negf %374 : vector<16x128xf32>
    %376 = math.exp %375 : vector<16x128xf32>
    %cst_137 = arith.constant 1.000000e+00 : f32
    %377 = vector.broadcast %cst_137 : f32 to vector<16x128xf32>
    %378 = arith.addf %377, %376 : vector<16x128xf32>
    %379 = arith.divf %377, %378 : vector<16x128xf32>
    %380 = vector.extract_strided_slice %366 {offsets = [16, 0], sizes = [16, 128], strides = [1, 1]} : vector<48x128xf32> to vector<16x128xf32>
    %381 = vector.extract_strided_slice %363 {offsets = [16, 0], sizes = [16, 128], strides = [1, 1]} : vector<96x128xf32> to vector<16x128xf32>
    %382 = arith.addf %380, %381 : vector<16x128xf32>
    %383 = arith.negf %382 : vector<16x128xf32>
    %384 = math.exp %383 : vector<16x128xf32>
    %cst_138 = arith.constant 1.000000e+00 : f32
    %385 = vector.broadcast %cst_138 : f32 to vector<16x128xf32>
    %386 = arith.addf %385, %384 : vector<16x128xf32>
    %387 = arith.divf %385, %386 : vector<16x128xf32>
    %388 = vector.extract_strided_slice %366 {offsets = [32, 0], sizes = [16, 128], strides = [1, 1]} : vector<48x128xf32> to vector<16x128xf32>
    %389 = vector.extract_strided_slice %363 {offsets = [32, 0], sizes = [16, 128], strides = [1, 1]} : vector<96x128xf32> to vector<16x128xf32>
    %390 = vector.broadcast %4 : vector<16x1xf32> to vector<16x128xf32>
    %391 = arith.addf %389, %390 : vector<16x128xf32>
    %392 = arith.mulf %379, %391 : vector<16x128xf32>
    %393 = arith.addf %388, %392 : vector<16x128xf32>
    %394 = math.tanh %393 : vector<16x128xf32>
    %cst_139 = arith.constant 1.000000e+00 : f32
    %395 = vector.broadcast %cst_139 : f32 to vector<16x128xf32>
    %396 = arith.subf %395, %387 : vector<16x128xf32>
    %397 = arith.mulf %396, %394 : vector<16x128xf32>
    %398 = arith.mulf %387, %370 : vector<16x128xf32>
    %399 = arith.addf %397, %398 : vector<16x128xf32>
    %400 = vector.extract_strided_slice %369 {offsets = [0, 0], sizes = [16, 128], strides = [1, 1]} : vector<48x128xf32> to vector<16x128xf32>
    %401 = vector.extract_strided_slice %363 {offsets = [48, 0], sizes = [16, 128], strides = [1, 1]} : vector<96x128xf32> to vector<16x128xf32>
    %402 = arith.addf %400, %401 : vector<16x128xf32>
    %403 = arith.negf %402 : vector<16x128xf32>
    %404 = math.exp %403 : vector<16x128xf32>
    %cst_140 = arith.constant 1.000000e+00 : f32
    %405 = vector.broadcast %cst_140 : f32 to vector<16x128xf32>
    %406 = arith.addf %405, %404 : vector<16x128xf32>
    %407 = arith.divf %405, %406 : vector<16x128xf32>
    %408 = vector.extract_strided_slice %369 {offsets = [16, 0], sizes = [16, 128], strides = [1, 1]} : vector<48x128xf32> to vector<16x128xf32>
    %409 = vector.extract_strided_slice %363 {offsets = [64, 0], sizes = [16, 128], strides = [1, 1]} : vector<96x128xf32> to vector<16x128xf32>
    %410 = arith.addf %408, %409 : vector<16x128xf32>
    %411 = arith.negf %410 : vector<16x128xf32>
    %412 = math.exp %411 : vector<16x128xf32>
    %cst_141 = arith.constant 1.000000e+00 : f32
    %413 = vector.broadcast %cst_141 : f32 to vector<16x128xf32>
    %414 = arith.addf %413, %412 : vector<16x128xf32>
    %415 = arith.divf %413, %414 : vector<16x128xf32>
    %416 = vector.extract_strided_slice %369 {offsets = [32, 0], sizes = [16, 128], strides = [1, 1]} : vector<48x128xf32> to vector<16x128xf32>
    %417 = vector.extract_strided_slice %363 {offsets = [80, 0], sizes = [16, 128], strides = [1, 1]} : vector<96x128xf32> to vector<16x128xf32>
    %418 = vector.broadcast %5 : vector<16x1xf32> to vector<16x128xf32>
    %419 = arith.addf %417, %418 : vector<16x128xf32>
    %420 = arith.mulf %407, %419 : vector<16x128xf32>
    %421 = arith.addf %416, %420 : vector<16x128xf32>
    %422 = math.tanh %421 : vector<16x128xf32>
    %cst_142 = arith.constant 1.000000e+00 : f32
    %423 = vector.broadcast %cst_142 : f32 to vector<16x128xf32>
    %424 = arith.subf %423, %415 : vector<16x128xf32>
    %425 = arith.mulf %424, %422 : vector<16x128xf32>
    %426 = arith.mulf %415, %371 : vector<16x128xf32>
    %427 = arith.addf %425, %426 : vector<16x128xf32>
    %428 = arith.truncf %399 : vector<16x128xf32> to vector<16x128xbf16>
    %429 = arith.index_cast %c3_i32 : i32 to index
    %c0_143 = arith.constant 0 : index
    %c0_144 = arith.constant 0 : index
    %430 = vector.load %arg15[%429, %c0_143, %c0_144] : memref<8x16x128xbf16, #tpu.memory_space<vmem>>, vector<1x16x128xbf16>
    %431 = vector.shape_cast %430 : vector<1x16x128xbf16> to vector<16x128xbf16>
    %432 = vector.shape_cast %428 : vector<16x128xbf16> to vector<1x16x128xbf16>
    tpu.vector_store %arg15[%429, %c0_143, %c0_144], %432 {strides = array<i32>} : memref<8x16x128xbf16, #tpu.memory_space<vmem>>, vector<1x16x128xbf16>,
    %433 = arith.truncf %427 : vector<16x128xf32> to vector<16x128xbf16>
    %434 = arith.index_cast %361 : i32 to index
    %c0_145 = arith.constant 0 : index
    %c0_146 = arith.constant 0 : index
    %435 = vector.load %arg16[%434, %c0_145, %c0_146] : memref<8x16x128xbf16, #tpu.memory_space<vmem>>, vector<1x16x128xbf16>
    %436 = vector.shape_cast %435 : vector<1x16x128xbf16> to vector<16x128xbf16>
    %437 = vector.shape_cast %433 : vector<16x128xbf16> to vector<1x16x128xbf16>
    tpu.vector_store %arg16[%434, %c0_145, %c0_146], %437 {strides = array<i32>} : memref<8x16x128xbf16, #tpu.memory_space<vmem>>, vector<1x16x128xbf16>,
    %438 = tpu.concatenate %399, %427 in 0 : vector<16x128xf32>, vector<16x128xf32> -> vector<32x128xf32>
    %c4_i32 = arith.constant 4 : i32
    %c7_i32_147 = arith.constant 7 : i32
    %439 = arith.subi %c7_i32_147, %c4_i32 : i32
    %440 = arith.truncf %438 : vector<32x128xf32> to vector<32x128xbf16>
    %cst_148 = arith.constant dense<0.000000e+00> : vector<96x128xf32>
    %441 = tpu.matmul %1, %440, %cst_148 {dimension_numbers = #tpu.dot_dimension_numbers<[1], [0], [0], [1], [0, 0, 1, 1], [], []>} : vector<96x32xbf16>, vector<32x128xbf16>, vector<96x128xf32> -> vector<96x128xf32>
    %442 = arith.index_cast %c4_i32 : i32 to index
    %c0_149 = arith.constant 0 : index
    %c0_150 = arith.constant 0 : index
    %443 = vector.load %arg13[%442, %c0_149, %c0_150] : memref<8x48x128xf32, #tpu.memory_space<vmem>>, vector<1x48x128xf32>
    %444 = vector.shape_cast %443 : vector<1x48x128xf32> to vector<48x128xf32>
    %445 = arith.index_cast %439 : i32 to index
    %c0_151 = arith.constant 0 : index
    %c0_152 = arith.constant 0 : index
    %446 = vector.load %arg14[%445, %c0_151, %c0_152] : memref<8x48x128xf32, #tpu.memory_space<vmem>>, vector<1x48x128xf32>
    %447 = vector.shape_cast %446 : vector<1x48x128xf32> to vector<48x128xf32>
    %448 = vector.extract_strided_slice %438 {offsets = [0, 0], sizes = [16, 128], strides = [1, 1]} : vector<32x128xf32> to vector<16x128xf32>
    %449 = vector.extract_strided_slice %438 {offsets = [16, 0], sizes = [16, 128], strides = [1, 1]} : vector<32x128xf32> to vector<16x128xf32>
    %450 = vector.extract_strided_slice %444 {offsets = [0, 0], sizes = [16, 128], strides = [1, 1]} : vector<48x128xf32> to vector<16x128xf32>
    %451 = vector.extract_strided_slice %441 {offsets = [0, 0], sizes = [16, 128], strides = [1, 1]} : vector<96x128xf32> to vector<16x128xf32>
    %452 = arith.addf %450, %451 : vector<16x128xf32>
    %453 = arith.negf %452 : vector<16x128xf32>
    %454 = math.exp %453 : vector<16x128xf32>
    %cst_153 = arith.constant 1.000000e+00 : f32
    %455 = vector.broadcast %cst_153 : f32 to vector<16x128xf32>
    %456 = arith.addf %455, %454 : vector<16x128xf32>
    %457 = arith.divf %455, %456 : vector<16x128xf32>
    %458 = vector.extract_strided_slice %444 {offsets = [16, 0], sizes = [16, 128], strides = [1, 1]} : vector<48x128xf32> to vector<16x128xf32>
    %459 = vector.extract_strided_slice %441 {offsets = [16, 0], sizes = [16, 128], strides = [1, 1]} : vector<96x128xf32> to vector<16x128xf32>
    %460 = arith.addf %458, %459 : vector<16x128xf32>
    %461 = arith.negf %460 : vector<16x128xf32>
    %462 = math.exp %461 : vector<16x128xf32>
    %cst_154 = arith.constant 1.000000e+00 : f32
    %463 = vector.broadcast %cst_154 : f32 to vector<16x128xf32>
    %464 = arith.addf %463, %462 : vector<16x128xf32>
    %465 = arith.divf %463, %464 : vector<16x128xf32>
    %466 = vector.extract_strided_slice %444 {offsets = [32, 0], sizes = [16, 128], strides = [1, 1]} : vector<48x128xf32> to vector<16x128xf32>
    %467 = vector.extract_strided_slice %441 {offsets = [32, 0], sizes = [16, 128], strides = [1, 1]} : vector<96x128xf32> to vector<16x128xf32>
    %468 = vector.broadcast %4 : vector<16x1xf32> to vector<16x128xf32>
    %469 = arith.addf %467, %468 : vector<16x128xf32>
    %470 = arith.mulf %457, %469 : vector<16x128xf32>
    %471 = arith.addf %466, %470 : vector<16x128xf32>
    %472 = math.tanh %471 : vector<16x128xf32>
    %cst_155 = arith.constant 1.000000e+00 : f32
    %473 = vector.broadcast %cst_155 : f32 to vector<16x128xf32>
    %474 = arith.subf %473, %465 : vector<16x128xf32>
    %475 = arith.mulf %474, %472 : vector<16x128xf32>
    %476 = arith.mulf %465, %448 : vector<16x128xf32>
    %477 = arith.addf %475, %476 : vector<16x128xf32>
    %478 = vector.extract_strided_slice %447 {offsets = [0, 0], sizes = [16, 128], strides = [1, 1]} : vector<48x128xf32> to vector<16x128xf32>
    %479 = vector.extract_strided_slice %441 {offsets = [48, 0], sizes = [16, 128], strides = [1, 1]} : vector<96x128xf32> to vector<16x128xf32>
    %480 = arith.addf %478, %479 : vector<16x128xf32>
    %481 = arith.negf %480 : vector<16x128xf32>
    %482 = math.exp %481 : vector<16x128xf32>
    %cst_156 = arith.constant 1.000000e+00 : f32
    %483 = vector.broadcast %cst_156 : f32 to vector<16x128xf32>
    %484 = arith.addf %483, %482 : vector<16x128xf32>
    %485 = arith.divf %483, %484 : vector<16x128xf32>
    %486 = vector.extract_strided_slice %447 {offsets = [16, 0], sizes = [16, 128], strides = [1, 1]} : vector<48x128xf32> to vector<16x128xf32>
    %487 = vector.extract_strided_slice %441 {offsets = [64, 0], sizes = [16, 128], strides = [1, 1]} : vector<96x128xf32> to vector<16x128xf32>
    %488 = arith.addf %486, %487 : vector<16x128xf32>
    %489 = arith.negf %488 : vector<16x128xf32>
    %490 = math.exp %489 : vector<16x128xf32>
    %cst_157 = arith.constant 1.000000e+00 : f32
    %491 = vector.broadcast %cst_157 : f32 to vector<16x128xf32>
    %492 = arith.addf %491, %490 : vector<16x128xf32>
    %493 = arith.divf %491, %492 : vector<16x128xf32>
    %494 = vector.extract_strided_slice %447 {offsets = [32, 0], sizes = [16, 128], strides = [1, 1]} : vector<48x128xf32> to vector<16x128xf32>
    %495 = vector.extract_strided_slice %441 {offsets = [80, 0], sizes = [16, 128], strides = [1, 1]} : vector<96x128xf32> to vector<16x128xf32>
    %496 = vector.broadcast %5 : vector<16x1xf32> to vector<16x128xf32>
    %497 = arith.addf %495, %496 : vector<16x128xf32>
    %498 = arith.mulf %485, %497 : vector<16x128xf32>
    %499 = arith.addf %494, %498 : vector<16x128xf32>
    %500 = math.tanh %499 : vector<16x128xf32>
    %cst_158 = arith.constant 1.000000e+00 : f32
    %501 = vector.broadcast %cst_158 : f32 to vector<16x128xf32>
    %502 = arith.subf %501, %493 : vector<16x128xf32>
    %503 = arith.mulf %502, %500 : vector<16x128xf32>
    %504 = arith.mulf %493, %449 : vector<16x128xf32>
    %505 = arith.addf %503, %504 : vector<16x128xf32>
    %506 = arith.truncf %477 : vector<16x128xf32> to vector<16x128xbf16>
    %507 = arith.index_cast %c4_i32 : i32 to index
    %c0_159 = arith.constant 0 : index
    %c0_160 = arith.constant 0 : index
    %508 = vector.load %arg15[%507, %c0_159, %c0_160] : memref<8x16x128xbf16, #tpu.memory_space<vmem>>, vector<1x16x128xbf16>
    %509 = vector.shape_cast %508 : vector<1x16x128xbf16> to vector<16x128xbf16>
    %510 = vector.shape_cast %506 : vector<16x128xbf16> to vector<1x16x128xbf16>
    tpu.vector_store %arg15[%507, %c0_159, %c0_160], %510 {strides = array<i32>} : memref<8x16x128xbf16, #tpu.memory_space<vmem>>, vector<1x16x128xbf16>,
    %511 = arith.truncf %505 : vector<16x128xf32> to vector<16x128xbf16>
    %512 = arith.index_cast %439 : i32 to index
    %c0_161 = arith.constant 0 : index
    %c0_162 = arith.constant 0 : index
    %513 = vector.load %arg16[%512, %c0_161, %c0_162] : memref<8x16x128xbf16, #tpu.memory_space<vmem>>, vector<1x16x128xbf16>
    %514 = vector.shape_cast %513 : vector<1x16x128xbf16> to vector<16x128xbf16>
    %515 = vector.shape_cast %511 : vector<16x128xbf16> to vector<1x16x128xbf16>
    tpu.vector_store %arg16[%512, %c0_161, %c0_162], %515 {strides = array<i32>} : memref<8x16x128xbf16, #tpu.memory_space<vmem>>, vector<1x16x128xbf16>,
    %516 = tpu.concatenate %477, %505 in 0 : vector<16x128xf32>, vector<16x128xf32> -> vector<32x128xf32>
    %c5_i32 = arith.constant 5 : i32
    %c7_i32_163 = arith.constant 7 : i32
    %517 = arith.subi %c7_i32_163, %c5_i32 : i32
    %518 = arith.truncf %516 : vector<32x128xf32> to vector<32x128xbf16>
    %cst_164 = arith.constant dense<0.000000e+00> : vector<96x128xf32>
    %519 = tpu.matmul %1, %518, %cst_164 {dimension_numbers = #tpu.dot_dimension_numbers<[1], [0], [0], [1], [0, 0, 1, 1], [], []>} : vector<96x32xbf16>, vector<32x128xbf16>, vector<96x128xf32> -> vector<96x128xf32>
    %520 = arith.index_cast %c5_i32 : i32 to index
    %c0_165 = arith.constant 0 : index
    %c0_166 = arith.constant 0 : index
    %521 = vector.load %arg13[%520, %c0_165, %c0_166] : memref<8x48x128xf32, #tpu.memory_space<vmem>>, vector<1x48x128xf32>
    %522 = vector.shape_cast %521 : vector<1x48x128xf32> to vector<48x128xf32>
    %523 = arith.index_cast %517 : i32 to index
    %c0_167 = arith.constant 0 : index
    %c0_168 = arith.constant 0 : index
    %524 = vector.load %arg14[%523, %c0_167, %c0_168] : memref<8x48x128xf32, #tpu.memory_space<vmem>>, vector<1x48x128xf32>
    %525 = vector.shape_cast %524 : vector<1x48x128xf32> to vector<48x128xf32>
    %526 = vector.extract_strided_slice %516 {offsets = [0, 0], sizes = [16, 128], strides = [1, 1]} : vector<32x128xf32> to vector<16x128xf32>
    %527 = vector.extract_strided_slice %516 {offsets = [16, 0], sizes = [16, 128], strides = [1, 1]} : vector<32x128xf32> to vector<16x128xf32>
    %528 = vector.extract_strided_slice %522 {offsets = [0, 0], sizes = [16, 128], strides = [1, 1]} : vector<48x128xf32> to vector<16x128xf32>
    %529 = vector.extract_strided_slice %519 {offsets = [0, 0], sizes = [16, 128], strides = [1, 1]} : vector<96x128xf32> to vector<16x128xf32>
    %530 = arith.addf %528, %529 : vector<16x128xf32>
    %531 = arith.negf %530 : vector<16x128xf32>
    %532 = math.exp %531 : vector<16x128xf32>
    %cst_169 = arith.constant 1.000000e+00 : f32
    %533 = vector.broadcast %cst_169 : f32 to vector<16x128xf32>
    %534 = arith.addf %533, %532 : vector<16x128xf32>
    %535 = arith.divf %533, %534 : vector<16x128xf32>
    %536 = vector.extract_strided_slice %522 {offsets = [16, 0], sizes = [16, 128], strides = [1, 1]} : vector<48x128xf32> to vector<16x128xf32>
    %537 = vector.extract_strided_slice %519 {offsets = [16, 0], sizes = [16, 128], strides = [1, 1]} : vector<96x128xf32> to vector<16x128xf32>
    %538 = arith.addf %536, %537 : vector<16x128xf32>
    %539 = arith.negf %538 : vector<16x128xf32>
    %540 = math.exp %539 : vector<16x128xf32>
    %cst_170 = arith.constant 1.000000e+00 : f32
    %541 = vector.broadcast %cst_170 : f32 to vector<16x128xf32>
    %542 = arith.addf %541, %540 : vector<16x128xf32>
    %543 = arith.divf %541, %542 : vector<16x128xf32>
    %544 = vector.extract_strided_slice %522 {offsets = [32, 0], sizes = [16, 128], strides = [1, 1]} : vector<48x128xf32> to vector<16x128xf32>
    %545 = vector.extract_strided_slice %519 {offsets = [32, 0], sizes = [16, 128], strides = [1, 1]} : vector<96x128xf32> to vector<16x128xf32>
    %546 = vector.broadcast %4 : vector<16x1xf32> to vector<16x128xf32>
    %547 = arith.addf %545, %546 : vector<16x128xf32>
    %548 = arith.mulf %535, %547 : vector<16x128xf32>
    %549 = arith.addf %544, %548 : vector<16x128xf32>
    %550 = math.tanh %549 : vector<16x128xf32>
    %cst_171 = arith.constant 1.000000e+00 : f32
    %551 = vector.broadcast %cst_171 : f32 to vector<16x128xf32>
    %552 = arith.subf %551, %543 : vector<16x128xf32>
    %553 = arith.mulf %552, %550 : vector<16x128xf32>
    %554 = arith.mulf %543, %526 : vector<16x128xf32>
    %555 = arith.addf %553, %554 : vector<16x128xf32>
    %556 = vector.extract_strided_slice %525 {offsets = [0, 0], sizes = [16, 128], strides = [1, 1]} : vector<48x128xf32> to vector<16x128xf32>
    %557 = vector.extract_strided_slice %519 {offsets = [48, 0], sizes = [16, 128], strides = [1, 1]} : vector<96x128xf32> to vector<16x128xf32>
    %558 = arith.addf %556, %557 : vector<16x128xf32>
    %559 = arith.negf %558 : vector<16x128xf32>
    %560 = math.exp %559 : vector<16x128xf32>
    %cst_172 = arith.constant 1.000000e+00 : f32
    %561 = vector.broadcast %cst_172 : f32 to vector<16x128xf32>
    %562 = arith.addf %561, %560 : vector<16x128xf32>
    %563 = arith.divf %561, %562 : vector<16x128xf32>
    %564 = vector.extract_strided_slice %525 {offsets = [16, 0], sizes = [16, 128], strides = [1, 1]} : vector<48x128xf32> to vector<16x128xf32>
    %565 = vector.extract_strided_slice %519 {offsets = [64, 0], sizes = [16, 128], strides = [1, 1]} : vector<96x128xf32> to vector<16x128xf32>
    %566 = arith.addf %564, %565 : vector<16x128xf32>
    %567 = arith.negf %566 : vector<16x128xf32>
    %568 = math.exp %567 : vector<16x128xf32>
    %cst_173 = arith.constant 1.000000e+00 : f32
    %569 = vector.broadcast %cst_173 : f32 to vector<16x128xf32>
    %570 = arith.addf %569, %568 : vector<16x128xf32>
    %571 = arith.divf %569, %570 : vector<16x128xf32>
    %572 = vector.extract_strided_slice %525 {offsets = [32, 0], sizes = [16, 128], strides = [1, 1]} : vector<48x128xf32> to vector<16x128xf32>
    %573 = vector.extract_strided_slice %519 {offsets = [80, 0], sizes = [16, 128], strides = [1, 1]} : vector<96x128xf32> to vector<16x128xf32>
    %574 = vector.broadcast %5 : vector<16x1xf32> to vector<16x128xf32>
    %575 = arith.addf %573, %574 : vector<16x128xf32>
    %576 = arith.mulf %563, %575 : vector<16x128xf32>
    %577 = arith.addf %572, %576 : vector<16x128xf32>
    %578 = math.tanh %577 : vector<16x128xf32>
    %cst_174 = arith.constant 1.000000e+00 : f32
    %579 = vector.broadcast %cst_174 : f32 to vector<16x128xf32>
    %580 = arith.subf %579, %571 : vector<16x128xf32>
    %581 = arith.mulf %580, %578 : vector<16x128xf32>
    %582 = arith.mulf %571, %527 : vector<16x128xf32>
    %583 = arith.addf %581, %582 : vector<16x128xf32>
    %584 = arith.truncf %555 : vector<16x128xf32> to vector<16x128xbf16>
    %585 = arith.index_cast %c5_i32 : i32 to index
    %c0_175 = arith.constant 0 : index
    %c0_176 = arith.constant 0 : index
    %586 = vector.load %arg15[%585, %c0_175, %c0_176] : memref<8x16x128xbf16, #tpu.memory_space<vmem>>, vector<1x16x128xbf16>
    %587 = vector.shape_cast %586 : vector<1x16x128xbf16> to vector<16x128xbf16>
    %588 = vector.shape_cast %584 : vector<16x128xbf16> to vector<1x16x128xbf16>
    tpu.vector_store %arg15[%585, %c0_175, %c0_176], %588 {strides = array<i32>} : memref<8x16x128xbf16, #tpu.memory_space<vmem>>, vector<1x16x128xbf16>,
    %589 = arith.truncf %583 : vector<16x128xf32> to vector<16x128xbf16>
    %590 = arith.index_cast %517 : i32 to index
    %c0_177 = arith.constant 0 : index
    %c0_178 = arith.constant 0 : index
    %591 = vector.load %arg16[%590, %c0_177, %c0_178] : memref<8x16x128xbf16, #tpu.memory_space<vmem>>, vector<1x16x128xbf16>
    %592 = vector.shape_cast %591 : vector<1x16x128xbf16> to vector<16x128xbf16>
    %593 = vector.shape_cast %589 : vector<16x128xbf16> to vector<1x16x128xbf16>
    tpu.vector_store %arg16[%590, %c0_177, %c0_178], %593 {strides = array<i32>} : memref<8x16x128xbf16, #tpu.memory_space<vmem>>, vector<1x16x128xbf16>,
    %594 = tpu.concatenate %555, %583 in 0 : vector<16x128xf32>, vector<16x128xf32> -> vector<32x128xf32>
    %c6_i32 = arith.constant 6 : i32
    %c7_i32_179 = arith.constant 7 : i32
    %595 = arith.subi %c7_i32_179, %c6_i32 : i32
    %596 = arith.truncf %594 : vector<32x128xf32> to vector<32x128xbf16>
    %cst_180 = arith.constant dense<0.000000e+00> : vector<96x128xf32>
    %597 = tpu.matmul %1, %596, %cst_180 {dimension_numbers = #tpu.dot_dimension_numbers<[1], [0], [0], [1], [0, 0, 1, 1], [], []>} : vector<96x32xbf16>, vector<32x128xbf16>, vector<96x128xf32> -> vector<96x128xf32>
    %598 = arith.index_cast %c6_i32 : i32 to index
    %c0_181 = arith.constant 0 : index
    %c0_182 = arith.constant 0 : index
    %599 = vector.load %arg13[%598, %c0_181, %c0_182] : memref<8x48x128xf32, #tpu.memory_space<vmem>>, vector<1x48x128xf32>
    %600 = vector.shape_cast %599 : vector<1x48x128xf32> to vector<48x128xf32>
    %601 = arith.index_cast %595 : i32 to index
    %c0_183 = arith.constant 0 : index
    %c0_184 = arith.constant 0 : index
    %602 = vector.load %arg14[%601, %c0_183, %c0_184] : memref<8x48x128xf32, #tpu.memory_space<vmem>>, vector<1x48x128xf32>
    %603 = vector.shape_cast %602 : vector<1x48x128xf32> to vector<48x128xf32>
    %604 = vector.extract_strided_slice %594 {offsets = [0, 0], sizes = [16, 128], strides = [1, 1]} : vector<32x128xf32> to vector<16x128xf32>
    %605 = vector.extract_strided_slice %594 {offsets = [16, 0], sizes = [16, 128], strides = [1, 1]} : vector<32x128xf32> to vector<16x128xf32>
    %606 = vector.extract_strided_slice %600 {offsets = [0, 0], sizes = [16, 128], strides = [1, 1]} : vector<48x128xf32> to vector<16x128xf32>
    %607 = vector.extract_strided_slice %597 {offsets = [0, 0], sizes = [16, 128], strides = [1, 1]} : vector<96x128xf32> to vector<16x128xf32>
    %608 = arith.addf %606, %607 : vector<16x128xf32>
    %609 = arith.negf %608 : vector<16x128xf32>
    %610 = math.exp %609 : vector<16x128xf32>
    %cst_185 = arith.constant 1.000000e+00 : f32
    %611 = vector.broadcast %cst_185 : f32 to vector<16x128xf32>
    %612 = arith.addf %611, %610 : vector<16x128xf32>
    %613 = arith.divf %611, %612 : vector<16x128xf32>
    %614 = vector.extract_strided_slice %600 {offsets = [16, 0], sizes = [16, 128], strides = [1, 1]} : vector<48x128xf32> to vector<16x128xf32>
    %615 = vector.extract_strided_slice %597 {offsets = [16, 0], sizes = [16, 128], strides = [1, 1]} : vector<96x128xf32> to vector<16x128xf32>
    %616 = arith.addf %614, %615 : vector<16x128xf32>
    %617 = arith.negf %616 : vector<16x128xf32>
    %618 = math.exp %617 : vector<16x128xf32>
    %cst_186 = arith.constant 1.000000e+00 : f32
    %619 = vector.broadcast %cst_186 : f32 to vector<16x128xf32>
    %620 = arith.addf %619, %618 : vector<16x128xf32>
    %621 = arith.divf %619, %620 : vector<16x128xf32>
    %622 = vector.extract_strided_slice %600 {offsets = [32, 0], sizes = [16, 128], strides = [1, 1]} : vector<48x128xf32> to vector<16x128xf32>
    %623 = vector.extract_strided_slice %597 {offsets = [32, 0], sizes = [16, 128], strides = [1, 1]} : vector<96x128xf32> to vector<16x128xf32>
    %624 = vector.broadcast %4 : vector<16x1xf32> to vector<16x128xf32>
    %625 = arith.addf %623, %624 : vector<16x128xf32>
    %626 = arith.mulf %613, %625 : vector<16x128xf32>
    %627 = arith.addf %622, %626 : vector<16x128xf32>
    %628 = math.tanh %627 : vector<16x128xf32>
    %cst_187 = arith.constant 1.000000e+00 : f32
    %629 = vector.broadcast %cst_187 : f32 to vector<16x128xf32>
    %630 = arith.subf %629, %621 : vector<16x128xf32>
    %631 = arith.mulf %630, %628 : vector<16x128xf32>
    %632 = arith.mulf %621, %604 : vector<16x128xf32>
    %633 = arith.addf %631, %632 : vector<16x128xf32>
    %634 = vector.extract_strided_slice %603 {offsets = [0, 0], sizes = [16, 128], strides = [1, 1]} : vector<48x128xf32> to vector<16x128xf32>
    %635 = vector.extract_strided_slice %597 {offsets = [48, 0], sizes = [16, 128], strides = [1, 1]} : vector<96x128xf32> to vector<16x128xf32>
    %636 = arith.addf %634, %635 : vector<16x128xf32>
    %637 = arith.negf %636 : vector<16x128xf32>
    %638 = math.exp %637 : vector<16x128xf32>
    %cst_188 = arith.constant 1.000000e+00 : f32
    %639 = vector.broadcast %cst_188 : f32 to vector<16x128xf32>
    %640 = arith.addf %639, %638 : vector<16x128xf32>
    %641 = arith.divf %639, %640 : vector<16x128xf32>
    %642 = vector.extract_strided_slice %603 {offsets = [16, 0], sizes = [16, 128], strides = [1, 1]} : vector<48x128xf32> to vector<16x128xf32>
    %643 = vector.extract_strided_slice %597 {offsets = [64, 0], sizes = [16, 128], strides = [1, 1]} : vector<96x128xf32> to vector<16x128xf32>
    %644 = arith.addf %642, %643 : vector<16x128xf32>
    %645 = arith.negf %644 : vector<16x128xf32>
    %646 = math.exp %645 : vector<16x128xf32>
    %cst_189 = arith.constant 1.000000e+00 : f32
    %647 = vector.broadcast %cst_189 : f32 to vector<16x128xf32>
    %648 = arith.addf %647, %646 : vector<16x128xf32>
    %649 = arith.divf %647, %648 : vector<16x128xf32>
    %650 = vector.extract_strided_slice %603 {offsets = [32, 0], sizes = [16, 128], strides = [1, 1]} : vector<48x128xf32> to vector<16x128xf32>
    %651 = vector.extract_strided_slice %597 {offsets = [80, 0], sizes = [16, 128], strides = [1, 1]} : vector<96x128xf32> to vector<16x128xf32>
    %652 = vector.broadcast %5 : vector<16x1xf32> to vector<16x128xf32>
    %653 = arith.addf %651, %652 : vector<16x128xf32>
    %654 = arith.mulf %641, %653 : vector<16x128xf32>
    %655 = arith.addf %650, %654 : vector<16x128xf32>
    %656 = math.tanh %655 : vector<16x128xf32>
    %cst_190 = arith.constant 1.000000e+00 : f32
    %657 = vector.broadcast %cst_190 : f32 to vector<16x128xf32>
    %658 = arith.subf %657, %649 : vector<16x128xf32>
    %659 = arith.mulf %658, %656 : vector<16x128xf32>
    %660 = arith.mulf %649, %605 : vector<16x128xf32>
    %661 = arith.addf %659, %660 : vector<16x128xf32>
    %662 = arith.truncf %633 : vector<16x128xf32> to vector<16x128xbf16>
    %663 = arith.index_cast %c6_i32 : i32 to index
    %c0_191 = arith.constant 0 : index
    %c0_192 = arith.constant 0 : index
    %664 = vector.load %arg15[%663, %c0_191, %c0_192] : memref<8x16x128xbf16, #tpu.memory_space<vmem>>, vector<1x16x128xbf16>
    %665 = vector.shape_cast %664 : vector<1x16x128xbf16> to vector<16x128xbf16>
    %666 = vector.shape_cast %662 : vector<16x128xbf16> to vector<1x16x128xbf16>
    tpu.vector_store %arg15[%663, %c0_191, %c0_192], %666 {strides = array<i32>} : memref<8x16x128xbf16, #tpu.memory_space<vmem>>, vector<1x16x128xbf16>,
    %667 = arith.truncf %661 : vector<16x128xf32> to vector<16x128xbf16>
    %668 = arith.index_cast %595 : i32 to index
    %c0_193 = arith.constant 0 : index
    %c0_194 = arith.constant 0 : index
    %669 = vector.load %arg16[%668, %c0_193, %c0_194] : memref<8x16x128xbf16, #tpu.memory_space<vmem>>, vector<1x16x128xbf16>
    %670 = vector.shape_cast %669 : vector<1x16x128xbf16> to vector<16x128xbf16>
    %671 = vector.shape_cast %667 : vector<16x128xbf16> to vector<1x16x128xbf16>
    tpu.vector_store %arg16[%668, %c0_193, %c0_194], %671 {strides = array<i32>} : memref<8x16x128xbf16, #tpu.memory_space<vmem>>, vector<1x16x128xbf16>,
    %672 = tpu.concatenate %633, %661 in 0 : vector<16x128xf32>, vector<16x128xf32> -> vector<32x128xf32>
    %c7_i32_195 = arith.constant 7 : i32
    %c7_i32_196 = arith.constant 7 : i32
    %673 = arith.subi %c7_i32_196, %c7_i32_195 : i32
    %674 = arith.truncf %672 : vector<32x128xf32> to vector<32x128xbf16>
    %cst_197 = arith.constant dense<0.000000e+00> : vector<96x128xf32>
    %675 = tpu.matmul %1, %674, %cst_197 {dimension_numbers = #tpu.dot_dimension_numbers<[1], [0], [0], [1], [0, 0, 1, 1], [], []>} : vector<96x32xbf16>, vector<32x128xbf16>, vector<96x128xf32> -> vector<96x128xf32>
    %676 = arith.index_cast %c7_i32_195 : i32 to index
    %c0_198 = arith.constant 0 : index
    %c0_199 = arith.constant 0 : index
    %677 = vector.load %arg13[%676, %c0_198, %c0_199] : memref<8x48x128xf32, #tpu.memory_space<vmem>>, vector<1x48x128xf32>
    %678 = vector.shape_cast %677 : vector<1x48x128xf32> to vector<48x128xf32>
    %679 = arith.index_cast %673 : i32 to index
    %c0_200 = arith.constant 0 : index
    %c0_201 = arith.constant 0 : index
    %680 = vector.load %arg14[%679, %c0_200, %c0_201] : memref<8x48x128xf32, #tpu.memory_space<vmem>>, vector<1x48x128xf32>
    %681 = vector.shape_cast %680 : vector<1x48x128xf32> to vector<48x128xf32>
    %682 = vector.extract_strided_slice %672 {offsets = [0, 0], sizes = [16, 128], strides = [1, 1]} : vector<32x128xf32> to vector<16x128xf32>
    %683 = vector.extract_strided_slice %672 {offsets = [16, 0], sizes = [16, 128], strides = [1, 1]} : vector<32x128xf32> to vector<16x128xf32>
    %684 = vector.extract_strided_slice %678 {offsets = [0, 0], sizes = [16, 128], strides = [1, 1]} : vector<48x128xf32> to vector<16x128xf32>
    %685 = vector.extract_strided_slice %675 {offsets = [0, 0], sizes = [16, 128], strides = [1, 1]} : vector<96x128xf32> to vector<16x128xf32>
    %686 = arith.addf %684, %685 : vector<16x128xf32>
    %687 = arith.negf %686 : vector<16x128xf32>
    %688 = math.exp %687 : vector<16x128xf32>
    %cst_202 = arith.constant 1.000000e+00 : f32
    %689 = vector.broadcast %cst_202 : f32 to vector<16x128xf32>
    %690 = arith.addf %689, %688 : vector<16x128xf32>
    %691 = arith.divf %689, %690 : vector<16x128xf32>
    %692 = vector.extract_strided_slice %678 {offsets = [16, 0], sizes = [16, 128], strides = [1, 1]} : vector<48x128xf32> to vector<16x128xf32>
    %693 = vector.extract_strided_slice %675 {offsets = [16, 0], sizes = [16, 128], strides = [1, 1]} : vector<96x128xf32> to vector<16x128xf32>
    %694 = arith.addf %692, %693 : vector<16x128xf32>
    %695 = arith.negf %694 : vector<16x128xf32>
    %696 = math.exp %695 : vector<16x128xf32>
    %cst_203 = arith.constant 1.000000e+00 : f32
    %697 = vector.broadcast %cst_203 : f32 to vector<16x128xf32>
    %698 = arith.addf %697, %696 : vector<16x128xf32>
    %699 = arith.divf %697, %698 : vector<16x128xf32>
    %700 = vector.extract_strided_slice %678 {offsets = [32, 0], sizes = [16, 128], strides = [1, 1]} : vector<48x128xf32> to vector<16x128xf32>
    %701 = vector.extract_strided_slice %675 {offsets = [32, 0], sizes = [16, 128], strides = [1, 1]} : vector<96x128xf32> to vector<16x128xf32>
    %702 = vector.broadcast %4 : vector<16x1xf32> to vector<16x128xf32>
    %703 = arith.addf %701, %702 : vector<16x128xf32>
    %704 = arith.mulf %691, %703 : vector<16x128xf32>
    %705 = arith.addf %700, %704 : vector<16x128xf32>
    %706 = math.tanh %705 : vector<16x128xf32>
    %cst_204 = arith.constant 1.000000e+00 : f32
    %707 = vector.broadcast %cst_204 : f32 to vector<16x128xf32>
    %708 = arith.subf %707, %699 : vector<16x128xf32>
    %709 = arith.mulf %708, %706 : vector<16x128xf32>
    %710 = arith.mulf %699, %682 : vector<16x128xf32>
    %711 = arith.addf %709, %710 : vector<16x128xf32>
    %712 = vector.extract_strided_slice %681 {offsets = [0, 0], sizes = [16, 128], strides = [1, 1]} : vector<48x128xf32> to vector<16x128xf32>
    %713 = vector.extract_strided_slice %675 {offsets = [48, 0], sizes = [16, 128], strides = [1, 1]} : vector<96x128xf32> to vector<16x128xf32>
    %714 = arith.addf %712, %713 : vector<16x128xf32>
    %715 = arith.negf %714 : vector<16x128xf32>
    %716 = math.exp %715 : vector<16x128xf32>
    %cst_205 = arith.constant 1.000000e+00 : f32
    %717 = vector.broadcast %cst_205 : f32 to vector<16x128xf32>
    %718 = arith.addf %717, %716 : vector<16x128xf32>
    %719 = arith.divf %717, %718 : vector<16x128xf32>
    %720 = vector.extract_strided_slice %681 {offsets = [16, 0], sizes = [16, 128], strides = [1, 1]} : vector<48x128xf32> to vector<16x128xf32>
    %721 = vector.extract_strided_slice %675 {offsets = [64, 0], sizes = [16, 128], strides = [1, 1]} : vector<96x128xf32> to vector<16x128xf32>
    %722 = arith.addf %720, %721 : vector<16x128xf32>
    %723 = arith.negf %722 : vector<16x128xf32>
    %724 = math.exp %723 : vector<16x128xf32>
    %cst_206 = arith.constant 1.000000e+00 : f32
    %725 = vector.broadcast %cst_206 : f32 to vector<16x128xf32>
    %726 = arith.addf %725, %724 : vector<16x128xf32>
    %727 = arith.divf %725, %726 : vector<16x128xf32>
    %728 = vector.extract_strided_slice %681 {offsets = [32, 0], sizes = [16, 128], strides = [1, 1]} : vector<48x128xf32> to vector<16x128xf32>
    %729 = vector.extract_strided_slice %675 {offsets = [80, 0], sizes = [16, 128], strides = [1, 1]} : vector<96x128xf32> to vector<16x128xf32>
    %730 = vector.broadcast %5 : vector<16x1xf32> to vector<16x128xf32>
    %731 = arith.addf %729, %730 : vector<16x128xf32>
    %732 = arith.mulf %719, %731 : vector<16x128xf32>
    %733 = arith.addf %728, %732 : vector<16x128xf32>
    %734 = math.tanh %733 : vector<16x128xf32>
    %cst_207 = arith.constant 1.000000e+00 : f32
    %735 = vector.broadcast %cst_207 : f32 to vector<16x128xf32>
    %736 = arith.subf %735, %727 : vector<16x128xf32>
    %737 = arith.mulf %736, %734 : vector<16x128xf32>
    %738 = arith.mulf %727, %683 : vector<16x128xf32>
    %739 = arith.addf %737, %738 : vector<16x128xf32>
    %740 = arith.truncf %711 : vector<16x128xf32> to vector<16x128xbf16>
    %741 = arith.index_cast %c7_i32_195 : i32 to index
    %c0_208 = arith.constant 0 : index
    %c0_209 = arith.constant 0 : index
    %742 = vector.load %arg15[%741, %c0_208, %c0_209] : memref<8x16x128xbf16, #tpu.memory_space<vmem>>, vector<1x16x128xbf16>
    %743 = vector.shape_cast %742 : vector<1x16x128xbf16> to vector<16x128xbf16>
    %744 = vector.shape_cast %740 : vector<16x128xbf16> to vector<1x16x128xbf16>
    tpu.vector_store %arg15[%741, %c0_208, %c0_209], %744 {strides = array<i32>} : memref<8x16x128xbf16, #tpu.memory_space<vmem>>, vector<1x16x128xbf16>,
    %745 = arith.truncf %739 : vector<16x128xf32> to vector<16x128xbf16>
    %746 = arith.index_cast %673 : i32 to index
    %c0_210 = arith.constant 0 : index
    %c0_211 = arith.constant 0 : index
    %747 = vector.load %arg16[%746, %c0_210, %c0_211] : memref<8x16x128xbf16, #tpu.memory_space<vmem>>, vector<1x16x128xbf16>
    %748 = vector.shape_cast %747 : vector<1x16x128xbf16> to vector<16x128xbf16>
    %749 = vector.shape_cast %745 : vector<16x128xbf16> to vector<1x16x128xbf16>
    tpu.vector_store %arg16[%746, %c0_210, %c0_211], %749 {strides = array<i32>} : memref<8x16x128xbf16, #tpu.memory_space<vmem>>, vector<1x16x128xbf16>,
    %750 = tpu.concatenate %711, %739 in 0 : vector<16x128xf32>, vector<16x128xf32> -> vector<32x128xf32>
    %c8_i32 = arith.constant 8 : i32
    %c0_212 = arith.constant 0 : index
    %c0_213 = arith.constant 0 : index
    %751 = vector.load %arg9[%c0_212, %c0_213] : memref<32x32xbf16, #tpu.memory_space<vmem>>, vector<32x32xbf16>
    %c0_214 = arith.constant 0 : index
    %c0_215 = arith.constant 0 : index
    %752 = vector.load %arg10[%c0_214, %c0_215] : memref<32x1xf32, #tpu.memory_space<vmem>>, vector<32x1xf32>
    %c0_216 = arith.constant 0 : index
    %c0_217 = arith.constant 0 : index
    %753 = vector.load %arg11[%c0_216, %c0_217] : memref<32x1xf32, #tpu.memory_space<vmem>>, vector<32x1xf32>
    %c0_218 = arith.constant 0 : index
    %c0_219 = arith.constant 0 : index
    %c0_220 = arith.constant 0 : index
    %754 = vector.load %arg15[%c0_218, %c0_219, %c0_220] : memref<8x16x128xbf16, #tpu.memory_space<vmem>>, vector<1x16x128xbf16>
    %755 = vector.shape_cast %754 : vector<1x16x128xbf16> to vector<16x128xbf16>
    %c0_221 = arith.constant 0 : index
    %c0_222 = arith.constant 0 : index
    %c0_223 = arith.constant 0 : index
    %756 = vector.load %arg16[%c0_221, %c0_222, %c0_223] : memref<8x16x128xbf16, #tpu.memory_space<vmem>>, vector<1x16x128xbf16>
    %757 = vector.shape_cast %756 : vector<1x16x128xbf16> to vector<16x128xbf16>
    %758 = tpu.concatenate %755, %757 in 0 : vector<16x128xbf16>, vector<16x128xbf16> -> vector<32x128xbf16>
    %cst_224 = arith.constant dense<0.000000e+00> : vector<32x128xf32>
    %759 = tpu.matmul %751, %758, %cst_224 {dimension_numbers = #tpu.dot_dimension_numbers<[1], [0], [0], [1], [0, 0, 1, 1], [], []>} : vector<32x32xbf16>, vector<32x128xbf16>, vector<32x128xf32> -> vector<32x128xf32>
    %760 = vector.broadcast %752 : vector<32x1xf32> to vector<32x128xf32>
    %761 = arith.addf %759, %760 : vector<32x128xf32>
    %762 = math.tanh %761 : vector<32x128xf32>
    %763 = vector.broadcast %753 : vector<32x1xf32> to vector<32x128xf32>
    %764 = arith.mulf %763, %762 : vector<32x128xf32>
    %cst_225 = arith.constant dense<0.000000e+00> : vector<128xf32>
    %765 = vector.multi_reduction <add>, %764, %cst_225 [0] : vector<32x128xf32> to vector<128xf32>
    %766 = vector.shape_cast %765 : vector<128xf32> to vector<1x128xf32>
    %c1_226 = arith.constant 1 : index
    %c0_227 = arith.constant 0 : index
    %c0_228 = arith.constant 0 : index
    %767 = vector.load %arg15[%c1_226, %c0_227, %c0_228] : memref<8x16x128xbf16, #tpu.memory_space<vmem>>, vector<1x16x128xbf16>
    %768 = vector.shape_cast %767 : vector<1x16x128xbf16> to vector<16x128xbf16>
    %c1_229 = arith.constant 1 : index
    %c0_230 = arith.constant 0 : index
    %c0_231 = arith.constant 0 : index
    %769 = vector.load %arg16[%c1_229, %c0_230, %c0_231] : memref<8x16x128xbf16, #tpu.memory_space<vmem>>, vector<1x16x128xbf16>
    %770 = vector.shape_cast %769 : vector<1x16x128xbf16> to vector<16x128xbf16>
    %771 = tpu.concatenate %768, %770 in 0 : vector<16x128xbf16>, vector<16x128xbf16> -> vector<32x128xbf16>
    %cst_232 = arith.constant dense<0.000000e+00> : vector<32x128xf32>
    %772 = tpu.matmul %751, %771, %cst_232 {dimension_numbers = #tpu.dot_dimension_numbers<[1], [0], [0], [1], [0, 0, 1, 1], [], []>} : vector<32x32xbf16>, vector<32x128xbf16>, vector<32x128xf32> -> vector<32x128xf32>
    %773 = vector.broadcast %752 : vector<32x1xf32> to vector<32x128xf32>
    %774 = arith.addf %772, %773 : vector<32x128xf32>
    %775 = math.tanh %774 : vector<32x128xf32>
    %776 = vector.broadcast %753 : vector<32x1xf32> to vector<32x128xf32>
    %777 = arith.mulf %776, %775 : vector<32x128xf32>
    %cst_233 = arith.constant dense<0.000000e+00> : vector<128xf32>
    %778 = vector.multi_reduction <add>, %777, %cst_233 [0] : vector<32x128xf32> to vector<128xf32>
    %779 = vector.shape_cast %778 : vector<128xf32> to vector<1x128xf32>
    %c2_234 = arith.constant 2 : index
    %c0_235 = arith.constant 0 : index
    %c0_236 = arith.constant 0 : index
    %780 = vector.load %arg15[%c2_234, %c0_235, %c0_236] : memref<8x16x128xbf16, #tpu.memory_space<vmem>>, vector<1x16x128xbf16>
    %781 = vector.shape_cast %780 : vector<1x16x128xbf16> to vector<16x128xbf16>
    %c2_237 = arith.constant 2 : index
    %c0_238 = arith.constant 0 : index
    %c0_239 = arith.constant 0 : index
    %782 = vector.load %arg16[%c2_237, %c0_238, %c0_239] : memref<8x16x128xbf16, #tpu.memory_space<vmem>>, vector<1x16x128xbf16>
    %783 = vector.shape_cast %782 : vector<1x16x128xbf16> to vector<16x128xbf16>
    %784 = tpu.concatenate %781, %783 in 0 : vector<16x128xbf16>, vector<16x128xbf16> -> vector<32x128xbf16>
    %cst_240 = arith.constant dense<0.000000e+00> : vector<32x128xf32>
    %785 = tpu.matmul %751, %784, %cst_240 {dimension_numbers = #tpu.dot_dimension_numbers<[1], [0], [0], [1], [0, 0, 1, 1], [], []>} : vector<32x32xbf16>, vector<32x128xbf16>, vector<32x128xf32> -> vector<32x128xf32>
    %786 = vector.broadcast %752 : vector<32x1xf32> to vector<32x128xf32>
    %787 = arith.addf %785, %786 : vector<32x128xf32>
    %788 = math.tanh %787 : vector<32x128xf32>
    %789 = vector.broadcast %753 : vector<32x1xf32> to vector<32x128xf32>
    %790 = arith.mulf %789, %788 : vector<32x128xf32>
    %cst_241 = arith.constant dense<0.000000e+00> : vector<128xf32>
    %791 = vector.multi_reduction <add>, %790, %cst_241 [0] : vector<32x128xf32> to vector<128xf32>
    %792 = vector.shape_cast %791 : vector<128xf32> to vector<1x128xf32>
    %c3_242 = arith.constant 3 : index
    %c0_243 = arith.constant 0 : index
    %c0_244 = arith.constant 0 : index
    %793 = vector.load %arg15[%c3_242, %c0_243, %c0_244] : memref<8x16x128xbf16, #tpu.memory_space<vmem>>, vector<1x16x128xbf16>
    %794 = vector.shape_cast %793 : vector<1x16x128xbf16> to vector<16x128xbf16>
    %c3_245 = arith.constant 3 : index
    %c0_246 = arith.constant 0 : index
    %c0_247 = arith.constant 0 : index
    %795 = vector.load %arg16[%c3_245, %c0_246, %c0_247] : memref<8x16x128xbf16, #tpu.memory_space<vmem>>, vector<1x16x128xbf16>
    %796 = vector.shape_cast %795 : vector<1x16x128xbf16> to vector<16x128xbf16>
    %797 = tpu.concatenate %794, %796 in 0 : vector<16x128xbf16>, vector<16x128xbf16> -> vector<32x128xbf16>
    %cst_248 = arith.constant dense<0.000000e+00> : vector<32x128xf32>
    %798 = tpu.matmul %751, %797, %cst_248 {dimension_numbers = #tpu.dot_dimension_numbers<[1], [0], [0], [1], [0, 0, 1, 1], [], []>} : vector<32x32xbf16>, vector<32x128xbf16>, vector<32x128xf32> -> vector<32x128xf32>
    %799 = vector.broadcast %752 : vector<32x1xf32> to vector<32x128xf32>
    %800 = arith.addf %798, %799 : vector<32x128xf32>
    %801 = math.tanh %800 : vector<32x128xf32>
    %802 = vector.broadcast %753 : vector<32x1xf32> to vector<32x128xf32>
    %803 = arith.mulf %802, %801 : vector<32x128xf32>
    %cst_249 = arith.constant dense<0.000000e+00> : vector<128xf32>
    %804 = vector.multi_reduction <add>, %803, %cst_249 [0] : vector<32x128xf32> to vector<128xf32>
    %805 = vector.shape_cast %804 : vector<128xf32> to vector<1x128xf32>
    %c4_250 = arith.constant 4 : index
    %c0_251 = arith.constant 0 : index
    %c0_252 = arith.constant 0 : index
    %806 = vector.load %arg15[%c4_250, %c0_251, %c0_252] : memref<8x16x128xbf16, #tpu.memory_space<vmem>>, vector<1x16x128xbf16>
    %807 = vector.shape_cast %806 : vector<1x16x128xbf16> to vector<16x128xbf16>
    %c4_253 = arith.constant 4 : index
    %c0_254 = arith.constant 0 : index
    %c0_255 = arith.constant 0 : index
    %808 = vector.load %arg16[%c4_253, %c0_254, %c0_255] : memref<8x16x128xbf16, #tpu.memory_space<vmem>>, vector<1x16x128xbf16>
    %809 = vector.shape_cast %808 : vector<1x16x128xbf16> to vector<16x128xbf16>
    %810 = tpu.concatenate %807, %809 in 0 : vector<16x128xbf16>, vector<16x128xbf16> -> vector<32x128xbf16>
    %cst_256 = arith.constant dense<0.000000e+00> : vector<32x128xf32>
    %811 = tpu.matmul %751, %810, %cst_256 {dimension_numbers = #tpu.dot_dimension_numbers<[1], [0], [0], [1], [0, 0, 1, 1], [], []>} : vector<32x32xbf16>, vector<32x128xbf16>, vector<32x128xf32> -> vector<32x128xf32>
    %812 = vector.broadcast %752 : vector<32x1xf32> to vector<32x128xf32>
    %813 = arith.addf %811, %812 : vector<32x128xf32>
    %814 = math.tanh %813 : vector<32x128xf32>
    %815 = vector.broadcast %753 : vector<32x1xf32> to vector<32x128xf32>
    %816 = arith.mulf %815, %814 : vector<32x128xf32>
    %cst_257 = arith.constant dense<0.000000e+00> : vector<128xf32>
    %817 = vector.multi_reduction <add>, %816, %cst_257 [0] : vector<32x128xf32> to vector<128xf32>
    %818 = vector.shape_cast %817 : vector<128xf32> to vector<1x128xf32>
    %c5_258 = arith.constant 5 : index
    %c0_259 = arith.constant 0 : index
    %c0_260 = arith.constant 0 : index
    %819 = vector.load %arg15[%c5_258, %c0_259, %c0_260] : memref<8x16x128xbf16, #tpu.memory_space<vmem>>, vector<1x16x128xbf16>
    %820 = vector.shape_cast %819 : vector<1x16x128xbf16> to vector<16x128xbf16>
    %c5_261 = arith.constant 5 : index
    %c0_262 = arith.constant 0 : index
    %c0_263 = arith.constant 0 : index
    %821 = vector.load %arg16[%c5_261, %c0_262, %c0_263] : memref<8x16x128xbf16, #tpu.memory_space<vmem>>, vector<1x16x128xbf16>
    %822 = vector.shape_cast %821 : vector<1x16x128xbf16> to vector<16x128xbf16>
    %823 = tpu.concatenate %820, %822 in 0 : vector<16x128xbf16>, vector<16x128xbf16> -> vector<32x128xbf16>
    %cst_264 = arith.constant dense<0.000000e+00> : vector<32x128xf32>
    %824 = tpu.matmul %751, %823, %cst_264 {dimension_numbers = #tpu.dot_dimension_numbers<[1], [0], [0], [1], [0, 0, 1, 1], [], []>} : vector<32x32xbf16>, vector<32x128xbf16>, vector<32x128xf32> -> vector<32x128xf32>
    %825 = vector.broadcast %752 : vector<32x1xf32> to vector<32x128xf32>
    %826 = arith.addf %824, %825 : vector<32x128xf32>
    %827 = math.tanh %826 : vector<32x128xf32>
    %828 = vector.broadcast %753 : vector<32x1xf32> to vector<32x128xf32>
    %829 = arith.mulf %828, %827 : vector<32x128xf32>
    %cst_265 = arith.constant dense<0.000000e+00> : vector<128xf32>
    %830 = vector.multi_reduction <add>, %829, %cst_265 [0] : vector<32x128xf32> to vector<128xf32>
    %831 = vector.shape_cast %830 : vector<128xf32> to vector<1x128xf32>
    %c6_266 = arith.constant 6 : index
    %c0_267 = arith.constant 0 : index
    %c0_268 = arith.constant 0 : index
    %832 = vector.load %arg15[%c6_266, %c0_267, %c0_268] : memref<8x16x128xbf16, #tpu.memory_space<vmem>>, vector<1x16x128xbf16>
    %833 = vector.shape_cast %832 : vector<1x16x128xbf16> to vector<16x128xbf16>
    %c6_269 = arith.constant 6 : index
    %c0_270 = arith.constant 0 : index
    %c0_271 = arith.constant 0 : index
    %834 = vector.load %arg16[%c6_269, %c0_270, %c0_271] : memref<8x16x128xbf16, #tpu.memory_space<vmem>>, vector<1x16x128xbf16>
    %835 = vector.shape_cast %834 : vector<1x16x128xbf16> to vector<16x128xbf16>
    %836 = tpu.concatenate %833, %835 in 0 : vector<16x128xbf16>, vector<16x128xbf16> -> vector<32x128xbf16>
    %cst_272 = arith.constant dense<0.000000e+00> : vector<32x128xf32>
    %837 = tpu.matmul %751, %836, %cst_272 {dimension_numbers = #tpu.dot_dimension_numbers<[1], [0], [0], [1], [0, 0, 1, 1], [], []>} : vector<32x32xbf16>, vector<32x128xbf16>, vector<32x128xf32> -> vector<32x128xf32>
    %838 = vector.broadcast %752 : vector<32x1xf32> to vector<32x128xf32>
    %839 = arith.addf %837, %838 : vector<32x128xf32>
    %840 = math.tanh %839 : vector<32x128xf32>
    %841 = vector.broadcast %753 : vector<32x1xf32> to vector<32x128xf32>
    %842 = arith.mulf %841, %840 : vector<32x128xf32>
    %cst_273 = arith.constant dense<0.000000e+00> : vector<128xf32>
    %843 = vector.multi_reduction <add>, %842, %cst_273 [0] : vector<32x128xf32> to vector<128xf32>
    %844 = vector.shape_cast %843 : vector<128xf32> to vector<1x128xf32>
    %c7_274 = arith.constant 7 : index
    %c0_275 = arith.constant 0 : index
    %c0_276 = arith.constant 0 : index
    %845 = vector.load %arg15[%c7_274, %c0_275, %c0_276] : memref<8x16x128xbf16, #tpu.memory_space<vmem>>, vector<1x16x128xbf16>
    %846 = vector.shape_cast %845 : vector<1x16x128xbf16> to vector<16x128xbf16>
    %c7_277 = arith.constant 7 : index
    %c0_278 = arith.constant 0 : index
    %c0_279 = arith.constant 0 : index
    %847 = vector.load %arg16[%c7_277, %c0_278, %c0_279] : memref<8x16x128xbf16, #tpu.memory_space<vmem>>, vector<1x16x128xbf16>
    %848 = vector.shape_cast %847 : vector<1x16x128xbf16> to vector<16x128xbf16>
    %849 = tpu.concatenate %846, %848 in 0 : vector<16x128xbf16>, vector<16x128xbf16> -> vector<32x128xbf16>
    %cst_280 = arith.constant dense<0.000000e+00> : vector<32x128xf32>
    %850 = tpu.matmul %751, %849, %cst_280 {dimension_numbers = #tpu.dot_dimension_numbers<[1], [0], [0], [1], [0, 0, 1, 1], [], []>} : vector<32x32xbf16>, vector<32x128xbf16>, vector<32x128xf32> -> vector<32x128xf32>
    %851 = vector.broadcast %752 : vector<32x1xf32> to vector<32x128xf32>
    %852 = arith.addf %850, %851 : vector<32x128xf32>
    %853 = math.tanh %852 : vector<32x128xf32>
    %854 = vector.broadcast %753 : vector<32x1xf32> to vector<32x128xf32>
    %855 = arith.mulf %854, %853 : vector<32x128xf32>
    %cst_281 = arith.constant dense<0.000000e+00> : vector<128xf32>
    %856 = vector.multi_reduction <add>, %855, %cst_281 [0] : vector<32x128xf32> to vector<128xf32>
    %857 = vector.shape_cast %856 : vector<128xf32> to vector<1x128xf32>
    %858 = tpu.concatenate %766, %779, %792, %805, %818, %831, %844, %857 in 0 : vector<1x128xf32>, vector<1x128xf32>, vector<1x128xf32>, vector<1x128xf32>, vector<1x128xf32>, vector<1x128xf32>, vector<1x128xf32>, vector<1x128xf32> -> vector<8x128xf32>
    %cst_282 = arith.constant dense<0xFF800000> : vector<128xf32>
    %859 = vector.multi_reduction <maximumf>, %858, %cst_282 [0] : vector<8x128xf32> to vector<128xf32>
    %860 = vector.shape_cast %859 : vector<128xf32> to vector<1x128xf32>
    %861 = vector.broadcast %860 : vector<1x128xf32> to vector<8x128xf32>
    %862 = arith.subf %858, %861 : vector<8x128xf32>
    %863 = math.exp %862 : vector<8x128xf32>
    %cst_283 = arith.constant dense<0.000000e+00> : vector<128xf32>
    %864 = vector.multi_reduction <add>, %863, %cst_283 [0] : vector<8x128xf32> to vector<128xf32>
    %865 = vector.shape_cast %864 : vector<128xf32> to vector<1x128xf32>
    %866 = tpu.reciprocal %865 {approx = true} : vector<1x128xf32> -> vector<1x128xf32>
    %867 = vector.broadcast %866 : vector<1x128xf32> to vector<8x128xf32>
    %868 = arith.mulf %863, %867 : vector<8x128xf32>
    %c0_284 = arith.constant 0 : index
    %c0_285 = arith.constant 0 : index
    %869 = vector.load %arg2[%c0_284, %c0_285] : memref<8x128xf32, #tpu.memory_space<vmem>>, vector<8x128xf32>
    %870 = arith.mulf %868, %869 : vector<8x128xf32>
    %cst_286 = arith.constant dense<0.000000e+00> : vector<128xf32>
    %871 = vector.multi_reduction <add>, %870, %cst_286 [0] : vector<8x128xf32> to vector<128xf32>
    %872 = vector.shape_cast %871 : vector<128xf32> to vector<1x128xf32>
    %cst_287 = arith.constant 9.99999974E-5 : f32
    %873 = vector.broadcast %cst_287 : f32 to vector<1x128xf32>
    %874 = arith.addf %872, %873 : vector<1x128xf32>
    %875 = tpu.reciprocal %874 {approx = true} : vector<1x128xf32> -> vector<1x128xf32>
    %876 = vector.broadcast %875 : vector<1x128xf32> to vector<8x128xf32>
    %877 = arith.mulf %870, %876 : vector<8x128xf32>
    %878 = vector.shape_cast %877 : vector<8x128xf32> to vector<8x1x128xf32>
    %c0_288 = arith.constant 0 : index
    %c0_289 = arith.constant 0 : index
    %c0_290 = arith.constant 0 : index
    %879 = vector.load %arg15[%c0_288, %c0_289, %c0_290] : memref<8x16x128xbf16, #tpu.memory_space<vmem>>, vector<8x16x128xbf16>
    %880 = arith.extf %879 : vector<8x16x128xbf16> to vector<8x16x128xf32>
    %881 = vector.broadcast %878 : vector<8x1x128xf32> to vector<8x16x128xf32>
    %882 = arith.mulf %880, %881 : vector<8x16x128xf32>
    %cst_291 = arith.constant dense<0.000000e+00> : vector<16x128xf32>
    %883 = vector.multi_reduction <add>, %882, %cst_291 [0] : vector<8x16x128xf32> to vector<16x128xf32>
    %c0_292 = arith.constant 0 : index
    %c0_293 = arith.constant 0 : index
    %c0_294 = arith.constant 0 : index
    %884 = vector.load %arg16[%c0_292, %c0_293, %c0_294] : memref<8x16x128xbf16, #tpu.memory_space<vmem>>, vector<8x16x128xbf16>
    %885 = arith.extf %884 : vector<8x16x128xbf16> to vector<8x16x128xf32>
    %886 = vector.broadcast %878 : vector<8x1x128xf32> to vector<8x16x128xf32>
    %887 = arith.mulf %885, %886 : vector<8x16x128xf32>
    %cst_295 = arith.constant dense<0.000000e+00> : vector<16x128xf32>
    %888 = vector.multi_reduction <add>, %887, %cst_295 [0] : vector<8x16x128xf32> to vector<16x128xf32>
    %889 = tpu.concatenate %883, %888 in 0 : vector<16x128xf32>, vector<16x128xf32> -> vector<32x128xf32>
    %c0_296 = arith.constant 0 : index
    %c0_297 = arith.constant 0 : index
    %890 = vector.load %arg12[%c0_296, %c0_297] : memref<32x128xf32, #tpu.memory_space<vmem>>, vector<32x128xf32>
    tpu.vector_store %arg12[%c0_296, %c0_297], %889 {strides = array<i32>} : memref<32x128xf32, #tpu.memory_space<vmem>>, vector<32x128xf32>,
    return
  }
  func.func @transform_0(%arg0: i32) -> (i32, i32, i32) {
    %c0_i32 = arith.constant 0 : i32
    %c0_i32_0 = arith.constant 0 : i32
    %c0_i32_1 = arith.constant 0 : i32
    return %c0_i32, %c0_i32_0, %arg0 : i32, i32, i32
  }
  func.func @transform_1(%arg0: i32) -> (i32, i32) {
    %c0_i32 = arith.constant 0 : i32
    %c0_i32_0 = arith.constant 0 : i32
    return %c0_i32, %arg0 : i32, i32
  }
  func.func @transform_2(%arg0: i32) -> (i32, i32) {
    %c0_i32 = arith.constant 0 : i32
    %c0_i32_0 = arith.constant 0 : i32
    %c0_i32_1 = arith.constant 0 : i32
    return %c0_i32, %c0_i32_0 : i32, i32
  }
  func.func @transform_3(%arg0: i32) -> (i32, i32) {
    %c0_i32 = arith.constant 0 : i32
    %c0_i32_0 = arith.constant 0 : i32
    %c0_i32_1 = arith.constant 0 : i32
    return %c0_i32, %c0_i32_0 : i32, i32
  }
  func.func @transform_4(%arg0: i32) -> (i32, i32) {
    %c0_i32 = arith.constant 0 : i32
    %c0_i32_0 = arith.constant 0 : i32
    %c0_i32_1 = arith.constant 0 : i32
    return %c0_i32, %c0_i32_0 : i32, i32
  }
  func.func @transform_5(%arg0: i32) -> (i32, i32) {
    %c0_i32 = arith.constant 0 : i32
    %c0_i32_0 = arith.constant 0 : i32
    %c0_i32_1 = arith.constant 0 : i32
    return %c0_i32, %c0_i32_0 : i32, i32
  }
  func.func @transform_6(%arg0: i32) -> (i32, i32) {
    %c0_i32 = arith.constant 0 : i32
    %c0_i32_0 = arith.constant 0 : i32
    %c0_i32_1 = arith.constant 0 : i32
    return %c0_i32, %c0_i32_0 : i32, i32
  }
  func.func @transform_7(%arg0: i32) -> (i32, i32) {
    %c0_i32 = arith.constant 0 : i32
    %c0_i32_0 = arith.constant 0 : i32
    %c0_i32_1 = arith.constant 0 : i32
    return %c0_i32, %c0_i32_0 : i32, i32
  }
  func.func @transform_8(%arg0: i32) -> (i32, i32) {
    %c0_i32 = arith.constant 0 : i32
    %c0_i32_0 = arith.constant 0 : i32
    %c0_i32_1 = arith.constant 0 : i32
    return %c0_i32, %c0_i32_0 : i32, i32
  }
  func.func @transform_9(%arg0: i32) -> (i32, i32) {
    %c0_i32 = arith.constant 0 : i32
    %c0_i32_0 = arith.constant 0 : i32
    %c0_i32_1 = arith.constant 0 : i32
    return %c0_i32, %c0_i32_0 : i32, i32
  }
  func.func @transform_10(%arg0: i32) -> (i32, i32) {
    %c0_i32 = arith.constant 0 : i32
    %c0_i32_0 = arith.constant 0 : i32
    %c0_i32_1 = arith.constant 0 : i32
    return %c0_i32, %c0_i32_0 : i32, i32
  }
  func.func @transform_11(%arg0: i32) -> (i32, i32) {
    %c0_i32 = arith.constant 0 : i32
    %c0_i32_0 = arith.constant 0 : i32
    return %c0_i32, %arg0 : i32, i32
  }
}

</mosaic_0001>

<bundles_post_ra>
// kernel: tpu_custom_call.1
= control target key start
LH: loop header
LB: loop body
LE: loop exit
PB: predicated region body
PF: predicated region fallthrough
CT: control target
= control target key end

     0   :  { %vm118_vm0 = vcmask 130048   ;;  %v4727_v3 = vmov 0   ;;  %s5918_s0 = inlined_call_operand.vmem [shape: bf16[8,16,128], index: 0, kind: input, shape index: {}]   ;;  %s5919_s1 = inlined_call_operand.vmem [shape: f32[8,128], index: 1, kind: input, shape index: {}]   ;;  %s5920_s2 = inlined_call_operand.vmem [shape: bf16[96,16], index: 2, kind: input, shape index: {}]   ;;  %s5921_s3 = inlined_call_operand.vmem [shape: bf16[96,32], index: 3, kind: input, shape index: {}]   ;;  %s5922_s4 = inlined_call_operand.vmem [shape: f32[48,1], index: 4, kind: input, shape index: {}]   ;;  %s5923_s5 = inlined_call_operand.vmem [shape: f32[48,1], index: 5, kind: input, shape index: {}]   ;;  %s5924_s6 = inlined_call_operand.vmem [shape: f32[16,1], index: 6, kind: input, shape index: {}]   ;;  %s5925_s7 = inlined_call_operand.vmem [shape: f32[16,1], index: 7, kind: input, shape index: {}]   ;;  %s5926_s8 = inlined_call_operand.vmem [shape: bf16[32,32], index: 8, kind: input, shape index: {}]   ;;  %s5927_s9 = inlined_call_operand.vmem [shape: f32[32,1], index: 9, kind: input, shape index: {}]   ;;  %s5928_s10 = inlined_call_operand.vmem [shape: f32[32,1], index: 10, kind: input, shape index: {}]   ;;  %s5929_s11 = inlined_call_operand.hbm [shape: f32[32,128], index: 11, kind: output, shape index: {}]  }
   0x1   :  { %v4285_v0 = vld [vmem:[%s5918_s0] sm:$0xff]   ;;  %v4803_v2 = vld [vmem:[%s5920_s2 + $0x8] sm:$0xff]   ;;  %4283 = vset.pattern.permute.xlu0 %v4727_v3  ;;  %v4816_v5 = vld [vmem:[%s5920_s2 + $0x10] sm:$0xff]   ;;  %4284 = vset.pattern.permute.xlu1 %v4727_v3 }
   0x2   :  { %v4798_v1 = vld [vmem:[%s5920_s2] sm:$0xff]   ;;  %3912 = vmatprep.subr.bf16.mxu0 %v4285_v0  ;;  %v4288_v4 = vld [vmem:[%s5918_s0 + $0x8] sm:$0xff]   ;;  %v4291_v6 = vld [vmem:[%s5918_s0 + $0x10] sm:$0xff]  }
   0x3   :  { %3913 = vmatpush3.bf16.msra.mxu0 %v4285_v0  ;;  %3914 = vmatprep.mubr.msk.bf16.mxu0 %vm118_vm0, %v4798_v1  ;;  %v4829_v7 = vld [vmem:[%s5920_s2 + $0x18] sm:$0xff]   ;;  %v4836_v8 = vld [vmem:[%s5920_s2 + $0x20] sm:$0xff]   ;;  %v4296_v11 = vld [vmem:[%s5918_s0 + $0x28] sm:$0xff]  }
   0x4   :  { %3928 = vmatprep.mubr.msk.bf16.mxu1 %vm118_vm0, %v4798_v1  ;;  %3926 = vmatprep.subr.bf16.mxu1 %v4288_v4  ;;  %v4294_v9 = vld [vmem:[%s5918_s0 + $0x18] sm:$0xff]   ;;  %v4295_v10 = vld [vmem:[%s5918_s0 + $0x20] sm:$0xff]   ;;  %v65_v14 = vld [vmem:[%s5922_s4 + $0x8] sm:$0xff] }
   0x5   :  { %3927 = vmatpush3.bf16.msra.mxu1 %v4288_v4  ;;  %3940 = vmatprep.subr.bf16.mxu0 %v4291_v6  ;;  %v64_v12 = vld [vmem:[%s5922_s4] sm:$0xff]  ;;  %v71_v15 = vld [vmem:[%s5923_s5 + $0x8] sm:$0xff]  ;;  %v66_v17 = vld [vmem:[%s5922_s4 + $0x10] sm:$0xff] }
   0x6   :  { %3915 = vmatmul.mubr.msk.bf16.vlgmr.msra.gmra.mrb[0].mxu0 %vm118_vm0, %v4803_v2  ;;  %3954 = vmatprep.subr.bf16.mxu1 %v4294_v9  ;;  %v70_v13 = vld [vmem:[%s5923_s5] sm:$0xff]  ;;  %v4870_v16 = vld [vmem:[%s5920_s2 + $0x28] sm:$0xff]   ;;  %v67_v18 = vld [vmem:[%s5922_s4 + $0x18] sm:$0xff] }
   0x7   :  { %3918 = vmatprep.mubr.msk.bf16.mxu0 %vm118_vm0, %v4816_v5  ;;  %3941 = vmatpush3.bf16.msra.mxu0 %v4291_v6  ;;  %v72_v19 = vld [vmem:[%s5923_s5 + $0x10] sm:$0xff]  ;;  %v73_v20 = vld [vmem:[%s5923_s5 + $0x18] sm:$0xff]  ;;  %v76_v22 = vld [vmem:[%s5924_s6] sm:$0xff] }
   0x8   :  { %3929 = vmatmul.mubr.msk.bf16.vlgmr.msra.gmra.mrb[0].mxu1 %vm118_vm0, %v4803_v2  ;;  %3968 = vmatprep.subr.bf16.mxu0 %v4295_v10  ;;  %v4297_v21 = vld [vmem:[%s5918_s0 + $0x30] sm:$0xff]   ;;  %v77_v23 = vld [vmem:[%s5924_s6 + $0x8] sm:$0xff] }
   0x9   :  { %3932 = vmatprep.mubr.msk.bf16.mxu1 %vm118_vm0, %v4816_v5  ;;  %3955 = vmatpush3.bf16.msra.mxu1 %v4294_v9 }
   0xa   :  { %3982 = vmatprep.subr.bf16.mxu1 %v4296_v11  ;;  %220 = vperm.xlu0 %4283, %v64_v12  }
   0xb   :  { %262 = vperm.xlu1 %4284, %v70_v13  }
   0xe   :  { %3919 = vmatmul.mubr.msk.bf16.gmra.mrb[4].mxu0 %vm118_vm0, %v4829_v7  ;;  %225 = vperm.xlu0 %4283, %v65_v14  }
   0xf   :  { %3922 = vmatprep.mubr.msk.bf16.mxu0 %vm118_vm0, %v4836_v8  ;;  %267 = vperm.xlu1 %4284, %v71_v15  }
  0x10   :  { %3933 = vmatmul.mubr.msk.bf16.gmra.mrb[4].mxu1 %vm118_vm0, %v4829_v7 }
  0x11   :  { %3936 = vmatprep.mubr.msk.bf16.mxu1 %vm118_vm0, %v4836_v8 }
  0x12   :  { %230 = vperm.xlu0 %4283, %v66_v17  }
  0x13   :  { %235 = vperm.xlu1 %4284, %v67_v18  }
  0x16   :  { %3923 = vmatmul.mubr.msk.bf16.gmra.mrb[8].mxu0 %vm118_vm0, %v4870_v16  ;;  %272 = vperm.xlu0 %4283, %v72_v19  }
  0x17   :  { %3942 = vmatprep.mubr.msk.bf16.mxu0 %vm118_vm0, %v4798_v1  ;;  %277 = vperm.xlu1 %4284, %v73_v20  }
  0x18   :  { %3937 = vmatmul.mubr.msk.bf16.gmra.mrb[8].mxu1 %vm118_vm0, %v4870_v16 }
  0x19   :  { %3956 = vmatprep.mubr.msk.bf16.mxu1 %vm118_vm0, %v4798_v1 }
  0x1a   :  { %16 = vsyncpa [#allocation7], 0  ;;  %1286 = vperm.xlu0 %4283, %v76_v22   ;;  %v4298_v24 = vld [vmem:[%s5918_s0 + $0x38] sm:$0xff]   ;;  %v68_v25 = vld [vmem:[%s5922_s4 + $0x20] sm:$0xff]  ;;  %vm1144_vm1 = vcmask 261120   ;;  %vm3289_vm2 = vcmask 1040384  }
  0x1b   :  { %1291 = vperm.xlu1 %4284, %v77_v23   ;;  %v69_v26 = vld [vmem:[%s5922_s4 + $0x28] sm:$0xff]  ;;  %v78_v27 = vld [vmem:[%s5925_s7] sm:$0xff]  ;;  %v2683_v33 = vld [vmem:[%s5927_s9 + $0x10] sm:$0xff]  ;;  %vm3291_vm3 = vcmask 1041408   ;;  %vm3293_vm4 = vcmask 1042432   ;;  %vm3295_vm5 = vcmask 1043456  }
  0x1c   :  { %v79_v28 = vld [vmem:[%s5925_s7 + $0x8] sm:$0xff]  ;;  %v74_v29 = vld [vmem:[%s5923_s5 + $0x20] sm:$0xff]  ;;  %v2684_v34 = vld [vmem:[%s5927_s9 + $0x18] sm:$0xff]  ;;  %vm3297_vm6 = vcmask 1044480   ;;  %vm3299_vm7 = vcmask 1045504   ;;  %vm3301_vm8 = vcmask 1046528  }
  0x1d   :  { %v75_v30 = vld [vmem:[%s5923_s5 + $0x28] sm:$0xff]  ;;  %v2681_v31 = vld [vmem:[%s5927_s9] sm:$0xff]  ;;  %v2687_v37 = vld [vmem:[%s5928_s10 + $0x10] sm:$0xff] }
  0x1e   :  { %3943 = vmatmul.mubr.msk.bf16.vlgmr.msra.gmra.mrb[12].mxu0 %vm118_vm0, %v4803_v2  ;;  %240 = vperm.xlu0 %4283, %v68_v25   ;;  %v2682_v32 = vld [vmem:[%s5927_s9 + $0x8] sm:$0xff]  ;;  %v2685_v35 = vld [vmem:[%s5928_s10] sm:$0xff]  ;;  %v2688_v38 = vld [vmem:[%s5928_s10 + $0x18] sm:$0xff] }
  0x1f   :  { %3946 = vmatprep.mubr.msk.bf16.mxu0 %vm118_vm0, %v4816_v5  ;;  %3969 = vmatpush3.bf16.msra.mxu0 %v4295_v10  ;;  %v2686_v36 = vld [vmem:[%s5928_s10 + $0x8] sm:$0xff]  ;;  %v5017_v39 = vld [vmem:[%s5921_s3] sm:$0xff]   ;;  %v5035_v41 = vld [vmem:[%s5921_s3 + $0x10] sm:$0xff]  }
  0x20   :  { %3996 = vmatprep.subr.bf16.mxu0 %v4297_v21  ;;  %3957 = vmatmul.mubr.msk.bf16.vlgmr.msra.gmra.mrb[12].mxu1 %vm118_vm0, %v4803_v2  ;;  %v5028_v40 = vld [vmem:[%s5921_s3 + $0x8] sm:$0xff]   ;;  %v5044_v42 = vld [vmem:[%s5921_s3 + $0x18] sm:$0xff]   ;;  %v5049_v43 = vld [vmem:[%s5921_s3 + $0x20] sm:$0xff]  }
  0x21   :  { %3960 = vmatprep.mubr.msk.bf16.mxu1 %vm118_vm0, %v4816_v5  ;;  %3983 = vmatpush3.bf16.msra.mxu1 %v4296_v11  ;;  %v5058_v44 = vld [vmem:[%s5921_s3 + $0x28] sm:$0xff]  }
  0x22   :  { %4010 = vmatprep.subr.bf16.mxu1 %v4298_v24  ;;  %245 = vperm.xlu1 %4284, %v69_v26  }
  0x23   :  { %1340 = vperm.xlu0 %4283, %v78_v27  }
  0x26   :  { %3947 = vmatmul.mubr.msk.bf16.gmra.mrb[16].mxu0 %vm118_vm0, %v4829_v7  ;;  %1345 = vperm.xlu1 %4284, %v79_v28  }
  0x27   :  { %3950 = vmatprep.mubr.msk.bf16.mxu0 %vm118_vm0, %v4836_v8  ;;  %282 = vperm.xlu0 %4283, %v74_v29  }
  0x28   :  { %3961 = vmatmul.mubr.msk.bf16.gmra.mrb[16].mxu1 %vm118_vm0, %v4829_v7 }
  0x29   :  { %3964 = vmatprep.mubr.msk.bf16.mxu1 %vm118_vm0, %v4836_v8 }
  0x2a   :  { %287 = vperm.xlu1 %4284, %v75_v30  }
  0x2b   :  { %2693 = vperm.xlu0 %4283, %v2681_v31  }
  0x2e   :  { %3951 = vmatmul.mubr.msk.bf16.gmra.mrb[20].mxu0 %vm118_vm0, %v4870_v16  ;;  %2698 = vperm.xlu1 %4284, %v2682_v32  }
  0x2f   :  { %3970 = vmatprep.mubr.msk.bf16.mxu0 %vm118_vm0, %v4798_v1  ;;  %2703 = vperm.xlu0 %4283, %v2683_v33  }
  0x30   :  { %3965 = vmatmul.mubr.msk.bf16.gmra.mrb[20].mxu1 %vm118_vm0, %v4870_v16 }
  0x31   :  { %3984 = vmatprep.mubr.msk.bf16.mxu1 %vm118_vm0, %v4798_v1 }
  0x32   :  { %2708 = vperm.xlu1 %4284, %v2684_v34  }
  0x33   :  { %2782 = vperm.xlu0 %4283, %v2685_v35  }
  0x36   :  { %3971 = vmatmul.mubr.msk.bf16.vlgmr.msra.gmra.mrb[24].mxu0 %vm118_vm0, %v4803_v2  ;;  %2787 = vperm.xlu1 %4284, %v2686_v36  }
  0x37   :  { %3974 = vmatprep.mubr.msk.bf16.mxu0 %vm118_vm0, %v4816_v5  ;;  %3997 = vmatpush3.bf16.msra.mxu0 %v4297_v21 }
  0x38   :  { %4024 = vmatprep.subr.bf16.mxu0 %v4727_v3  ;;  %3985 = vmatmul.mubr.msk.bf16.vlgmr.msra.gmra.mrb[24].mxu1 %vm118_vm0, %v4803_v2 }
  0x39   :  { %3988 = vmatprep.mubr.msk.bf16.mxu1 %vm118_vm0, %v4816_v5  ;;  %4011 = vmatpush3.bf16.msra.mxu1 %v4298_v24 }
  0x3a   :  { %2792 = vperm.xlu0 %4283, %v2687_v37   ;;  %2797 = vperm.xlu1 %4284, %v2688_v38  }
  0x3e   :  { %3975 = vmatmul.mubr.msk.bf16.gmra.mrb[28].mxu0 %vm118_vm0, %v4829_v7 }
  0x3f   :  { %3978 = vmatprep.mubr.msk.bf16.mxu0 %vm118_vm0, %v4836_v8 }
  0x40   :  { %3989 = vmatmul.mubr.msk.bf16.gmra.mrb[28].mxu1 %vm118_vm0, %v4829_v7 }
  0x41   :  { %3992 = vmatprep.mubr.msk.bf16.mxu1 %vm118_vm0, %v4836_v8 }
  0x46   :  { %3979 = vmatmul.mubr.msk.bf16.gmra.mrb[32].mxu0 %vm118_vm0, %v4870_v16 }
  0x47   :  { %3998 = vmatprep.mubr.msk.bf16.mxu0 %vm118_vm0, %v4798_v1 }
  0x48   :  { %3993 = vmatmul.mubr.msk.bf16.gmra.mrb[32].mxu1 %vm118_vm0, %v4870_v16 }
  0x49   :  { %4012 = vmatprep.mubr.msk.bf16.mxu1 %vm118_vm0, %v4798_v1 }
  0x4e   :  { %3999 = vmatmul.mubr.msk.bf16.vlgmr.msra.gmra.mrb[36].mxu0 %vm118_vm0, %v4803_v2 }
  0x4f   :  { %4002 = vmatprep.mubr.msk.bf16.mxu0 %vm118_vm0, %v4816_v5  ;;  %4025 = vmatpush3.bf16.msra.mxu0 %v4727_v3 }
  0x50   :  { %4013 = vmatmul.mubr.msk.bf16.vlgmr.msra.gmra.mrb[36].mxu1 %vm118_vm0, %v4803_v2 }
  0x51   :  { %4016 = vmatprep.mubr.msk.bf16.mxu1 %vm118_vm0, %v4816_v5 }
  0x56   :  { %4003 = vmatmul.mubr.msk.bf16.gmra.mrb[40].mxu0 %vm118_vm0, %v4829_v7 }
  0x57   :  { %4006 = vmatprep.mubr.msk.bf16.mxu0 %vm118_vm0, %v4836_v8 }
  0x58   :  { %4017 = vmatmul.mubr.msk.bf16.gmra.mrb[40].mxu1 %vm118_vm0, %v4829_v7 }
  0x59   :  { %4020 = vmatprep.mubr.msk.bf16.mxu1 %vm118_vm0, %v4836_v8 }
  0x5e   :  { %4007 = vmatmul.mubr.msk.bf16.gmra.mrb[44].mxu0 %vm118_vm0, %v4870_v16 }
  0x5f   :  { %4026 = vmatprep.mubr.msk.bf16.mxu0 %vm1144_vm1, %v5017_v39 }
  0x60   :  { %4021 = vmatmul.mubr.msk.bf16.gmra.mrb[44].mxu1 %vm118_vm0, %v4870_v16 }
  0x61   :  { %4042 = vmatprep.mubr.msk.bf16.mxu1 %vm1144_vm1, %v5017_v39 }
  0x66   :  { %4027 = vmatmul.mubr.msk.bf16.vlgmr.msra.gmra.mrb[0].mxu0 %vm1144_vm1, %v5028_v40 }
  0x67   :  { %4030 = vmatprep.mubr.msk.bf16.mxu0 %vm1144_vm1, %v5035_v41 }
  0x6e   :  { %4031 = vmatmul.mubr.msk.bf16.gmra.mrb[48].mxu0 %vm1144_vm1, %v5044_v42 }
  0x6f   :  { %4034 = vmatprep.mubr.msk.bf16.mxu0 %vm1144_vm1, %v5049_v43 }
  0x76   :  { %4035 = vmatmul.mubr.msk.bf16.gmra.mrb[52].mxu0 %vm1144_vm1, %v5058_v44 }
  0x77   :  { %4058 = vmatprep.mubr.msk.bf16.mxu0 %vm1144_vm1, %v5017_v39 }
  0x89   :  { %v5172_v37 = vpop.permute.xlu0 %220 }
  0xe1   :  { %v5064_v45 = vpop.f32.mrb[4].mxu0 }
  0xe2   :  { %5934 = vst [vmem:[#allocation9_spill] sm:$0xff] %v5064_v45  ;;  %v5066_v46 = vpop.f32.mrb[5].mxu0 }
  0xe3   :  { %v5068_v47 = vpop.f32.mrb[6].mxu0  ;;  %v5072_v49 = vpop.f32.mrb[4].mxu1 }
  0xe4   :  { %5935 = vst [vmem:[#allocation10_spill] sm:$0xff] %v5068_v47  ;;  %v5070_v48 = vpop.f32.mrb[7].mxu0  ;;  %5936 = vst [vmem:[#allocation11_spill] sm:$0xff] %v5072_v49  ;;  %v5074_v50 = vpop.f32.mrb[5].mxu1 }
  0xe5   :  { %v5076_v51 = vpop.f32.mrb[6].mxu1 }
  0xe6   :  { %5937 = vst [vmem:[#allocation12_spill] sm:$0xff] %v5076_v51  ;;  %v5078_v52 = vpop.f32.mrb[7].mxu1 }
  0xe9   :  { %v5080_v53 = vpop.f32.mrb[8].mxu0 }
  0xea   :  { %5938 = vst [vmem:[#allocation13_spill] sm:$0xff] %v5080_v53  ;;  %v5082_v54 = vpop.f32.mrb[9].mxu0 }
  0xeb   :  { %5939 = vst [vmem:[#allocation14_spill] sm:$0xff] %v5082_v54  ;;  %v5084_v55 = vpop.f32.mrb[10].mxu0  ;;  %v5088_v57 = vpop.f32.mrb[8].mxu1 }
  0xec   :  { %5940 = vst [vmem:[#allocation15_spill] sm:$0xff] %v5084_v55  ;;  %v5086_v56 = vpop.f32.mrb[11].mxu0  ;;  %5942 = vst [vmem:[#allocation17_spill] sm:$0xff] %v5088_v57  ;;  %v5090_v58 = vpop.f32.mrb[9].mxu1 }
  0xed   :  { %5941 = vst [vmem:[#allocation16_spill] sm:$0xff] %v5086_v56  ;;  %5943 = vst [vmem:[#allocation18_spill] sm:$0xff] %v5090_v58  ;;  %v5092_v59 = vpop.f32.mrb[10].mxu1  ;;  %v5176_v55 = vpop.permute.xlu1 %262 }
  0xee   :  { %5944 = vst [vmem:[#allocation19_spill] sm:$0xff] %v5092_v59  ;;  %v5094_v60 = vpop.f32.mrb[11].mxu1  ;;  %v5186_v59 = vpop.permute.xlu0 %225 }
  0xef   :  { %5945 = vst [vmem:[#allocation20_spill] sm:$0xff] %v5094_v60 }
  0xf1   :  { %v5190_v57 = vpop.permute.xlu1 %267 }
  0xf2   :  { %v5193_v51 = vpop.permute.xlu0 %230 }
  0xf9   :  { %v5096_v61 = vpop.f32.mrb[16].mxu0 }
  0xfa   :  { %5946 = vst [vmem:[#allocation21_spill] sm:$0xff] %v5096_v61  ;;  %v5098_v62 = vpop.f32.mrb[17].mxu0 }
  0xfb   :  { %v5100_v63 = vpop.f32.mrb[18].mxu0  ;;  %v5104_v1 = vpop.f32.mrb[16].mxu1 }
  0xfc   :  { %5947 = vst [vmem:[#allocation22_spill] sm:$0xff] %v5100_v63  ;;  %v5102_v0 = vpop.f32.mrb[19].mxu0  ;;  %5948 = vst [vmem:[#allocation23_spill] sm:$0xff] %v5104_v1  ;;  %v5106_v2 = vpop.f32.mrb[17].mxu1 }
  0xfd   :  { %5949 = vst [vmem:[#allocation24_spill] sm:$0xff] %v5106_v2  ;;  %v5108_v3 = vpop.f32.mrb[18].mxu1 }
  0xfe   :  { %5950 = vst [vmem:[#allocation25_spill] sm:$0xff] %v5108_v3  ;;  %v5110_v4 = vpop.f32.mrb[19].mxu1 }
  0xff   :  { %5951 = vst [vmem:[#allocation26_spill] sm:$0xff] %v5110_v4 }
 0x101   :  { %v5112_v5 = vpop.f32.mrb[20].mxu0 }
 0x102   :  { %5952 = vst [vmem:[#allocation27_spill] sm:$0xff] %v5112_v5  ;;  %v5114_v6 = vpop.f32.mrb[21].mxu0 }
 0x103   :  { %5953 = vst [vmem:[#allocation28_spill] sm:$0xff] %v5114_v6  ;;  %v5116_v7 = vpop.f32.mrb[22].mxu0  ;;  %v5120_v9 = vpop.f32.mrb[20].mxu1 }
 0x104   :  { %5954 = vst [vmem:[#allocation29_spill] sm:$0xff] %v5116_v7  ;;  %v5118_v8 = vpop.f32.mrb[23].mxu0  ;;  %5956 = vst [vmem:[#allocation31_spill] sm:$0xff] %v5120_v9  ;;  %v5122_v10 = vpop.f32.mrb[21].mxu1 }
 0x105   :  { %5955 = vst [vmem:[#allocation30_spill] sm:$0xff] %v5118_v8  ;;  %5957 = vst [vmem:[#allocation32_spill] sm:$0xff] %v5122_v10  ;;  %v5124_v11 = vpop.f32.mrb[22].mxu1  ;;  %v5202_v10 = vpop.permute.xlu0 %272 }
 0x106   :  { %5958 = vst [vmem:[#allocation33_spill] sm:$0xff] %v5124_v11  ;;  %v5126_v12 = vpop.f32.mrb[23].mxu1 }
 0x107   :  { %5959 = vst [vmem:[#allocation34_spill] sm:$0xff] %v5126_v12 }
 0x111   :  { %v5128_v13 = vpop.f32.mrb[28].mxu0 }
 0x112   :  { %v5130_v14 = vpop.f32.mrb[29].mxu0 }
 0x113   :  { %5960 = vst [vmem:[#allocation35_spill] sm:$0xff] %v5130_v14  ;;  %v5132_v15 = vpop.f32.mrb[30].mxu0  ;;  %v5136_v17 = vpop.f32.mrb[28].mxu1 }
 0x114   :  { %v5134_v16 = vpop.f32.mrb[31].mxu0  ;;  %v5138_v18 = vpop.f32.mrb[29].mxu1 }
 0x115   :  { %5961 = vst [vmem:[#allocation36_spill] sm:$0xff] %v5134_v16  ;;  %5962 = vst [vmem:[#allocation37_spill] sm:$0xff] %v5138_v18  ;;  %v5140_v19 = vpop.f32.mrb[30].mxu1  ;;  %v5197_v18 = vpop.permute.xlu1 %235 }
 0x116   :  { %v5142_v20 = vpop.f32.mrb[31].mxu1 }
 0x117   :  { %5963 = vst [vmem:[#allocation38_spill] sm:$0xff] %v5142_v20 }
 0x119   :  { %v5144_v21 = vpop.f32.mrb[32].mxu0 }
 0x11a   :  { %5964 = vst [vmem:[#allocation39_spill] sm:$0xff] %v5144_v21  ;;  %v5146_v22 = vpop.f32.mrb[33].mxu0 }
 0x11b   :  { %v5148_v23 = vpop.f32.mrb[34].mxu0  ;;  %v5152_v25 = vpop.f32.mrb[32].mxu1 }
 0x11c   :  { %5965 = vst [vmem:[#allocation40_spill] sm:$0xff] %v5148_v23  ;;  %v5150_v24 = vpop.f32.mrb[35].mxu0  ;;  %v5154_v26 = vpop.f32.mrb[33].mxu1 }
 0x11d   :  { %5966 = vst [vmem:[#allocation41_spill] sm:$0xff] %v5150_v24  ;;  %v5156_v27 = vpop.f32.mrb[34].mxu1 }
 0x11e   :  { %v5158_v28 = vpop.f32.mrb[35].mxu1 }
 0x129   :  { %v5160_v29 = vpop.f32.mrb[40].mxu0 }
 0x12a   :  { %v5162_v30 = vpop.f32.mrb[41].mxu0 }
 0x12b   :  { %5967 = vst [vmem:[#allocation42_spill] sm:$0xff] %v5162_v30  ;;  %v5164_v31 = vpop.f32.mrb[42].mxu0  ;;  %v4018_v33 = vpop.f32.mrb[40].mxu1 }
 0x12c   :  { %v5166_v32 = vpop.f32.mrb[43].mxu0  ;;  %v5168_v34 = vpop.f32.mrb[41].mxu1  ;;  %v1101_v63 = vadd.f32 %v4018_v33, %v5176_v55 }
 0x12d   :  { %5968 = vst [vmem:[#allocation43_spill] sm:$0xff] %v5166_v32  ;;  %5969 = vst [vmem:[#allocation44_spill] sm:$0xff] %v5168_v34  ;;  %v4019_v35 = vpop.f32.mrb[42].mxu1 }
 0x12e   :  { %v5170_v36 = vpop.f32.mrb[43].mxu1  ;;  %v1102_v11 = vadd.f32 %v4019_v35, %v5190_v57  ;;  %v5207_v35 = vpop.permute.xlu0 %1286 }
 0x12f   :  { %5970 = vst [vmem:[#allocation45_spill] sm:$0xff] %v5170_v36 }
 0x131   :  { %v5174_v38 = vpop.f32.mrb[44].mxu0 }
 0x132   :  { %v5178_v53 = vpop.f32.mrb[45].mxu0  ;;  %v5212_v1 = vpop.permute.xlu0 %240 }
 0x133   :  { %v5180_v56 = vpop.f32.mrb[46].mxu0  ;;  %v5184_v47 = vpop.f32.mrb[44].mxu1 }
 0x134   :  { %v5182_v54 = vpop.f32.mrb[47].mxu0  ;;  %v1073_v45 = vpop.f32.mrb[45].mxu1 }
 0x135   :  { %v5188_v34 = vpop.f32.mrb[46].mxu1 }
 0x136   :  { %v1076_v36 = vpop.f32.mrb[47].mxu1 }
 0x139   :  { %v4028_v32 = vpop.f32.mrb[0].mxu0 }
 0x13a   :  { %v1197_v30 = vpop.f32.mrb[1].mxu0  ;;  %v4214_v7 = vadd.f32 %v4028_v32, %v5193_v51 }
 0x13b   :  { %v4215_v60 = vadd.f32 %v1197_v30, %v5172_v37  ;;  %v4029_v58 = vpop.f32.mrb[2].mxu0 }
 0x13c   :  { %v1200_v49 = vpop.f32.mrb[3].mxu0  ;;  %v4216_v8 = vadd.f32 %v4029_v58, %v5197_v18  ;;  %v3639_v61 = vmul.f32 -1.442695, %v4214_v7  ;;  %v1103_v7 = vadd.f32 %v1073_v45, %v5202_v10 }
 0x13d   :  { %v3637_v5 = vmul.f32 -1.442695, %v4215_v60  ;;  %v4217_v20 = vadd.f32 %v1200_v49, %v5186_v59 }
 0x13e   :  { %v3640_v14 = vmul.f32 -1.442695, %v4216_v8 }
 0x13f   :  { %4307 = vpow2.f32 %v3637_v5  ;;  %v3638_v6 = vmul.f32 -1.442695, %v4217_v20  ;;  %v5204_v5 = vpop.permute.xlu1 %277 }
 0x141   :  { %4309 = vpow2.f32 %v3638_v6  ;;  %v4032_v30 = vpop.f32.mrb[48].mxu0 }
 0x142   :  { %v1310_v9 = vadd.f32 %v4032_v30, %v1101_v63  ;;  %v1213_v16 = vpop.f32.mrb[49].mxu0  ;;  %4311 = vpow2.f32 %v3639_v61 }
 0x143   :  { %v4033_v32 = vpop.f32.mrb[50].mxu0 }
 0x144   :  { %v3641_v60 = vmul.f32 -1.442695, %v1310_v9  ;;  %v1311_v12 = vadd.f32 %v4033_v32, %v1102_v11  ;;  %v1216_v49 = vpop.f32.mrb[51].mxu0  ;;  %v1104_v9 = vadd.f32 %v1076_v36, %v5204_v5  ;;  %v5210_v32 = vpop.permute.xlu1 %1291 }
 0x146   :  { %4313 = vpow2.f32 %v3641_v60  ;;  %v3642_v58 = vmul.f32 -1.442695, %v1311_v12 }
 0x147   :  { %4315 = vpow2.f32 %v3640_v14 }
 0x148   :  { %4317 = vpow2.f32 %v3642_v58 }
 0x149   :  { %v4308_v6 = vpop.eup %4307  ;;  %v4036_v20 = vpop.f32.mrb[52].mxu0 }
 0x14a   :  { %v1264_v63 = vadd.f32 1.0, %v4308_v6  ;;  %v1229_v33 = vpop.f32.mrb[53].mxu0 }
 0x14b   :  { %v4310_v8 = vpop.eup %4309  ;;  %v1324_v11 = vadd.f32 %v1229_v33, %v1103_v7  ;;  %v4037_v30 = vpop.f32.mrb[54].mxu0 }
 0x14c   :  { %4319 = vrcp.f32 %v1264_v63  ;;  %v1265_v61 = vadd.f32 1.0, %v4310_v8  ;;  %v1232_v12 = vpop.f32.mrb[55].mxu0  ;;  %v4312_v58 = vpop.eup %4311 }
 0x14d   :  { %v3643_v14 = vmul.f32 -1.442695, %v1324_v11  ;;  %v1325_v60 = vadd.f32 %v1232_v12, %v1104_v9  ;;  %v5214_v7 = vpop.permute.xlu1 %245  ;;  %v1278_v63 = vadd.f32 1.0, %v4312_v58  ;;  %v1294_v11 = vadd.f32 %v5207_v35, %v1213_v16  ;;  %v5219_v12 = vpop.permute.xlu0 %1340 }
 0x14e   :  { %4321 = vrcp.f32 %v1265_v61  ;;  %v252_v61 = vadd.f32 %v5212_v1, %v5066_v46  ;;  %v1348_v21 = vadd.f32 %v4036_v20, %v5219_v12 }
 0x14f   :  { %4323 = vpow2.f32 %v3643_v14  ;;  %v3644_v45 = vmul.f32 -1.442695, %v1325_v60  ;;  %v1295_v60 = vadd.f32 %v5210_v32, %v1216_v49 }
 0x150   :  { %v4314_v6 = vpop.eup %4313 }
 0x151   :  { %v4316_v3 = vpop.eup %4315  ;;  %v1318_v23 = vadd.f32 1.0, %v4314_v6  ;;  %4325 = vpow2.f32 %v3644_v45  ;;  %v5224_v58 = vpop.permute.xlu1 %1345 }
 0x152   :  { %v4318_v36 = vpop.eup %4317  ;;  %v1279_v8 = vadd.f32 1.0, %v4316_v3 }
 0x153   :  { %4327 = vrcp.f32 %v1318_v23  ;;  %v1319_v33 = vadd.f32 1.0, %v4318_v36  ;;  %v253_v23 = vadd.f32 %v5214_v7, %v5070_v48 }
 0x155   :  { %4329 = vrcp.f32 %v1319_v33 }
 0x156   :  { %v4320_v9 = vpop.eup %4319  ;;  %4331 = vrcp.f32 %v1278_v63 }
 0x157   :  { %v1296_v14 = vmul.f32 %v4320_v9, %v1294_v11  ;;  %4333 = vrcp.f32 %v1279_v8  ;;  %v5227_v9 = vpop.permute.xlu0 %282  ;;  %v1349_v8 = vadd.f32 %v4037_v30, %v5224_v58 }
 0x158   :  { %v4322_v45 = vpop.eup %4321  ;;  %v1105_v49 = vadd.f32 %v5184_v47, %v5227_v9 }
 0x159   :  { %v4324_v6 = vpop.eup %4323  ;;  %v1298_v3 = vadd.f32 %v1296_v14, %v252_v61  ;;  %v1297_v16 = vmul.f32 %v4322_v45, %v1295_v60  ;;  %v5232_v14 = vpop.permute.xlu1 %287 }
 0x15a   :  { %v1332_v36 = vadd.f32 1.0, %v4324_v6  ;;  %v1106_v60 = vadd.f32 %v5188_v34, %v5232_v14 }
 0x15b   :  { %v4326_v33 = vpop.eup %4325  ;;  %4335 = vtanh.f32 %v1298_v3  ;;  %v1299_v46 = vadd.f32 %v1297_v16, %v253_v23 }
 0x15c   :  { %v1333_v63 = vadd.f32 1.0, %v4326_v33 }
 0x15d   :  { %v4328_v11 = vpop.eup %4327  ;;  %4337 = vtanh.f32 %v1299_v46 }
 0x15e   :  { %v1350_v48 = vmul.f32 %v4328_v11, %v1348_v21  ;;  %4339 = vrcp.f32 %v1332_v36 }
 0x15f   :  { %v4330_v61 = vpop.eup %4329  ;;  %4341 = vrcp.f32 %v1333_v63 }
 0x160   :  { %v1352_v45 = vadd.f32 %v1350_v48, %v1105_v49  ;;  %v1351_v20 = vmul.f32 %v4330_v61, %v1349_v8  ;;  %v4332_v6 = vpop.eup %4331 }
 0x161   :  { %v4334_v3 = vpop.eup %4333  ;;  %v1302_v16 = vsub.f32 1.0, %v4332_v6  ;;  %v1306_v21 = vmul.f32 0.0, %v4332_v6 }
 0x162   :  { %4343 = vtanh.f32 %v1352_v45  ;;  %v1353_v23 = vadd.f32 %v1351_v20, %v1106_v60  ;;  %v1303_v36 = vsub.f32 1.0, %v4334_v3  ;;  %v1307_v11 = vmul.f32 0.0, %v4334_v3 }
 0x164   :  { %4345 = vtanh.f32 %v1353_v23 }
 0x165   :  { %v4336_v47 = vpop.eup %4335 }
 0x166   :  { %v1304_v33 = vmul.f32 %v4336_v47, %v1302_v16 }
 0x167   :  { %v4338_v30 = vpop.eup %4337 }
 0x168   :  { %v4340_v46 = vpop.eup %4339  ;;  %v5236_v4 = vadd.f32 %v1306_v21, %v1304_v33  ;;  %v1305_v2 = vmul.f32 %v4338_v30, %v1303_v36 }
 0x169   :  { %v4342_v34 = vpop.eup %4341  ;;  %v1356_v63 = vsub.f32 1.0, %v4340_v46  ;;  %v1360_v60 = vmul.f32 0.0, %v4340_v46 }
 0x16a   :  { %v5238_v49 = vadd.f32 %v1307_v11, %v1305_v2  ;;  %v1357_v45 = vsub.f32 1.0, %v4342_v34  ;;  %v1361_v3 = vmul.f32 0.0, %v4342_v34 }
 0x16c   :  { %v4344_v48 = vpop.eup %4343  ;;  %v5242_v8 = vpack.c.bf16 %v5238_v49, %v5236_v4 }
 0x16d   :  { %v1358_v61 = vmul.f32 %v4344_v48, %v1356_v63 }
 0x16e   :  { %5971 = vst [vmem:[#allocation46_spill] sm:$0xff] %v5242_v8  ;;  %v4346_v20 = vpop.eup %4345  ;;  %4038 = vmatprep.subr.bf16.mxu1 %v5242_v8 }
 0x16f   :  { %v5245_v6 = vadd.f32 %v1360_v60, %v1358_v61  ;;  %v1359_v23 = vmul.f32 %v4346_v20, %v1357_v45  ;;  %4039 = vmatpush3.bf16.msra.mxu1 %v5242_v8  ;;  %v985_v61 = vadd.f32 %v5160_v29, %v5176_v55  ;;  %v986_v20 = vadd.f32 %v5164_v31, %v5190_v57 }
 0x170   :  { %v987_v29 = vadd.f32 %v5178_v53, %v5202_v10 }
 0x171   :  { %v5248_v2 = vadd.f32 %v1361_v3, %v1359_v23 }
 0x173   :  { %v5252_v16 = vpack.c.bf16 %v5248_v2, %v5245_v6 }
 0x175   :  { %5972 = vst [vmem:[#allocation47_spill] sm:$0xff] %v5252_v16  ;;  %4040 = vmatprep.subr.bf16.mxu1 %v5252_v16 }
 0x176   :  { %4041 = vmatpush3.bf16.msra.mxu1 %v5252_v16 }
 0x179   :  { %4043 = vmatmul.mubr.msk.bf16.vlgmr.msra.gmra.mrb[0].mxu1 %vm1144_vm1, %v5028_v40 }
 0x17a   :  { %4046 = vmatprep.mubr.msk.bf16.mxu1 %vm1144_vm1, %v5035_v41 }
 0x181   :  { %4047 = vmatmul.mubr.msk.bf16.gmra.mrb[48].mxu1 %vm1144_vm1, %v5044_v42 }
 0x182   :  { %4050 = vmatprep.mubr.msk.bf16.mxu1 %vm1144_vm1, %v5049_v43 }
 0x189   :  { %4051 = vmatmul.mubr.msk.bf16.gmra.mrb[52].mxu1 %vm1144_vm1, %v5058_v44 }
 0x18a   :  { %4074 = vmatprep.mubr.msk.bf16.mxu1 %vm1144_vm1, %v5017_v39 }
 0x24c   :  { %v4044_v47 = vpop.f32.mrb[0].mxu1 }
 0x24d   :  { %v1403_v21 = vpop.f32.mrb[1].mxu1  ;;  %v4218_v46 = vadd.f32 %v4044_v47, %v5193_v51 }
 0x24e   :  { %v4219_v36 = vadd.f32 %v1403_v21, %v5172_v37  ;;  %v4045_v33 = vpop.f32.mrb[2].mxu1 }
 0x24f   :  { %v1406_v30 = vpop.f32.mrb[3].mxu1  ;;  %v4220_v63 = vadd.f32 %v4045_v33, %v5197_v18  ;;  %v3653_v60 = vmul.f32 -1.442695, %v4218_v46 }
 0x250   :  { %v3651_v11 = vmul.f32 -1.442695, %v4219_v36  ;;  %v4221_v34 = vadd.f32 %v1406_v30, %v5186_v59 }
 0x251   :  { %v3654_v21 = vmul.f32 -1.442695, %v4220_v63  ;;  %v988_v63 = vadd.f32 %v5182_v54, %v5204_v5 }
 0x252   :  { %4347 = vpow2.f32 %v3651_v11  ;;  %v3652_v48 = vmul.f32 -1.442695, %v4221_v34 }
 0x254   :  { %4349 = vpow2.f32 %v3652_v48  ;;  %v4048_v45 = vpop.f32.mrb[48].mxu1 }
 0x255   :  { %v1506_v23 = vadd.f32 %v4048_v45, %v985_v61  ;;  %v1419_v3 = vpop.f32.mrb[49].mxu1  ;;  %4351 = vpow2.f32 %v3653_v60 }
 0x256   :  { %v4049_v47 = vpop.f32.mrb[50].mxu1 }
 0x257   :  { %v3655_v36 = vmul.f32 -1.442695, %v1506_v23  ;;  %v1507_v16 = vadd.f32 %v4049_v47, %v986_v20  ;;  %v1422_v30 = vpop.f32.mrb[51].mxu1 }
 0x259   :  { %4353 = vpow2.f32 %v3655_v36  ;;  %v3656_v33 = vmul.f32 -1.442695, %v1507_v16 }
 0x25a   :  { %4355 = vpow2.f32 %v3654_v21 }
 0x25b   :  { %4357 = vpow2.f32 %v3656_v33 }
 0x25c   :  { %v4348_v11 = vpop.eup %4347  ;;  %v4052_v46 = vpop.f32.mrb[52].mxu1 }
 0x25d   :  { %v1470_v34 = vadd.f32 1.0, %v4348_v11  ;;  %v1435_v48 = vpop.f32.mrb[53].mxu1 }
 0x25e   :  { %v4350_v31 = vpop.eup %4349  ;;  %v1520_v61 = vadd.f32 %v1435_v48, %v987_v29  ;;  %v4053_v45 = vpop.f32.mrb[54].mxu1  ;;  %v1490_v29 = vadd.f32 %v1419_v3, %v5207_v35  ;;  %v396_v48 = vadd.f32 %v5074_v50, %v5212_v1  ;;  %v1534_v3 = vadd.f32 %v4052_v46, %v5219_v12 }
 0x25f   :  { %4359 = vrcp.f32 %v1470_v34  ;;  %v1471_v20 = vadd.f32 1.0, %v4350_v31  ;;  %v1438_v60 = vpop.f32.mrb[55].mxu1  ;;  %v4352_v21 = vpop.eup %4351 }
 0x260   :  { %v3657_v23 = vmul.f32 -1.442695, %v1520_v61  ;;  %v1521_v16 = vadd.f32 %v1438_v60, %v988_v63  ;;  %v1484_v8 = vadd.f32 1.0, %v4352_v21  ;;  %v1491_v63 = vadd.f32 %v1422_v30, %v5210_v32 }
 0x261   :  { %4361 = vrcp.f32 %v1471_v20  ;;  %v397_v60 = vadd.f32 %v5078_v52, %v5214_v7 }
 0x262   :  { %4363 = vpow2.f32 %v3657_v23  ;;  %v3658_v47 = vmul.f32 -1.442695, %v1521_v16 }
 0x263   :  { %v4354_v36 = vpop.eup %4353 }
 0x264   :  { %v4356_v53 = vpop.eup %4355  ;;  %v1514_v33 = vadd.f32 1.0, %v4354_v36  ;;  %4365 = vpow2.f32 %v3658_v47 }
 0x265   :  { %v4358_v11 = vpop.eup %4357  ;;  %v1485_v54 = vadd.f32 1.0, %v4356_v53  ;;  %v1535_v53 = vadd.f32 %v4053_v45, %v5224_v58 }
 0x266   :  { %4367 = vrcp.f32 %v1514_v33  ;;  %v1515_v24 = vadd.f32 1.0, %v4358_v11  ;;  %v990_v33 = vadd.f32 %v5180_v56, %v5232_v14 }
 0x268   :  { %4369 = vrcp.f32 %v1515_v24 }
 0x269   :  { %v4360_v34 = vpop.eup %4359  ;;  %4371 = vrcp.f32 %v1484_v8  ;;  %v989_v8 = vadd.f32 %v5174_v38, %v5227_v9 }
 0x26a   :  { %v1492_v31 = vmul.f32 %v4360_v34, %v1490_v29  ;;  %4373 = vrcp.f32 %v1485_v54 }
 0x26b   :  { %v4362_v61 = vpop.eup %4361 }
 0x26c   :  { %v4364_v20 = vpop.eup %4363  ;;  %v1494_v23 = vadd.f32 %v1492_v31, %v396_v48  ;;  %v1493_v16 = vmul.f32 %v4362_v61, %v1491_v63 }
 0x26d   :  { %v1528_v21 = vadd.f32 1.0, %v4364_v20 }
 0x26e   :  { %v4366_v47 = vpop.eup %4365  ;;  %4375 = vtanh.f32 %v1494_v23  ;;  %v1495_v24 = vadd.f32 %v1493_v16, %v397_v60 }
 0x26f   :  { %v1529_v36 = vadd.f32 1.0, %v4366_v47 }
 0x270   :  { %v4368_v50 = vpop.eup %4367  ;;  %4377 = vtanh.f32 %v1495_v24 }
 0x271   :  { %v1536_v30 = vmul.f32 %v4368_v50, %v1534_v3  ;;  %4379 = vrcp.f32 %v1528_v21 }
 0x272   :  { %v4370_v52 = vpop.eup %4369  ;;  %4381 = vrcp.f32 %v1529_v36 }
 0x273   :  { %v1538_v11 = vadd.f32 %v1536_v30, %v989_v8  ;;  %v1537_v54 = vmul.f32 %v4370_v52, %v1535_v53  ;;  %v4372_v29 = vpop.eup %4371 }
 0x274   :  { %v4374_v34 = vpop.eup %4373  ;;  %v1498_v48 = vsub.f32 1.0, %v4372_v29  ;;  %v1502_v38 = vmul.f32 %v4372_v29, %v5236_v4 }
 0x275   :  { %4383 = vtanh.f32 %v1538_v11  ;;  %v1539_v46 = vadd.f32 %v1537_v54, %v990_v33  ;;  %v1499_v63 = vsub.f32 1.0, %v4374_v34  ;;  %v1503_v60 = vmul.f32 %v4374_v34, %v5238_v49 }
 0x277   :  { %4385 = vtanh.f32 %v1539_v46 }
 0x278   :  { %v4376_v31 = vpop.eup %4375 }
 0x279   :  { %v1500_v61 = vmul.f32 %v4376_v31, %v1498_v48 }
 0x27a   :  { %v4378_v20 = vpop.eup %4377 }
 0x27b   :  { %v4380_v45 = vpop.eup %4379  ;;  %v5294_v23 = vadd.f32 %v1502_v38, %v1500_v61  ;;  %v1501_v56 = vmul.f32 %v4378_v20, %v1499_v63  ;;  %v869_v63 = vadd.f32 %v5136_v17, %v5176_v55  ;;  %v871_v17 = vadd.f32 %v5154_v26, %v5202_v10 }
 0x27c   :  { %v4382_v16 = vpop.eup %4381  ;;  %v1542_v47 = vsub.f32 1.0, %v4380_v45  ;;  %v1546_v4 = vmul.f32 %v4380_v45, %v5245_v6  ;;  %v870_v45 = vadd.f32 %v5140_v19, %v5190_v57 }
 0x27d   :  { %v5296_v21 = vadd.f32 %v1503_v60, %v1501_v56  ;;  %v1543_v50 = vsub.f32 1.0, %v4382_v16  ;;  %v1547_v53 = vmul.f32 %v4382_v16, %v5248_v2 }
 0x27f   :  { %v4384_v24 = vpop.eup %4383  ;;  %v5300_v3 = vpack.c.bf16 %v5296_v21, %v5294_v23 }
 0x280   :  { %v1544_v36 = vmul.f32 %v4384_v24, %v1542_v47 }
 0x281   :  { %v4386_v8 = vpop.eup %4385  ;;  %4054 = vmatprep.subr.bf16.mxu0 %v5300_v3 }
 0x282   :  { %v5304_v49 = vadd.f32 %v1546_v4, %v1544_v36  ;;  %v1545_v30 = vmul.f32 %v4386_v8, %v1543_v50  ;;  %4055 = vmatpush3.bf16.msra.mxu0 %v5300_v3 }
 0x284   :  { %v5308_v52 = vadd.f32 %v1547_v53, %v1545_v30 }
 0x286   :  { %v5312_v33 = vpack.c.bf16 %v5308_v52, %v5304_v49 }
 0x288   :  { %4056 = vmatprep.subr.bf16.mxu0 %v5312_v33 }
 0x289   :  { %4057 = vmatpush3.bf16.msra.mxu0 %v5312_v33 }
 0x28c   :  { %4059 = vmatmul.mubr.msk.bf16.vlgmr.msra.gmra.mrb[12].mxu0 %vm1144_vm1, %v5028_v40 }
 0x28d   :  { %4062 = vmatprep.mubr.msk.bf16.mxu0 %vm1144_vm1, %v5035_v41 }
 0x294   :  { %4063 = vmatmul.mubr.msk.bf16.gmra.mrb[56].mxu0 %vm1144_vm1, %v5044_v42 }
 0x295   :  { %4066 = vmatprep.mubr.msk.bf16.mxu0 %vm1144_vm1, %v5049_v43 }
 0x29c   :  { %4067 = vmatmul.mubr.msk.bf16.gmra.mrb[60].mxu0 %vm1144_vm1, %v5058_v44 }
 0x29d   :  { %4090 = vmatprep.mubr.msk.bf16.mxu0 %vm1144_vm1, %v5017_v39 }
 0x35f   :  { %v4060_v6 = vpop.f32.mrb[12].mxu0 }
 0x360   :  { %v1590_v2 = vpop.f32.mrb[13].mxu0  ;;  %v4222_v46 = vadd.f32 %v4060_v6, %v5193_v51 }
 0x361   :  { %v4223_v11 = vadd.f32 %v1590_v2, %v5172_v37  ;;  %v4061_v54 = vpop.f32.mrb[14].mxu0  ;;  %v872_v2 = vadd.f32 %v5158_v28, %v5204_v5 }
 0x362   :  { %v1593_v29 = vpop.f32.mrb[15].mxu0  ;;  %v4224_v31 = vadd.f32 %v4061_v54, %v5197_v18  ;;  %v3667_v61 = vmul.f32 -1.442695, %v4222_v46 }
 0x363   :  { %v3665_v34 = vmul.f32 -1.442695, %v4223_v11  ;;  %v4225_v48 = vadd.f32 %v1593_v29, %v5186_v59 }
 0x364   :  { %v3668_v16 = vmul.f32 -1.442695, %v4224_v31 }
 0x365   :  { %4387 = vpow2.f32 %v3665_v34  ;;  %v3666_v38 = vmul.f32 -1.442695, %v4225_v48 }
 0x367   :  { %4389 = vpow2.f32 %v3666_v38  ;;  %v4064_v20 = vpop.f32.mrb[56].mxu0 }
 0x368   :  { %v1693_v60 = vadd.f32 %v4064_v20, %v869_v63  ;;  %v1606_v56 = vpop.f32.mrb[57].mxu0  ;;  %4391 = vpow2.f32 %v3667_v61 }
 0x369   :  { %v4065_v47 = vpop.f32.mrb[58].mxu0 }
 0x36a   :  { %v3669_v24 = vmul.f32 -1.442695, %v1693_v60  ;;  %v1694_v36 = vadd.f32 %v4065_v47, %v870_v45  ;;  %v1609_v4 = vpop.f32.mrb[59].mxu0 }
 0x36c   :  { %4393 = vpow2.f32 %v3669_v24  ;;  %v3670_v50 = vmul.f32 -1.442695, %v1694_v36  ;;  %v512_v24 = vadd.f32 %v5098_v62, %v5212_v1 }
 0x36d   :  { %4395 = vpow2.f32 %v3668_v16  ;;  %v1677_v16 = vadd.f32 %v1606_v56, %v5207_v35 }
 0x36e   :  { %4397 = vpow2.f32 %v3670_v50  ;;  %v1678_v50 = vadd.f32 %v1609_v4, %v5210_v32  ;;  %v873_v4 = vadd.f32 %v5152_v25, %v5227_v9 }
 0x36f   :  { %v4388_v8 = vpop.eup %4387  ;;  %v4068_v30 = vpop.f32.mrb[60].mxu0 }
 0x370   :  { %v1657_v53 = vadd.f32 1.0, %v4388_v8  ;;  %v1622_v6 = vpop.f32.mrb[61].mxu0 }
 0x371   :  { %v4390_v19 = vpop.eup %4389  ;;  %v1707_v11 = vadd.f32 %v1622_v6, %v871_v17  ;;  %v4069_v54 = vpop.f32.mrb[62].mxu0 }
 0x372   :  { %4399 = vrcp.f32 %v1657_v53  ;;  %v1658_v29 = vadd.f32 1.0, %v4390_v19  ;;  %v1625_v46 = vpop.f32.mrb[63].mxu0  ;;  %v4392_v31 = vpop.eup %4391  ;;  %v513_v53 = vadd.f32 %v5102_v0, %v5214_v7 }
 0x373   :  { %v3671_v34 = vmul.f32 -1.442695, %v1707_v11  ;;  %v1708_v48 = vadd.f32 %v1625_v46, %v872_v2  ;;  %v1671_v45 = vadd.f32 1.0, %v4392_v31  ;;  %v874_v31 = vadd.f32 %v5156_v27, %v5232_v14 }
 0x374   :  { %4401 = vrcp.f32 %v1658_v29  ;;  %v1721_v29 = vadd.f32 %v4068_v30, %v5219_v12 }
 0x375   :  { %4403 = vpow2.f32 %v3671_v34  ;;  %v3672_v38 = vmul.f32 -1.442695, %v1708_v48  ;;  %v1722_v48 = vadd.f32 %v4069_v54, %v5224_v58 }
 0x376   :  { %v4394_v63 = vpop.eup %4393 }
 0x377   :  { %v4396_v26 = vpop.eup %4395  ;;  %v1701_v61 = vadd.f32 1.0, %v4394_v63  ;;  %4405 = vpow2.f32 %v3672_v38 }
 0x378   :  { %v4398_v20 = vpop.eup %4397  ;;  %v1672_v28 = vadd.f32 1.0, %v4396_v26 }
 0x379   :  { %4407 = vrcp.f32 %v1701_v61  ;;  %v1702_v60 = vadd.f32 1.0, %v4398_v20 }
 0x37b   :  { %4409 = vrcp.f32 %v1702_v60 }
 0x37c   :  { %v4400_v47 = vpop.eup %4399  ;;  %4411 = vrcp.f32 %v1671_v45 }
 0x37d   :  { %v1679_v36 = vmul.f32 %v4400_v47, %v1677_v16  ;;  %4413 = vrcp.f32 %v1672_v28 }
 0x37e   :  { %v4402_v8 = vpop.eup %4401 }
 0x37f   :  { %v4404_v17 = vpop.eup %4403  ;;  %v1681_v6 = vadd.f32 %v1679_v36, %v512_v24  ;;  %v1680_v19 = vmul.f32 %v4402_v8, %v1678_v50 }
 0x380   :  { %v1715_v2 = vadd.f32 1.0, %v4404_v17 }
 0x381   :  { %v4406_v11 = vpop.eup %4405  ;;  %4415 = vtanh.f32 %v1681_v6  ;;  %v1682_v56 = vadd.f32 %v1680_v19, %v513_v53 }
 0x382   :  { %v1716_v46 = vadd.f32 1.0, %v4406_v11 }
 0x383   :  { %v4408_v62 = vpop.eup %4407  ;;  %4417 = vtanh.f32 %v1682_v56 }
 0x384   :  { %v1723_v34 = vmul.f32 %v4408_v62, %v1721_v29  ;;  %4419 = vrcp.f32 %v1715_v2 }
 0x385   :  { %v4410_v0 = vpop.eup %4409  ;;  %4421 = vrcp.f32 %v1716_v46 }
 0x386   :  { %v1725_v38 = vadd.f32 %v1723_v34, %v873_v4  ;;  %v1724_v63 = vmul.f32 %v4410_v0, %v1722_v48  ;;  %v4412_v26 = vpop.eup %4411 }
 0x387   :  { %v4414_v61 = vpop.eup %4413  ;;  %v1685_v20 = vsub.f32 1.0, %v4412_v26  ;;  %v1689_v25 = vmul.f32 %v4412_v26, %v5294_v23 }
 0x388   :  { %4423 = vtanh.f32 %v1725_v38  ;;  %v1726_v30 = vadd.f32 %v1724_v63, %v874_v31  ;;  %v1686_v60 = vsub.f32 1.0, %v4414_v61  ;;  %v1690_v47 = vmul.f32 %v4414_v61, %v5296_v21 }
 0x389   :  { %v754_v31 = vadd.f32 %v5132_v15, %v5190_v57 }
 0x38a   :  { %4425 = vtanh.f32 %v1726_v30 }
 0x38b   :  { %v4416_v45 = vpop.eup %4415 }
 0x38c   :  { %v1687_v28 = vmul.f32 %v4416_v45, %v1685_v20 }
 0x38d   :  { %v4418_v16 = vpop.eup %4417 }
 0x38e   :  { %v4420_v54 = vpop.eup %4419  ;;  %v5354_v24 = vadd.f32 %v1689_v25, %v1687_v28  ;;  %v1688_v27 = vmul.f32 %v4418_v16, %v1686_v60 }
 0x38f   :  { %v4422_v36 = vpop.eup %4421  ;;  %v1729_v8 = vsub.f32 1.0, %v4420_v54  ;;  %v1733_v23 = vmul.f32 %v4420_v54, %v5304_v49 }
 0x390   :  { %v5356_v50 = vadd.f32 %v1690_v47, %v1688_v27  ;;  %v1730_v19 = vsub.f32 1.0, %v4422_v36  ;;  %v1734_v56 = vmul.f32 %v4422_v36, %v5308_v52  ;;  %v5973_v47 = vld [vmem:[#allocation41_spill] sm:$0xff] }
 0x391   :  { %v756_v27 = vadd.f32 %v5973_v47, %v5204_v5 }
 0x392   :  { %v4424_v17 = vpop.eup %4423  ;;  %v5360_v53 = vpack.c.bf16 %v5356_v50, %v5354_v24 }
 0x393   :  { %v1731_v6 = vmul.f32 %v4424_v17, %v1729_v8 }
 0x394   :  { %v4426_v2 = vpop.eup %4425  ;;  %4070 = vmatprep.subr.bf16.mxu1 %v5360_v53 }
 0x395   :  { %v5364_v21 = vadd.f32 %v1733_v23, %v1731_v6  ;;  %v1732_v11 = vmul.f32 %v4426_v2, %v1730_v19  ;;  %4071 = vmatpush3.bf16.msra.mxu1 %v5360_v53 }
 0x397   :  { %v5368_v29 = vadd.f32 %v1734_v56, %v1732_v11 }
 0x399   :  { %v5372_v46 = vpack.c.bf16 %v5368_v29, %v5364_v21 }
 0x39b   :  { %4072 = vmatprep.subr.bf16.mxu1 %v5372_v46 }
 0x39c   :  { %4073 = vmatpush3.bf16.msra.mxu1 %v5372_v46 }
 0x39f   :  { %4075 = vmatmul.mubr.msk.bf16.vlgmr.msra.gmra.mrb[12].mxu1 %vm1144_vm1, %v5028_v40 }
 0x3a0   :  { %4078 = vmatprep.mubr.msk.bf16.mxu1 %vm1144_vm1, %v5035_v41 }
 0x3a7   :  { %4079 = vmatmul.mubr.msk.bf16.gmra.mrb[56].mxu1 %vm1144_vm1, %v5044_v42 }
 0x3a8   :  { %4082 = vmatprep.mubr.msk.bf16.mxu1 %vm1144_vm1, %v5049_v43 }
 0x3af   :  { %4083 = vmatmul.mubr.msk.bf16.gmra.mrb[60].mxu1 %vm1144_vm1, %v5058_v44  ;;  %v753_v44 = vadd.f32 %v5128_v13, %v5176_v55  ;;  %v755_v13 = vadd.f32 %v5146_v22, %v5202_v10 }
 0x3b0   :  { %4106 = vmatprep.mubr.msk.bf16.mxu1 %vm1144_vm1, %v5017_v39 }
 0x472   :  { %v4076_v49 = vpop.f32.mrb[12].mxu1 }
 0x473   :  { %v1777_v52 = vpop.f32.mrb[13].mxu1  ;;  %v4226_v41 = vadd.f32 %v4076_v49, %v5193_v51 }
 0x474   :  { %v4227_v62 = vadd.f32 %v1777_v52, %v5172_v37  ;;  %v4077_v40 = vpop.f32.mrb[14].mxu1 }
 0x475   :  { %v1780_v4 = vpop.f32.mrb[15].mxu1  ;;  %v4228_v43 = vadd.f32 %v4077_v40, %v5197_v18  ;;  %v3681_v0 = vmul.f32 -1.442695, %v4226_v41 }
 0x476   :  { %v3679_v34 = vmul.f32 -1.442695, %v4227_v62  ;;  %v4229_v42 = vadd.f32 %v1780_v4, %v5186_v59 }
 0x477   :  { %v3682_v26 = vmul.f32 -1.442695, %v4228_v43 }
 0x478   :  { %4427 = vpow2.f32 %v3679_v34  ;;  %v3680_v48 = vmul.f32 -1.442695, %v4229_v42  ;;  %v5974_v42 = vld [vmem:[#allocation24_spill] sm:$0xff] }
 0x479   :  { %v628_v43 = vadd.f32 %v5974_v42, %v5212_v1 }
 0x47a   :  { %4429 = vpow2.f32 %v3680_v48  ;;  %v4080_v39 = vpop.f32.mrb[56].mxu1 }
 0x47b   :  { %v1880_v38 = vadd.f32 %v4080_v39, %v753_v44  ;;  %v1793_v63 = vpop.f32.mrb[57].mxu1  ;;  %4431 = vpow2.f32 %v3681_v0 }
 0x47c   :  { %v4081_v30 = vpop.f32.mrb[58].mxu1  ;;  %v1864_v41 = vadd.f32 %v1793_v63, %v5207_v35 }
 0x47d   :  { %v3683_v61 = vmul.f32 -1.442695, %v1880_v38  ;;  %v1881_v20 = vadd.f32 %v4081_v30, %v754_v31  ;;  %v1796_v45 = vpop.f32.mrb[59].mxu1  ;;  %v5975_v31 = vld [vmem:[#allocation26_spill] sm:$0xff] }
 0x47e   :  { %v1865_v44 = vadd.f32 %v1796_v45, %v5210_v32  ;;  %v629_v38 = vadd.f32 %v5975_v31, %v5214_v7 }
 0x47f   :  { %4433 = vpow2.f32 %v3683_v61  ;;  %v3684_v25 = vmul.f32 -1.442695, %v1881_v20 }
 0x480   :  { %4435 = vpow2.f32 %v3682_v26 }
 0x481   :  { %4437 = vpow2.f32 %v3684_v25 }
 0x482   :  { %v4428_v60 = vpop.eup %4427  ;;  %v4084_v28 = vpop.f32.mrb[60].mxu1 }
 0x483   :  { %v1844_v16 = vadd.f32 1.0, %v4428_v60  ;;  %v1809_v54 = vpop.f32.mrb[61].mxu1  ;;  %v1908_v25 = vadd.f32 %v4084_v28, %v5219_v12 }
 0x484   :  { %v4430_v15 = vpop.eup %4429  ;;  %v1894_v36 = vadd.f32 %v1809_v54, %v755_v13  ;;  %v4085_v8 = vpop.f32.mrb[62].mxu1 }
 0x485   :  { %4439 = vrcp.f32 %v1844_v16  ;;  %v1845_v17 = vadd.f32 1.0, %v4430_v15  ;;  %v1812_v6 = vpop.f32.mrb[63].mxu1  ;;  %v4432_v2 = vpop.eup %4431  ;;  %v5976_v16 = vld [vmem:[#allocation39_spill] sm:$0xff]  ;;  %v1909_v15 = vadd.f32 %v4085_v8, %v5224_v58 }
 0x486   :  { %v3685_v23 = vmul.f32 -1.442695, %v1894_v36  ;;  %v1895_v19 = vadd.f32 %v1812_v6, %v756_v27  ;;  %v1858_v62 = vadd.f32 1.0, %v4432_v2  ;;  %v757_v45 = vadd.f32 %v5976_v16, %v5227_v9  ;;  %v5977_v27 = vld [vmem:[#allocation40_spill] sm:$0xff] }
 0x487   :  { %4441 = vrcp.f32 %v1845_v17  ;;  %v758_v36 = vadd.f32 %v5977_v27, %v5232_v14 }
 0x488   :  { %4443 = vpow2.f32 %v3685_v23  ;;  %v3686_v11 = vmul.f32 -1.442695, %v1895_v19 }
 0x489   :  { %v4434_v56 = vpop.eup %4433 }
 0x48a   :  { %v4436_v22 = vpop.eup %4435  ;;  %v1888_v49 = vadd.f32 1.0, %v4434_v56  ;;  %4445 = vpow2.f32 %v3686_v11 }
 0x48b   :  { %v4438_v52 = vpop.eup %4437  ;;  %v1859_v4 = vadd.f32 1.0, %v4436_v22 }
 0x48c   :  { %4447 = vrcp.f32 %v1888_v49  ;;  %v1889_v40 = vadd.f32 1.0, %v4438_v52 }
 0x48e   :  { %4449 = vrcp.f32 %v1889_v40 }
 0x48f   :  { %v4440_v34 = vpop.eup %4439  ;;  %4451 = vrcp.f32 %v1858_v62 }
 0x490   :  { %v1866_v48 = vmul.f32 %v4440_v34, %v1864_v41  ;;  %4453 = vrcp.f32 %v1859_v4 }
 0x491   :  { %v4442_v0 = vpop.eup %4441 }
 0x492   :  { %v4444_v39 = vpop.eup %4443  ;;  %v1868_v26 = vadd.f32 %v1866_v48, %v628_v43  ;;  %v1867_v30 = vmul.f32 %v4442_v0, %v1865_v44 }
 0x493   :  { %v1902_v61 = vadd.f32 1.0, %v4444_v39 }
 0x494   :  { %v4446_v20 = vpop.eup %4445  ;;  %4455 = vtanh.f32 %v1868_v26  ;;  %v1869_v63 = vadd.f32 %v1867_v30, %v629_v38 }
 0x495   :  { %v1903_v60 = vadd.f32 1.0, %v4446_v20  ;;  %v5460_v20 = vld [vmem:[%s5921_s3 + $0x20] sm:$0xff]  }
 0x496   :  { %v4448_v13 = vpop.eup %4447  ;;  %4457 = vtanh.f32 %v1869_v63  ;;  %v5467_v63 = vld [vmem:[%s5921_s3 + $0x28] sm:$0xff]  }
 0x497   :  { %v1910_v54 = vmul.f32 %v4448_v13, %v1908_v25  ;;  %4459 = vrcp.f32 %v1902_v61  ;;  %v5453_v61 = vld [vmem:[%s5921_s3 + $0x18] sm:$0xff]   ;;  %v5474_v25 = vld [vmem:[%s5921_s3] sm:$0xff]  }
 0x498   :  { %v4450_v47 = vpop.eup %4449  ;;  %4461 = vrcp.f32 %v1903_v60 }
 0x499   :  { %v1912_v17 = vadd.f32 %v1910_v54, %v757_v45  ;;  %v1911_v6 = vmul.f32 %v4450_v47, %v1909_v15  ;;  %v4452_v23 = vpop.eup %4451 }
 0x49a   :  { %v4454_v19 = vpop.eup %4453  ;;  %v1872_v2 = vsub.f32 1.0, %v4452_v23  ;;  %v1876_v56 = vmul.f32 %v4452_v23, %v5354_v24 }
 0x49b   :  { %4463 = vtanh.f32 %v1912_v17  ;;  %v1913_v28 = vadd.f32 %v1911_v6, %v758_v36  ;;  %v1873_v22 = vsub.f32 1.0, %v4454_v19  ;;  %v1877_v62 = vmul.f32 %v4454_v19, %v5356_v50  ;;  %v5978_v6 = vld [vmem:[#allocation23_spill] sm:$0xff] }
 0x49c   :  { %v637_v23 = vadd.f32 %v5978_v6, %v5176_v55 }
 0x49d   :  { %4465 = vtanh.f32 %v1913_v28 }
 0x49e   :  { %v4456_v11 = vpop.eup %4455 }
 0x49f   :  { %v1874_v49 = vmul.f32 %v4456_v11, %v1872_v2  ;;  %v5979_v2 = vld [vmem:[#allocation25_spill] sm:$0xff] }
 0x4a0   :  { %v4458_v52 = vpop.eup %4457  ;;  %v638_v11 = vadd.f32 %v5979_v2, %v5190_v57 }
 0x4a1   :  { %v4460_v8 = vpop.eup %4459  ;;  %v5414_v40 = vadd.f32 %v1876_v56, %v1874_v49  ;;  %v1875_v4 = vmul.f32 %v4458_v52, %v1873_v22 }
 0x4a2   :  { %v4462_v41 = vpop.eup %4461  ;;  %v1916_v42 = vsub.f32 1.0, %v4460_v8  ;;  %v1920_v24 = vmul.f32 %v4460_v8, %v5364_v21  ;;  %v5439_v21 = vld [vmem:[%s5921_s3 + $0x8] sm:$0xff]  }
 0x4a3   :  { %v5416_v34 = vadd.f32 %v1877_v62, %v1875_v4  ;;  %v1917_v0 = vsub.f32 1.0, %v4462_v41  ;;  %v1921_v38 = vmul.f32 %v4462_v41, %v5368_v29  ;;  %v5446_v29 = vld [vmem:[%s5921_s3 + $0x10] sm:$0xff]  }
 0x4a5   :  { %v4464_v43 = vpop.eup %4463  ;;  %v5420_v48 = vpack.c.bf16 %v5416_v34, %v5414_v40 }
 0x4a6   :  { %v1918_v44 = vmul.f32 %v4464_v43, %v1916_v42  ;;  %v5980_v43 = vld [vmem:[#allocation32_spill] sm:$0xff] }
 0x4a7   :  { %v4466_v39 = vpop.eup %4465  ;;  %4086 = vmatprep.subr.bf16.mxu0 %v5420_v48 }
 0x4a8   :  { %v5424_v50 = vadd.f32 %v1920_v24, %v1918_v44  ;;  %v1919_v31 = vmul.f32 %v4466_v39, %v1917_v0  ;;  %4087 = vmatpush3.bf16.msra.mxu0 %v5420_v48  ;;  %v639_v44 = vadd.f32 %v5980_v43, %v5202_v10 }
 0x4aa   :  { %v5428_v26 = vadd.f32 %v1921_v38, %v1919_v31  ;;  %v5981_v38 = vld [vmem:[#allocation34_spill] sm:$0xff] }
 0x4ac   :  { %v5432_v30 = vpack.c.bf16 %v5428_v26, %v5424_v50 }
 0x4ae   :  { %4088 = vmatprep.subr.bf16.mxu0 %v5432_v30 }
 0x4af   :  { %4089 = vmatpush3.bf16.msra.mxu0 %v5432_v30 }
 0x4b2   :  { %4091 = vmatmul.mubr.msk.bf16.vlgmr.msra.gmra.mrb[24].mxu0 %vm1144_vm1, %v5439_v21 }
 0x4b3   :  { %4094 = vmatprep.mubr.msk.bf16.mxu0 %vm1144_vm1, %v5446_v29 }
 0x4ba   :  { %4095 = vmatmul.mubr.msk.bf16.gmra.mrb[64].mxu0 %vm1144_vm1, %v5453_v61 }
 0x4bb   :  { %4098 = vmatprep.mubr.msk.bf16.mxu0 %vm1144_vm1, %v5460_v20 }
 0x4c2   :  { %4099 = vmatmul.mubr.msk.bf16.gmra.mrb[68].mxu0 %vm1144_vm1, %v5467_v63 }
 0x4c3   :  { %4122 = vmatprep.mubr.msk.bf16.mxu0 %vm1144_vm1, %v5474_v25 }
 0x585   :  { %v4092_v60 = vpop.f32.mrb[24].mxu0 }
 0x586   :  { %v1964_v13 = vpop.f32.mrb[25].mxu0  ;;  %v4230_v15 = vadd.f32 %v4092_v60, %v5193_v51  ;;  %v640_v60 = vadd.f32 %v5981_v38, %v5204_v5 }
 0x587   :  { %v4231_v16 = vadd.f32 %v1964_v13, %v5172_v37  ;;  %v4093_v45 = vpop.f32.mrb[26].mxu0 }
 0x588   :  { %v1967_v54 = vpop.f32.mrb[27].mxu0  ;;  %v4232_v36 = vadd.f32 %v4093_v45, %v5197_v18  ;;  %v3695_v28 = vmul.f32 -1.442695, %v4230_v15 }
 0x589   :  { %v3693_v47 = vmul.f32 -1.442695, %v4231_v16  ;;  %v4233_v27 = vadd.f32 %v1967_v54, %v5186_v59 }
 0x58a   :  { %v3696_v49 = vmul.f32 -1.442695, %v4232_v36 }
 0x58b   :  { %4467 = vpow2.f32 %v3693_v47  ;;  %v3694_v17 = vmul.f32 -1.442695, %v4233_v27 }
 0x58d   :  { %4469 = vpow2.f32 %v3694_v17  ;;  %v4096_v19 = vpop.f32.mrb[64].mxu0 }
 0x58e   :  { %v2067_v56 = vadd.f32 %v4096_v19, %v637_v23  ;;  %v1980_v22 = vpop.f32.mrb[65].mxu0  ;;  %4471 = vpow2.f32 %v3695_v28 }
 0x58f   :  { %v4097_v52 = vpop.f32.mrb[66].mxu0 }
 0x590   :  { %v3697_v8 = vmul.f32 -1.442695, %v2067_v56  ;;  %v2068_v62 = vadd.f32 %v4097_v52, %v638_v11  ;;  %v1983_v4 = vpop.f32.mrb[67].mxu0  ;;  %v2051_v56 = vadd.f32 %v1980_v22, %v5207_v35  ;;  %v5982_v52 = vld [vmem:[#allocation35_spill] sm:$0xff] }
 0x592   :  { %4473 = vpow2.f32 %v3697_v8  ;;  %v3698_v41 = vmul.f32 -1.442695, %v2068_v62  ;;  %v744_v8 = vadd.f32 %v5982_v52, %v5212_v1 }
 0x593   :  { %4475 = vpow2.f32 %v3696_v49 }
 0x594   :  { %4477 = vpow2.f32 %v3698_v41  ;;  %v2052_v41 = vadd.f32 %v1983_v4, %v5210_v32 }
 0x595   :  { %v4468_v42 = vpop.eup %4467  ;;  %v4100_v24 = vpop.f32.mrb[68].mxu0 }
 0x596   :  { %v2031_v0 = vadd.f32 1.0, %v4468_v42  ;;  %v1996_v39 = vpop.f32.mrb[69].mxu0 }
 0x597   :  { %v4470_v31 = vpop.eup %4469  ;;  %v2081_v13 = vadd.f32 %v1996_v39, %v639_v44  ;;  %v4101_v16 = vpop.f32.mrb[70].mxu0  ;;  %v5983_v44 = vld [vmem:[#allocation36_spill] sm:$0xff] }
 0x598   :  { %4479 = vrcp.f32 %v2031_v0  ;;  %v2032_v45 = vadd.f32 1.0, %v4470_v31  ;;  %v1999_v54 = vpop.f32.mrb[71].mxu0  ;;  %v4472_v27 = vpop.eup %4471  ;;  %v745_v0 = vadd.f32 %v5983_v44, %v5214_v7 }
 0x599   :  { %v3699_v15 = vmul.f32 -1.442695, %v2081_v13  ;;  %v2082_v47 = vadd.f32 %v1999_v54, %v640_v60  ;;  %v2045_v19 = vadd.f32 1.0, %v4472_v27  ;;  %v2095_v13 = vadd.f32 %v4100_v24, %v5219_v12 }
 0x59a   :  { %4481 = vrcp.f32 %v2032_v45  ;;  %v2096_v27 = vadd.f32 %v4101_v16, %v5224_v58 }
 0x59b   :  { %4483 = vpow2.f32 %v3699_v15  ;;  %v3700_v36 = vmul.f32 -1.442695, %v2082_v47  ;;  %v5984_v15 = vld [vmem:[#allocation31_spill] sm:$0xff] }
 0x59c   :  { %v4474_v17 = vpop.eup %4473  ;;  %v641_v4 = vadd.f32 %v5984_v15, %v5227_v9 }
 0x59d   :  { %v4476_v6 = vpop.eup %4475  ;;  %v2075_v23 = vadd.f32 1.0, %v4474_v17  ;;  %4485 = vpow2.f32 %v3700_v36  ;;  %v5985_v17 = vld [vmem:[#allocation33_spill] sm:$0xff] }
 0x59e   :  { %v4478_v28 = vpop.eup %4477  ;;  %v2046_v11 = vadd.f32 1.0, %v4476_v6  ;;  %v642_v6 = vadd.f32 %v5985_v17, %v5232_v14 }
 0x59f   :  { %4487 = vrcp.f32 %v2075_v23  ;;  %v2076_v2 = vadd.f32 1.0, %v4478_v28 }
 0x5a1   :  { %4489 = vrcp.f32 %v2076_v2 }
 0x5a2   :  { %v4480_v49 = vpop.eup %4479  ;;  %4491 = vrcp.f32 %v2045_v19 }
 0x5a3   :  { %v2053_v62 = vmul.f32 %v4480_v49, %v2051_v56  ;;  %4493 = vrcp.f32 %v2046_v11 }
 0x5a4   :  { %v4482_v42 = vpop.eup %4481 }
 0x5a5   :  { %v4484_v43 = vpop.eup %4483  ;;  %v2055_v39 = vadd.f32 %v2053_v62, %v744_v8  ;;  %v2054_v31 = vmul.f32 %v4482_v42, %v2052_v41 }
 0x5a6   :  { %v2089_v38 = vadd.f32 1.0, %v4484_v43 }
 0x5a7   :  { %v4486_v60 = vpop.eup %4485  ;;  %4495 = vtanh.f32 %v2055_v39  ;;  %v2056_v22 = vadd.f32 %v2054_v31, %v745_v0 }
 0x5a8   :  { %v2090_v45 = vadd.f32 1.0, %v4486_v60 }
 0x5a9   :  { %v4488_v54 = vpop.eup %4487  ;;  %4497 = vtanh.f32 %v2056_v22 }
 0x5aa   :  { %v2097_v47 = vmul.f32 %v4488_v54, %v2095_v13  ;;  %4499 = vrcp.f32 %v2089_v38 }
 0x5ab   :  { %v4490_v36 = vpop.eup %4489  ;;  %4501 = vrcp.f32 %v2090_v45 }
 0x5ac   :  { %v2099_v23 = vadd.f32 %v2097_v47, %v641_v4  ;;  %v2098_v28 = vmul.f32 %v4490_v36, %v2096_v27  ;;  %v4492_v19 = vpop.eup %4491 }
 0x5ad   :  { %v4494_v2 = vpop.eup %4493  ;;  %v2059_v11 = vsub.f32 1.0, %v4492_v19  ;;  %v2063_v49 = vmul.f32 %v4492_v19, %v5414_v40 }
 0x5ae   :  { %4503 = vtanh.f32 %v2099_v23  ;;  %v2100_v24 = vadd.f32 %v2098_v28, %v642_v6  ;;  %v2060_v52 = vsub.f32 1.0, %v4494_v2  ;;  %v2064_v41 = vmul.f32 %v4494_v2, %v5416_v34 }
 0x5b0   :  { %4505 = vtanh.f32 %v2100_v24  ;;  %v5986_v24 = vld [vmem:[#allocation21_spill] sm:$0xff] }
 0x5b1   :  { %v4496_v56 = vpop.eup %4495  ;;  %v521_v2 = vadd.f32 %v5986_v24, %v5176_v55 }
 0x5b2   :  { %v2061_v8 = vmul.f32 %v4496_v56, %v2059_v11  ;;  %v5987_v56 = vld [vmem:[#allocation22_spill] sm:$0xff] }
 0x5b3   :  { %v4498_v62 = vpop.eup %4497 }
 0x5b4   :  { %v4500_v16 = vpop.eup %4499  ;;  %v5504_v42 = vadd.f32 %v2063_v49, %v2061_v8  ;;  %v2062_v43 = vmul.f32 %v4498_v62, %v2060_v52  ;;  %v522_v49 = vadd.f32 %v5987_v56, %v5190_v57 }
 0x5b5   :  { %v4502_v44 = vpop.eup %4501  ;;  %v2103_v39 = vsub.f32 1.0, %v4500_v16  ;;  %v2107_v40 = vmul.f32 %v4500_v16, %v5424_v50 }
 0x5b6   :  { %v5506_v0 = vadd.f32 %v2064_v41, %v2062_v43  ;;  %v2104_v22 = vsub.f32 1.0, %v4502_v44  ;;  %v2108_v54 = vmul.f32 %v4502_v44, %v5428_v26 }
 0x5b8   :  { %v4504_v31 = vpop.eup %4503  ;;  %v5510_v38 = vpack.c.bf16 %v5506_v0, %v5504_v42 }
 0x5b9   :  { %v2105_v60 = vmul.f32 %v4504_v31, %v2103_v39 }
 0x5ba   :  { %v4506_v13 = vpop.eup %4505  ;;  %4102 = vmatprep.subr.bf16.mxu1 %v5510_v38 }
 0x5bb   :  { %v5514_v34 = vadd.f32 %v2107_v40, %v2105_v60  ;;  %v2106_v45 = vmul.f32 %v4506_v13, %v2104_v22  ;;  %4103 = vmatpush3.bf16.msra.mxu1 %v5510_v38  ;;  %v5988_v60 = vld [vmem:[#allocation28_spill] sm:$0xff] }
 0x5bc   :  { %v523_v40 = vadd.f32 %v5988_v60, %v5202_v10 }
 0x5bd   :  { %v5518_v15 = vadd.f32 %v2108_v54, %v2106_v45 }
 0x5bf   :  { %v5522_v4 = vpack.c.bf16 %v5518_v15, %v5514_v34 }
 0x5c1   :  { %4104 = vmatprep.subr.bf16.mxu1 %v5522_v4 }
 0x5c2   :  { %4105 = vmatpush3.bf16.msra.mxu1 %v5522_v4 }
 0x5c5   :  { %4107 = vmatmul.mubr.msk.bf16.vlgmr.msra.gmra.mrb[24].mxu1 %vm1144_vm1, %v5439_v21 }
 0x5c6   :  { %4110 = vmatprep.mubr.msk.bf16.mxu1 %vm1144_vm1, %v5446_v29 }
 0x5cd   :  { %4111 = vmatmul.mubr.msk.bf16.gmra.mrb[64].mxu1 %vm1144_vm1, %v5453_v61 }
 0x5ce   :  { %4114 = vmatprep.mubr.msk.bf16.mxu1 %vm1144_vm1, %v5460_v20 }
 0x5d5   :  { %4115 = vmatmul.mubr.msk.bf16.gmra.mrb[68].mxu1 %vm1144_vm1, %v5467_v63 }
 0x5d6   :  { %4138 = vmatprep.mubr.msk.bf16.mxu1 %vm1144_vm1, %v5474_v25 }
 0x698   :  { %v4108_v50 = vpop.f32.mrb[24].mxu1 }
 0x699   :  { %v2151_v26 = vpop.f32.mrb[25].mxu1  ;;  %v4234_v17 = vadd.f32 %v4108_v50, %v5193_v51  ;;  %v5989_v50 = vld [vmem:[#allocation30_spill] sm:$0xff] }
 0x69a   :  { %v4235_v47 = vadd.f32 %v2151_v26, %v5172_v37  ;;  %v4109_v27 = vpop.f32.mrb[26].mxu1  ;;  %v524_v26 = vadd.f32 %v5989_v50, %v5204_v5 }
 0x69b   :  { %v2154_v36 = vpop.f32.mrb[27].mxu1  ;;  %v4236_v28 = vadd.f32 %v4109_v27, %v5197_v18  ;;  %v3709_v11 = vmul.f32 -1.442695, %v4234_v17 }
 0x69c   :  { %v3707_v6 = vmul.f32 -1.442695, %v4235_v47  ;;  %v4237_v23 = vadd.f32 %v2154_v36, %v5186_v59 }
 0x69d   :  { %v3710_v62 = vmul.f32 -1.442695, %v4236_v28 }
 0x69e   :  { %4507 = vpow2.f32 %v3707_v6  ;;  %v3708_v19 = vmul.f32 -1.442695, %v4237_v23 }
 0x6a0   :  { %4509 = vpow2.f32 %v3708_v19  ;;  %v4112_v25 = vpop.f32.mrb[64].mxu1 }
 0x6a1   :  { %v2254_v52 = vadd.f32 %v4112_v25, %v521_v2  ;;  %v2167_v8 = vpop.f32.mrb[65].mxu1  ;;  %4511 = vpow2.f32 %v3709_v11 }
 0x6a2   :  { %v4113_v16 = vpop.f32.mrb[66].mxu1 }
 0x6a3   :  { %v3711_v41 = vmul.f32 -1.442695, %v2254_v52  ;;  %v2255_v43 = vadd.f32 %v4113_v16, %v522_v49  ;;  %v2170_v44 = vpop.f32.mrb[67].mxu1 }
 0x6a5   :  { %4513 = vpow2.f32 %v3711_v41  ;;  %v3712_v39 = vmul.f32 -1.442695, %v2255_v43  ;;  %v5990_v41 = vld [vmem:[#allocation37_spill] sm:$0xff] }
 0x6a6   :  { %4515 = vpow2.f32 %v3710_v62  ;;  %v2238_v62 = vadd.f32 %v2167_v8, %v5207_v35  ;;  %v860_v43 = vadd.f32 %v5990_v41, %v5212_v1 }
 0x6a7   :  { %4517 = vpow2.f32 %v3712_v39 }
 0x6a8   :  { %v4508_v31 = vpop.eup %4507  ;;  %v4116_v22 = vpop.f32.mrb[68].mxu1 }
 0x6a9   :  { %v2218_v13 = vadd.f32 1.0, %v4508_v31  ;;  %v2183_v45 = vpop.f32.mrb[69].mxu1  ;;  %v2239_v31 = vadd.f32 %v2170_v44, %v5210_v32 }
 0x6aa   :  { %v4510_v54 = vpop.eup %4509  ;;  %v2268_v47 = vadd.f32 %v2183_v45, %v523_v40  ;;  %v4117_v27 = vpop.f32.mrb[70].mxu1 }
 0x6ab   :  { %4519 = vrcp.f32 %v2218_v13  ;;  %v2219_v36 = vadd.f32 1.0, %v4510_v54  ;;  %v2186_v17 = vpop.f32.mrb[71].mxu1  ;;  %v4512_v28 = vpop.eup %4511  ;;  %v5991_v13 = vld [vmem:[#allocation38_spill] sm:$0xff] }
 0x6ac   :  { %v3713_v6 = vmul.f32 -1.442695, %v2268_v47  ;;  %v2269_v23 = vadd.f32 %v2186_v17, %v524_v26  ;;  %v2232_v56 = vadd.f32 1.0, %v4512_v28  ;;  %v861_v45 = vadd.f32 %v5991_v13, %v5214_v7 }
 0x6ad   :  { %4521 = vrcp.f32 %v2219_v36  ;;  %v2282_v36 = vadd.f32 %v4116_v22, %v5219_v12 }
 0x6ae   :  { %4523 = vpow2.f32 %v3713_v6  ;;  %v3714_v19 = vmul.f32 -1.442695, %v2269_v23  ;;  %v5992_v23 = vld [vmem:[#allocation27_spill] sm:$0xff] }
 0x6af   :  { %v4514_v24 = vpop.eup %4513  ;;  %v525_v44 = vadd.f32 %v5992_v23, %v5227_v9 }
 0x6b0   :  { %v4516_v2 = vpop.eup %4515  ;;  %v2262_v11 = vadd.f32 1.0, %v4514_v24  ;;  %4525 = vpow2.f32 %v3714_v19  ;;  %v2283_v19 = vadd.f32 %v4117_v27, %v5224_v58 }
 0x6b1   :  { %v4518_v25 = vpop.eup %4517  ;;  %v2233_v52 = vadd.f32 1.0, %v4516_v2  ;;  %v5993_v2 = vld [vmem:[#allocation29_spill] sm:$0xff] }
 0x6b2   :  { %4527 = vrcp.f32 %v2262_v11  ;;  %v2263_v49 = vadd.f32 1.0, %v4518_v25  ;;  %v526_v11 = vadd.f32 %v5993_v2, %v5232_v14 }
 0x6b4   :  { %4529 = vrcp.f32 %v2263_v49 }
 0x6b5   :  { %v4520_v16 = vpop.eup %4519  ;;  %4531 = vrcp.f32 %v2232_v56 }
 0x6b6   :  { %v2240_v39 = vmul.f32 %v4520_v16, %v2238_v62  ;;  %4533 = vrcp.f32 %v2233_v52 }
 0x6b7   :  { %v4522_v60 = vpop.eup %4521 }
 0x6b8   :  { %v4524_v40 = vpop.eup %4523  ;;  %v2242_v54 = vadd.f32 %v2240_v39, %v860_v43  ;;  %v2241_v50 = vmul.f32 %v4522_v60, %v2239_v31 }
 0x6b9   :  { %v2276_v26 = vadd.f32 1.0, %v4524_v40 }
 0x6ba   :  { %v4526_v47 = vpop.eup %4525  ;;  %4535 = vtanh.f32 %v2242_v54  ;;  %v2243_v8 = vadd.f32 %v2241_v50, %v861_v45 }
 0x6bb   :  { %v2277_v17 = vadd.f32 1.0, %v4526_v47 }
 0x6bc   :  { %v4528_v6 = vpop.eup %4527  ;;  %4537 = vtanh.f32 %v2243_v8 }
 0x6bd   :  { %v2284_v28 = vmul.f32 %v4528_v6, %v2282_v36  ;;  %4539 = vrcp.f32 %v2276_v26 }
 0x6be   :  { %v4530_v24 = vpop.eup %4529  ;;  %4541 = vrcp.f32 %v2277_v17 }
 0x6bf   :  { %v2286_v25 = vadd.f32 %v2284_v28, %v525_v44  ;;  %v2285_v56 = vmul.f32 %v4530_v24, %v2283_v19  ;;  %v4532_v49 = vpop.eup %4531 }
 0x6c0   :  { %v4534_v52 = vpop.eup %4533  ;;  %v2246_v62 = vsub.f32 1.0, %v4532_v49  ;;  %v2250_v41 = vmul.f32 %v4532_v49, %v5504_v42 }
 0x6c1   :  { %4543 = vtanh.f32 %v2286_v25  ;;  %v2287_v22 = vadd.f32 %v2285_v56, %v526_v11  ;;  %v2247_v43 = vsub.f32 1.0, %v4534_v52  ;;  %v2251_v60 = vmul.f32 %v4534_v52, %v5506_v0 }
 0x6c3   :  { %4545 = vtanh.f32 %v2287_v22 }
 0x6c4   :  { %v4536_v16 = vpop.eup %4535 }
 0x6c5   :  { %v2248_v39 = vmul.f32 %v4536_v16, %v2246_v62  ;;  %v5995_v16 = vld [vmem:[#allocation11_spill] sm:$0xff] }
 0x6c6   :  { %v4538_v31 = vpop.eup %4537 }
 0x6c7   :  { %v4540_v27 = vpop.eup %4539  ;;  %v5564_v40 = vadd.f32 %v2250_v41, %v2248_v39  ;;  %v2249_v13 = vmul.f32 %v4538_v31, %v2247_v43  ;;  %v405_v41 = vadd.f32 %v5995_v16, %v5176_v55  ;;  %v5996_v31 = vld [vmem:[#allocation12_spill] sm:$0xff] }
 0x6c8   :  { %v4542_v45 = vpop.eup %4541  ;;  %v2290_v50 = vsub.f32 1.0, %v4540_v27  ;;  %v2294_v42 = vmul.f32 %v4540_v27, %v5514_v34  ;;  %v5994_v34 = vld [vmem:[#allocation46_spill] sm:$0xff]  ;;  %v406_v27 = vadd.f32 %v5996_v31, %v5190_v57 }
 0x6c9   :  { %v5566_v54 = vadd.f32 %v2251_v60, %v2249_v13  ;;  %v2291_v36 = vsub.f32 1.0, %v4542_v45  ;;  %v2295_v23 = vmul.f32 %v4542_v45, %v5518_v15  ;;  %v5601_v15 = vld [vmem:[%s5926_s8] sm:$0xff]  }
 0x6cb   :  { %v4544_v26 = vpop.eup %4543  ;;  %v5570_v47 = vpack.c.bf16 %v5566_v54, %v5564_v40 }
 0x6cc   :  { %v2292_v8 = vmul.f32 %v4544_v26, %v2290_v50 }
 0x6cd   :  { %v4546_v17 = vpop.eup %4545  ;;  %4118 = vmatprep.subr.bf16.mxu0 %v5570_v47 }
 0x6ce   :  { %v5574_v0 = vadd.f32 %v2294_v42, %v2292_v8  ;;  %v2293_v6 = vmul.f32 %v4546_v17, %v2291_v36  ;;  %4119 = vmatpush3.bf16.msra.mxu0 %v5570_v47 }
 0x6d0   :  { %v5578_v44 = vadd.f32 %v2295_v23, %v2293_v6  ;;  %v5997_v6 = vld [vmem:[#allocation18_spill] sm:$0xff] }
 0x6d1   :  { %v407_v23 = vadd.f32 %v5997_v6, %v5202_v10  ;;  %v5999_v6 = vld [vmem:[#allocation42_spill] sm:$0xff] }
 0x6d2   :  { %v5582_v28 = vpack.c.bf16 %v5578_v44, %v5574_v0 }
 0x6d4   :  { %4120 = vmatprep.subr.bf16.mxu0 %v5582_v28 }
 0x6d5   :  { %4121 = vmatpush3.bf16.msra.mxu0 %v5582_v28 }
 0x6d6   :  { %4150 = vmatprep.subr.bf16.mxu0 %v5994_v34 }
 0x6d8   :  { %4123 = vmatmul.mubr.msk.bf16.vlgmr.msra.gmra.mrb[36].mxu0 %vm1144_vm1, %v5439_v21 }
 0x6d9   :  { %4151 = vmatpush3.bf16.msra.mxu0 %v5994_v34  ;;  %4126 = vmatprep.mubr.msk.bf16.mxu0 %vm1144_vm1, %v5446_v29 }
 0x6e0   :  { %4127 = vmatmul.mubr.msk.bf16.gmra.mrb[72].mxu0 %vm1144_vm1, %v5453_v61 }
 0x6e1   :  { %4130 = vmatprep.mubr.msk.bf16.mxu0 %vm1144_vm1, %v5460_v20 }
 0x6e8   :  { %4131 = vmatmul.mubr.msk.bf16.gmra.mrb[76].mxu0 %vm1144_vm1, %v5467_v63 }
 0x6e9   :  { %4154 = vmatprep.mubr.msk.bf16.mxu0 %vm1144_vm1, %v5601_v15 }
 0x7ab   :  { %v4124_v19 = vpop.f32.mrb[36].mxu0 }
 0x7ac   :  { %v2338_v24 = vpop.f32.mrb[37].mxu0  ;;  %v4238_v56 = vadd.f32 %v4124_v19, %v5193_v51 }
 0x7ad   :  { %v4239_v2 = vadd.f32 %v2338_v24, %v5172_v37  ;;  %v4125_v11 = vpop.f32.mrb[38].mxu0 }
 0x7ae   :  { %v2341_v25 = vpop.f32.mrb[39].mxu0  ;;  %v4240_v52 = vadd.f32 %v4125_v11, %v5197_v18  ;;  %v3723_v43 = vmul.f32 -1.442695, %v4238_v56 }
 0x7af   :  { %v3721_v49 = vmul.f32 -1.442695, %v4239_v2  ;;  %v4241_v22 = vadd.f32 %v2341_v25, %v5186_v59  ;;  %v5998_v25 = vld [vmem:[#allocation20_spill] sm:$0xff] }
 0x7b0   :  { %v3724_v45 = vmul.f32 -1.442695, %v4240_v52  ;;  %v408_v56 = vadd.f32 %v5998_v25, %v5204_v5 }
 0x7b1   :  { %4547 = vpow2.f32 %v3721_v49  ;;  %v3722_v62 = vmul.f32 -1.442695, %v4241_v22 }
 0x7b3   :  { %4549 = vpow2.f32 %v3722_v62  ;;  %v4128_v39 = vpop.f32.mrb[72].mxu0 }
 0x7b4   :  { %v2441_v60 = vadd.f32 %v4128_v39, %v405_v41  ;;  %v2354_v13 = vpop.f32.mrb[73].mxu0  ;;  %4551 = vpow2.f32 %v3723_v43 }
 0x7b5   :  { %v4129_v50 = vpop.f32.mrb[74].mxu0 }
 0x7b6   :  { %v3725_v26 = vmul.f32 -1.442695, %v2441_v60  ;;  %v2442_v8 = vadd.f32 %v4129_v50, %v406_v27  ;;  %v2357_v42 = vpop.f32.mrb[75].mxu0 }
 0x7b8   :  { %4553 = vpow2.f32 %v3725_v26  ;;  %v3726_v36 = vmul.f32 -1.442695, %v2442_v8 }
 0x7b9   :  { %4555 = vpow2.f32 %v3724_v45 }
 0x7ba   :  { %4557 = vpow2.f32 %v3726_v36  ;;  %v2425_v36 = vadd.f32 %v2354_v13, %v5207_v35 }
 0x7bb   :  { %v4548_v17 = vpop.eup %4547  ;;  %v4132_v19 = vpop.f32.mrb[76].mxu0 }
 0x7bc   :  { %v2405_v24 = vadd.f32 1.0, %v4548_v17  ;;  %v2370_v2 = vpop.f32.mrb[77].mxu0 }
 0x7bd   :  { %v4550_v11 = vpop.eup %4549  ;;  %v2455_v49 = vadd.f32 %v2370_v2, %v407_v23  ;;  %v4133_v22 = vpop.f32.mrb[78].mxu0  ;;  %v976_v23 = vadd.f32 %v5999_v6, %v5212_v1  ;;  %v2426_v2 = vadd.f32 %v2357_v42, %v5210_v32 }
 0x7be   :  { %4559 = vrcp.f32 %v2405_v24  ;;  %v2406_v52 = vadd.f32 1.0, %v4550_v11  ;;  %v2373_v62 = vpop.f32.mrb[79].mxu0  ;;  %v4552_v43 = vpop.eup %4551 }
 0x7bf   :  { %v3727_v16 = vmul.f32 -1.442695, %v2455_v49  ;;  %v2456_v41 = vadd.f32 %v2373_v62, %v408_v56  ;;  %v2419_v50 = vadd.f32 1.0, %v4552_v43  ;;  %v6000_v56 = vld [vmem:[#allocation43_spill] sm:$0xff]  ;;  %v2469_v43 = vadd.f32 %v4132_v19, %v5219_v12 }
 0x7c0   :  { %4561 = vrcp.f32 %v2406_v52  ;;  %v977_v49 = vadd.f32 %v6000_v56, %v5214_v7 }
 0x7c1   :  { %4563 = vpow2.f32 %v3727_v16  ;;  %v3728_v39 = vmul.f32 -1.442695, %v2456_v41 }
 0x7c2   :  { %v4554_v31 = vpop.eup %4553 }
 0x7c3   :  { %v4556_v27 = vpop.eup %4555  ;;  %v2449_v60 = vadd.f32 1.0, %v4554_v31  ;;  %4565 = vpow2.f32 %v3728_v39 }
 0x7c4   :  { %v4558_v45 = vpop.eup %4557  ;;  %v2420_v8 = vadd.f32 1.0, %v4556_v27  ;;  %v6001_v27 = vld [vmem:[#allocation17_spill] sm:$0xff] }
 0x7c5   :  { %4567 = vrcp.f32 %v2449_v60  ;;  %v2450_v26 = vadd.f32 1.0, %v4558_v45  ;;  %v409_v42 = vadd.f32 %v6001_v27, %v5227_v9  ;;  %v2470_v45 = vadd.f32 %v4133_v22, %v5224_v58 }
 0x7c7   :  { %4569 = vrcp.f32 %v2450_v26  ;;  %v6002_v26 = vld [vmem:[#allocation19_spill] sm:$0xff] }
 0x7c8   :  { %v4560_v17 = vpop.eup %4559  ;;  %4571 = vrcp.f32 %v2419_v50 }
 0x7c9   :  { %v2427_v24 = vmul.f32 %v4560_v17, %v2425_v36  ;;  %4573 = vrcp.f32 %v2420_v8  ;;  %v410_v8 = vadd.f32 %v6002_v26, %v5232_v14 }
 0x7ca   :  { %v4562_v11 = vpop.eup %4561 }
 0x7cb   :  { %v4564_v25 = vpop.eup %4563  ;;  %v2429_v52 = vadd.f32 %v2427_v24, %v976_v23  ;;  %v2428_v62 = vmul.f32 %v4562_v11, %v2426_v2 }
 0x7cc   :  { %v2463_v16 = vadd.f32 1.0, %v4564_v25 }
 0x7cd   :  { %v4566_v41 = vpop.eup %4565  ;;  %4575 = vtanh.f32 %v2429_v52  ;;  %v2430_v13 = vadd.f32 %v2428_v62, %v977_v49 }
 0x7ce   :  { %v2464_v39 = vadd.f32 1.0, %v4566_v41 }
 0x7cf   :  { %v4568_v31 = vpop.eup %4567  ;;  %4577 = vtanh.f32 %v2430_v13 }
 0x7d0   :  { %v2471_v60 = vmul.f32 %v4568_v31, %v2469_v43  ;;  %4579 = vrcp.f32 %v2463_v16 }
 0x7d1   :  { %v4570_v50 = vpop.eup %4569  ;;  %4581 = vrcp.f32 %v2464_v39 }
 0x7d2   :  { %v2473_v36 = vadd.f32 %v2471_v60, %v409_v42  ;;  %v2472_v17 = vmul.f32 %v4570_v50, %v2470_v45  ;;  %v4572_v6 = vpop.eup %4571 }
 0x7d3   :  { %v4574_v23 = vpop.eup %4573  ;;  %v2433_v24 = vsub.f32 1.0, %v4572_v6  ;;  %v2437_v11 = vmul.f32 %v4572_v6, %v5564_v40 }
 0x7d4   :  { %4583 = vtanh.f32 %v2473_v36  ;;  %v2474_v19 = vadd.f32 %v2472_v17, %v410_v8  ;;  %v2434_v25 = vsub.f32 1.0, %v4574_v23  ;;  %v2438_v52 = vmul.f32 %v4574_v23, %v5566_v54 }
 0x7d6   :  { %4585 = vtanh.f32 %v2474_v19 }
 0x7d7   :  { %v4576_v2 = vpop.eup %4575 }
 0x7d8   :  { %v2435_v56 = vmul.f32 %v4576_v2, %v2433_v24  ;;  %v6003_v24 = vld [vmem:[#allocation9_spill] sm:$0xff] }
 0x7d9   :  { %v4578_v49 = vpop.eup %4577  ;;  %v290_v2 = vadd.f32 %v6003_v24, %v5176_v55 }
 0x7da   :  { %v4580_v22 = vpop.eup %4579  ;;  %v5631_v62 = vadd.f32 %v2437_v11, %v2435_v56  ;;  %v2436_v16 = vmul.f32 %v4578_v49, %v2434_v25  ;;  %v6004_v25 = vld [vmem:[#allocation10_spill] sm:$0xff] }
 0x7db   :  { %v4582_v41 = vpop.eup %4581  ;;  %v2477_v43 = vsub.f32 1.0, %v4580_v22  ;;  %v2481_v40 = vmul.f32 %v4580_v22, %v5574_v0 }
 0x7dc   :  { %v5633_v13 = vadd.f32 %v2438_v52, %v2436_v16  ;;  %v2478_v42 = vsub.f32 1.0, %v4582_v41  ;;  %v2482_v50 = vmul.f32 %v4582_v41, %v5578_v44 }
 0x7de   :  { %v4584_v39 = vpop.eup %4583  ;;  %v5637_v31 = vpack.c.bf16 %v5633_v13, %v5631_v62 }
 0x7df   :  { %v2479_v27 = vmul.f32 %v4584_v39, %v2477_v43  ;;  %v6005_v43 = vld [vmem:[#allocation14_spill] sm:$0xff] }
 0x7e0   :  { %v4586_v60 = vpop.eup %4585  ;;  %4134 = vmatprep.subr.bf16.mxu1 %v5637_v31  ;;  %v292_v55 = vadd.f32 %v5202_v10, %v6005_v43  ;;  %v5710_v10 = vpop.permute.xlu1 %2698 }
 0x7e1   :  { %v5641_v54 = vadd.f32 %v2481_v40, %v2479_v27  ;;  %v2480_v45 = vmul.f32 %v4586_v60, %v2478_v42  ;;  %4135 = vmatpush3.bf16.msra.mxu1 %v5637_v31  ;;  %v6006_v42 = vld [vmem:[#allocation16_spill] sm:$0xff] }
 0x7e2   :  { %v293_v60 = vadd.f32 %v5204_v5, %v6006_v42 }
 0x7e3   :  { %v5645_v26 = vadd.f32 %v2482_v50, %v2480_v45 }
 0x7e5   :  { %v5649_v8 = vpack.c.bf16 %v5645_v26, %v5641_v54 }
 0x7e7   :  { %4136 = vmatprep.subr.bf16.mxu1 %v5649_v8 }
 0x7e8   :  { %4137 = vmatpush3.bf16.msra.mxu1 %v5649_v8 }
 0x7e9   :  { %4158 = vmatprep.subr.bf16.mxu1 %v5300_v3 }
 0x7eb   :  { %4139 = vmatmul.mubr.msk.bf16.vlgmr.msra.gmra.mrb[36].mxu1 %vm1144_vm1, %v5439_v21  ;;  %v5673_v21 = vld [vmem:[%s5926_s8 + $0x8] sm:$0xff]  }
 0x7ec   :  { %4159 = vmatpush3.bf16.msra.mxu1 %v5300_v3  ;;  %4142 = vmatprep.mubr.msk.bf16.mxu1 %vm1144_vm1, %v5446_v29 }
 0x7ed   :  { %4160 = vmatprep.subr.bf16.mxu1 %v5649_v8 }
 0x7f0   :  { %4161 = vmatpush3.bf16.msra.mxu1 %v5649_v8 }
 0x7f1   :  { %4174 = vmatprep.subr.bf16.mxu1 %v5420_v48 }
 0x7f3   :  { %4143 = vmatmul.mubr.msk.bf16.gmra.mrb[72].mxu1 %vm1144_vm1, %v5453_v61 }
 0x7f4   :  { %4146 = vmatprep.mubr.msk.bf16.mxu1 %vm1144_vm1, %v5460_v20 }
 0x7fb   :  { %4147 = vmatmul.mubr.msk.bf16.gmra.mrb[76].mxu1 %vm1144_vm1, %v5467_v63 }
 0x7fc   :  { %4162 = vmatprep.mubr.msk.bf16.mxu1 %vm1144_vm1, %v5601_v15 }
 0x803   :  { %4163 = vmatmul.mubr.msk.bf16.vlgmr.msra.gmra.mrb[80].mxu1 %vm1144_vm1, %v5673_v21 }
 0x804   :  { %4175 = vmatpush3.bf16.msra.mxu1 %v5420_v48  ;;  %4178 = vmatprep.mubr.msk.bf16.mxu1 %vm1144_vm1, %v5601_v15 }
 0x805   :  { %4176 = vmatprep.subr.bf16.mxu1 %v5522_v4 }
 0x808   :  { %4177 = vmatpush3.bf16.msra.mxu1 %v5522_v4 }
 0x809   :  { %4190 = vmatprep.subr.bf16.mxu1 %v5570_v47 }
 0x80b   :  { %4179 = vmatmul.mubr.msk.bf16.vlgmr.msra.gmra.mrb[84].mxu1 %vm1144_vm1, %v5673_v21 }
 0x80c   :  { %4191 = vmatpush3.bf16.msra.mxu1 %v5570_v47  ;;  %4194 = vmatprep.mubr.msk.bf16.mxu1 %vm1144_vm1, %v5601_v15 }
 0x80d   :  { %4192 = vmatprep.subr.bf16.mxu1 %v5372_v46 }
 0x810   :  { %4193 = vmatpush3.bf16.msra.mxu1 %v5372_v46 }
 0x813   :  { %4195 = vmatmul.mubr.msk.bf16.vlgmr.msra.gmra.mrb[88].mxu1 %vm1144_vm1, %v5673_v21 }
 0x814   :  { %4210 = vmatprep.mubr.msk.bf16.mxu1 %vm1144_vm1, %v5601_v15 }
 0x8be   :  { %v4140_v29 = vpop.f32.mrb[36].mxu1 }
 0x8bf   :  { %v2525_v61 = vpop.f32.mrb[37].mxu1  ;;  %v4242_v20 = vadd.f32 %v4140_v29, %v5193_v51  ;;  %v291_v51 = vadd.f32 %v6004_v25, %v5190_v57  ;;  %v5708_v29 = vpop.permute.xlu0 %2693 }
 0x8c0   :  { %v4243_v63 = vadd.f32 %v2525_v61, %v5172_v37  ;;  %v4141_v0 = vpop.f32.mrb[38].mxu1 }
 0x8c1   :  { %v2528_v44 = vpop.f32.mrb[39].mxu1  ;;  %v3737_v6 = vmul.f32 -1.442695, %v4242_v20  ;;  %v4244_v19 = vadd.f32 %v4141_v0, %v5197_v18 }
 0x8c2   :  { %v3735_v36 = vmul.f32 -1.442695, %v4243_v63  ;;  %v4245_v17 = vadd.f32 %v2528_v44, %v5186_v59 }
 0x8c3   :  { %v3738_v49 = vmul.f32 -1.442695, %v4244_v19 }
 0x8c4   :  { %4587 = vpow2.f32 %v3735_v36  ;;  %v3736_v23 = vmul.f32 -1.442695, %v4245_v17 }
 0x8c6   :  { %4589 = vpow2.f32 %v3736_v23  ;;  %v4144_v11 = vpop.f32.mrb[72].mxu1 }
 0x8c7   :  { %v2628_v56 = vadd.f32 %v4144_v11, %v290_v2  ;;  %v2541_v37 = vpop.f32.mrb[73].mxu1  ;;  %4591 = vpow2.f32 %v3737_v6  ;;  %v5712_v2 = vpop.permute.xlu0 %2703 }
 0x8c8   :  { %v4145_v22 = vpop.f32.mrb[74].mxu1 }
 0x8c9   :  { %v3739_v52 = vmul.f32 -1.442695, %v2628_v56  ;;  %v2629_v59 = vadd.f32 %v4145_v22, %v291_v51  ;;  %v2544_v16 = vpop.f32.mrb[75].mxu1 }
 0x8ca   :  { %v2613_v42 = vadd.f32 %v2544_v16, %v5210_v32 }
 0x8cb   :  { %4593 = vpow2.f32 %v3739_v52  ;;  %v3740_v41 = vmul.f32 -1.442695, %v2629_v59  ;;  %v5716_v52 = vpop.permute.xlu1 %2708 }
 0x8cc   :  { %4595 = vpow2.f32 %v3738_v49 }
 0x8cd   :  { %4597 = vpow2.f32 %v3740_v41  ;;  %v2612_v41 = vadd.f32 %v2541_v37, %v5207_v35 }
 0x8ce   :  { %v4588_v18 = vpop.eup %4587  ;;  %v4148_v39 = vpop.f32.mrb[76].mxu1 }
 0x8cf   :  { %v2592_v27 = vadd.f32 1.0, %v4588_v18  ;;  %v2557_v40 = vpop.f32.mrb[77].mxu1  ;;  %v2656_v32 = vadd.f32 %v4148_v39, %v5219_v12 }
 0x8d0   :  { %v4590_v57 = vpop.eup %4589  ;;  %v2642_v45 = vadd.f32 %v2557_v40, %v292_v55  ;;  %v5706_v50 = vpop.f32.mrb[78].mxu1 }
 0x8d1   :  { %4599 = vrcp.f32 %v2592_v27  ;;  %v2593_v61 = vadd.f32 1.0, %v4590_v57  ;;  %v2560_v20 = vpop.f32.mrb[79].mxu1  ;;  %v4592_v63 = vpop.eup %4591  ;;  %v6007_v27 = vld [vmem:[#allocation44_spill] sm:$0xff] }
 0x8d2   :  { %v3741_v0 = vmul.f32 -1.442695, %v2642_v45  ;;  %v2643_v44 = vadd.f32 %v2560_v20, %v293_v60  ;;  %v2606_v6 = vadd.f32 1.0, %v4592_v63  ;;  %v1092_v40 = vadd.f32 %v6007_v27, %v5212_v1 }
 0x8d3   :  { %4601 = vrcp.f32 %v2593_v61  ;;  %v6008_v61 = vld [vmem:[#allocation45_spill] sm:$0xff] }
 0x8d4   :  { %4603 = vpow2.f32 %v3741_v0  ;;  %v3742_v36 = vmul.f32 -1.442695, %v2643_v44  ;;  %v1093_v35 = vadd.f32 %v6008_v61, %v5214_v7 }
 0x8d5   :  { %v4594_v17 = vpop.eup %4593 }
 0x8d6   :  { %v4596_v19 = vpop.eup %4595  ;;  %v2636_v5 = vadd.f32 1.0, %v4594_v17  ;;  %4605 = vpow2.f32 %v3742_v36  ;;  %v4164_v23 = vpop.f32.mrb[80].mxu1 }
 0x8d7   :  { %v4598_v24 = vpop.eup %4597  ;;  %v2849_v11 = vpop.f32.mrb[81].mxu1  ;;  %v2858_v51 = vadd.f32 %v4164_v23, %v5712_v2  ;;  %v2607_v59 = vadd.f32 1.0, %v4596_v19 }
 0x8d8   :  { %4607 = vrcp.f32 %v2636_v5  ;;  %v2637_v25 = vadd.f32 1.0, %v4598_v24  ;;  %v2850_v56 = vadd.f32 %v2849_v11, %v5708_v29  ;;  %v4165_v49 = vpop.f32.mrb[82].mxu1  ;;  %v6009_v24 = vld [vmem:[#allocation13_spill] sm:$0xff] }
 0x8d9   :  { %4609 = vrcp.f32 %v2606_v6  ;;  %v2852_v22 = vpop.f32.mrb[83].mxu1  ;;  %v2861_v55 = vadd.f32 %v4165_v49, %v5716_v52  ;;  %v294_v11 = vadd.f32 %v6009_v24, %v5227_v9 }
 0x8da   :  { %4611 = vrcp.f32 %v2637_v25  ;;  %v2853_v18 = vadd.f32 %v2852_v22, %v5710_v10  ;;  %v5731_v25 = vpop.permute.xlu0 %2782  ;;  %v6010_v22 = vld [vmem:[#allocation15_spill] sm:$0xff] }
 0x8db   :  { %v4600_v43 = vpop.eup %4599  ;;  %4613 = vtanh.f32 %v2850_v56  ;;  %v2657_v56 = vadd.f32 %v5706_v50, %v5224_v58 }
 0x8dc   :  { %v2614_v57 = vmul.f32 %v4600_v43, %v2612_v41  ;;  %4615 = vtanh.f32 %v2858_v51  ;;  %v5738_v41 = vpop.permute.xlu1 %2787 }
 0x8dd   :  { %v4602_v60 = vpop.eup %4601  ;;  %4617 = vtanh.f32 %v2853_v18 }
 0x8de   :  { %v4604_v45 = vpop.eup %4603  ;;  %4619 = vrcp.f32 %v2607_v59  ;;  %v2616_v37 = vadd.f32 %v2614_v57, %v1092_v40  ;;  %v2615_v20 = vmul.f32 %v4602_v60, %v2613_v42  ;;  %v4180_v63 = vpop.f32.mrb[84].mxu1  ;;  %v295_v59 = vadd.f32 %v6010_v22, %v5232_v14 }
 0x8df   :  { %v2650_v0 = vadd.f32 1.0, %v4604_v45  ;;  %4621 = vtanh.f32 %v2861_v55  ;;  %v2985_v44 = vpop.f32.mrb[85].mxu1  ;;  %v2994_v6 = vadd.f32 %v4180_v63, %v5712_v2 }
 0x8e0   :  { %v4606_v36 = vpop.eup %4605  ;;  %4623 = vtanh.f32 %v2616_v37  ;;  %v2617_v1 = vadd.f32 %v2615_v20, %v1093_v35  ;;  %v4181_v17 = vpop.f32.mrb[86].mxu1  ;;  %v2986_v7 = vadd.f32 %v2985_v44, %v5708_v29 }
 0x8e1   :  { %v2651_v16 = vadd.f32 1.0, %v4606_v36  ;;  %v2988_v19 = vpop.f32.mrb[87].mxu1  ;;  %v2997_v55 = vadd.f32 %v4181_v17, %v5716_v52  ;;  %v5745_v37 = vpop.permute.xlu0 %2792 }
 0x8e2   :  { %v4608_v5 = vpop.eup %4607  ;;  %4625 = vtanh.f32 %v2617_v1  ;;  %v2989_v39 = vadd.f32 %v2988_v19, %v5710_v10 }
 0x8e3   :  { %v4610_v23 = vpop.eup %4609  ;;  %v2658_v51 = vmul.f32 %v4608_v5, %v2656_v32  ;;  %4627 = vrcp.f32 %v2650_v0  ;;  %v5750_v32 = vpop.permute.xlu1 %2797 }
 0x8e4   :  { %v4612_v12 = vpop.eup %4611  ;;  %4629 = vrcp.f32 %v2651_v16  ;;  %v2620_v63 = vsub.f32 1.0, %v4610_v23  ;;  %v2624_v0 = vmul.f32 %v4610_v23, %v5631_v62 }
 0x8e5   :  { %v4614_v49 = vpop.eup %4613  ;;  %v2660_v18 = vadd.f32 %v2658_v51, %v294_v11  ;;  %v2659_v43 = vmul.f32 %v4612_v12, %v2657_v56  ;;  %4631 = vtanh.f32 %v2994_v6 }
 0x8e6   :  { %v4616_v9 = vpop.eup %4615  ;;  %4633 = vtanh.f32 %v2986_v7  ;;  %v4196_v27 = vpop.f32.mrb[88].mxu1  ;;  %v2868_v50 = vmul.f32 %v4614_v49, %v5731_v25 }
 0x8e7   :  { %v4618_v40 = vpop.eup %4617  ;;  %4635 = vtanh.f32 %v2660_v18  ;;  %v2661_v58 = vadd.f32 %v2659_v43, %v295_v59  ;;  %v3121_v57 = vpop.f32.mrb[89].mxu1  ;;  %v3130_v14 = vadd.f32 %v4196_v27, %v5712_v2  ;;  %v2870_v36 = vmul.f32 %v4616_v9, %v5745_v37 }
 0x8e8   :  { %v4620_v42 = vpop.eup %4619  ;;  %v2869_v60 = vmul.f32 %v4618_v40, %v5738_v41  ;;  %4637 = vtanh.f32 %v2989_v39  ;;  %v3122_v45 = vadd.f32 %v3121_v57, %v5708_v29  ;;  %v4197_v61 = vpop.f32.mrb[90].mxu1 }
 0x8e9   :  { %v4622_v35 = vpop.eup %4621  ;;  %4639 = vtanh.f32 %v2661_v58  ;;  %v3124_v20 = vpop.f32.mrb[91].mxu1  ;;  %v3133_v16 = vadd.f32 %v4197_v61, %v5716_v52  ;;  %v2621_v6 = vsub.f32 1.0, %v4620_v42  ;;  %v2625_v11 = vmul.f32 %v4620_v42, %v5633_v13 }
 0x8ea   :  { %v4624_v44 = vpop.eup %4623  ;;  %v2872_v1 = vadd.f32 %v2869_v60, %v2868_v50  ;;  %4641 = vtanh.f32 %v2997_v55  ;;  %v3125_v17 = vadd.f32 %v3124_v20, %v5710_v10  ;;  %v2871_v7 = vmul.f32 %v4622_v35, %v5750_v32  ;;  %v6011_v20 = vld [vmem:[#allocation47_spill] sm:$0xff] }
 0x8eb   :  { %4643 = vtanh.f32 %v3122_v45  ;;  %v2622_v19 = vmul.f32 %v4624_v44, %v2620_v63 }
 0x8ec   :  { %v4626_v5 = vpop.eup %4625  ;;  %v2873_v24 = vadd.f32 %v2872_v1, %v2870_v36  ;;  %4645 = vtanh.f32 %v3130_v14 }
 0x8ed   :  { %v4628_v62 = vpop.eup %4627  ;;  %4647 = vtanh.f32 %v3125_v17  ;;  %v2623_v23 = vmul.f32 %v4626_v5, %v2621_v6  ;;  %v2626_v51 = vadd.f32 %v2624_v0, %v2622_v19 }
 0x8ee   :  { %v4630_v56 = vpop.eup %4629  ;;  %v5755_v12 = vadd.f32 %v2873_v24, %v2871_v7  ;;  %4649 = vtanh.f32 %v3133_v16  ;;  %v2664_v59 = vsub.f32 1.0, %v4628_v62  ;;  %v2668_v40 = vmul.f32 %v4628_v62, %v5641_v54 }
 0x8ef   :  { %v4632_v39 = vpop.eup %4631  ;;  %v2627_v49 = vadd.f32 %v2625_v11, %v2623_v23  ;;  %v2665_v55 = vsub.f32 1.0, %v4630_v56  ;;  %v2669_v60 = vmul.f32 %v4630_v56, %v5645_v26 }
 0x8f0   :  { %v4634_v22 = vpop.eup %4633  ;;  %v3006_v61 = vmul.f32 %v4632_v39, %v5745_v37 }
 0x8f1   :  { %v4636_v18 = vpop.eup %4635  ;;  %v5757_v43 = vpack.c.bf16 %v2627_v49, %v2626_v51  ;;  %v3004_v13 = vmul.f32 %v4634_v22, %v5731_v25 }
 0x8f2   :  { %v4638_v9 = vpop.eup %4637  ;;  %v2666_v27 = vmul.f32 %v4636_v18, %v2664_v59 }
 0x8f3   :  { %v4640_v58 = vpop.eup %4639  ;;  %v3005_v50 = vmul.f32 %v4638_v9, %v5738_v41  ;;  %4206 = vmatprep.subr.bf16.mxu1 %v5757_v43 }
 0x8f4   :  { %v4642_v57 = vpop.eup %4641  ;;  %4207 = vmatpush3.bf16.msra.mxu1 %v5757_v43  ;;  %v2667_v42 = vmul.f32 %v4640_v58, %v2665_v55  ;;  %v2670_v14 = vadd.f32 %v2668_v40, %v2666_v27 }
 0x8f5   :  { %v4644_v45 = vpop.eup %4643  ;;  %v3008_v35 = vadd.f32 %v3005_v50, %v3004_v13  ;;  %4208 = vmatprep.subr.bf16.mxu1 %v6011_v20  ;;  %v3007_v44 = vmul.f32 %v4642_v57, %v5750_v32 }
 0x8f6   :  { %v4646_v54 = vpop.eup %4645  ;;  %v2671_v63 = vadd.f32 %v2669_v60, %v2667_v42  ;;  %v3140_v1 = vmul.f32 %v4644_v45, %v5731_v25 }
 0x8f7   :  { %v4648_v0 = vpop.eup %4647  ;;  %v3009_v36 = vadd.f32 %v3008_v35, %v3006_v61  ;;  %v3142_v19 = vmul.f32 %v4646_v54, %v5745_v37 }
 0x8f8   :  { %v3141_v17 = vmul.f32 %v4648_v0, %v5738_v41  ;;  %4209 = vmatpush3.bf16.msra.mxu1 %v6011_v20  ;;  %v5771_v26 = vpack.c.bf16 %v2671_v63, %v2670_v14  ;;  %v4650_v16 = vpop.eup %4649 }
 0x8f9   :  { %v5773_v6 = vadd.f32 %v3009_v36, %v3007_v44  ;;  %v3143_v7 = vmul.f32 %v4650_v16, %v5750_v32  ;;  %v2875_v36 = vrot.slane %v5755_v12, 4 }
 0x8fa   :  { %v3144_v5 = vadd.f32 %v3141_v17, %v3140_v1  ;;  %4152 = vmatprep.subr.bf16.mxu0 %v5771_v26 }
 0x8fb   :  { %4153 = vmatpush3.bf16.msra.mxu0 %v5771_v26  ;;  %4211 = vmatmul.mubr.msk.bf16.vlgmr.msra.gmra.mrb[92].mxu1 %vm1144_vm1, %v5673_v21 }
 0x8fc   :  { %v3145_v24 = vadd.f32 %v3144_v5, %v3142_v19  ;;  %4166 = vmatprep.subr.bf16.mxu0 %v5360_v53 }
 0x8fe   :  { %v5782_v62 = vadd.f32 %v3145_v24, %v3143_v7  ;;  %4155 = vmatmul.mubr.msk.bf16.vlgmr.msra.gmra.mrb[80].mxu0 %vm1144_vm1, %v5673_v21 }
 0x8ff   :  { %4167 = vmatpush3.bf16.msra.mxu0 %v5360_v53  ;;  %4170 = vmatprep.mubr.msk.bf16.mxu0 %vm1144_vm1, %v5601_v15 }
 0x900   :  { %4168 = vmatprep.subr.bf16.mxu0 %v5582_v28 }
 0x903   :  { %4169 = vmatpush3.bf16.msra.mxu0 %v5582_v28 }
 0x904   :  { %4182 = vmatprep.subr.bf16.mxu0 %v5510_v38 }
 0x906   :  { %4171 = vmatmul.mubr.msk.bf16.vlgmr.msra.gmra.mrb[84].mxu0 %vm1144_vm1, %v5673_v21 }
 0x907   :  { %4183 = vmatpush3.bf16.msra.mxu0 %v5510_v38  ;;  %4186 = vmatprep.mubr.msk.bf16.mxu0 %vm1144_vm1, %v5601_v15 }
 0x908   :  { %4184 = vmatprep.subr.bf16.mxu0 %v5432_v30 }
 0x90b   :  { %4185 = vmatpush3.bf16.msra.mxu0 %v5432_v30 }
 0x90c   :  { %4198 = vmatprep.subr.bf16.mxu0 %v5637_v31 }
 0x90e   :  { %4187 = vmatmul.mubr.msk.bf16.vlgmr.msra.gmra.mrb[88].mxu0 %vm1144_vm1, %v5673_v21 }
 0x90f   :  { %4199 = vmatpush3.bf16.msra.mxu0 %v5637_v31  ;;  %4202 = vmatprep.mubr.msk.bf16.mxu0 %vm1144_vm1, %v5601_v15 }
 0x910   :  { %4200 = vmatprep.subr.bf16.mxu0 %v5312_v33 }
 0x913   :  { %4201 = vmatpush3.bf16.msra.mxu0 %v5312_v33 }
 0x916   :  { %4203 = vmatmul.mubr.msk.bf16.vlgmr.msra.gmra.mrb[92].mxu0 %vm1144_vm1, %v5673_v21 }
 0x9ce   :  { %v4212_v23 = vpop.f32.mrb[92].mxu1 }
 0x9cf   :  { %v3266_v11 = vadd.f32 %v4212_v23, %v5712_v2  ;;  %v3257_v51 = vpop.f32.mrb[93].mxu1 }
 0x9d0   :  { %v3258_v56 = vadd.f32 %v3257_v51, %v5708_v29  ;;  %v4213_v39 = vpop.f32.mrb[94].mxu1 }
 0x9d1   :  { %v3269_v49 = vadd.f32 %v4213_v39, %v5716_v52  ;;  %v4156_v22 = vpop.f32.mrb[80].mxu0  ;;  %v3260_v59 = vpop.f32.mrb[95].mxu1  ;;  %4651 = vtanh.f32 %v3266_v11 }
 0x9d2   :  { %v3261_v15 = vadd.f32 %v3260_v59, %v5710_v10  ;;  %v2761_v18 = vpop.f32.mrb[81].mxu0  ;;  %4653 = vtanh.f32 %v3258_v56  ;;  %v2770_v9 = vadd.f32 %v4156_v22, %v5712_v2  ;;  %v2876_v59 = vadd.f32 %v2875_v36, %v5755_v12 }
 0x9d3   :  { %v2762_v21 = vadd.f32 %v2761_v18, %v5708_v29  ;;  %v4157_v55 = vpop.f32.mrb[82].mxu0  ;;  %4655 = vtanh.f32 %v3269_v49 }
 0x9d4   :  { %v2764_v27 = vpop.f32.mrb[83].mxu0  ;;  %4657 = vtanh.f32 %v3261_v15  ;;  %v2773_v58 = vadd.f32 %v4157_v55, %v5716_v52 }
 0x9d5   :  { %v2765_v40 = vadd.f32 %v2764_v27, %v5710_v10  ;;  %4659 = vtanh.f32 %v2762_v21 }
 0x9d6   :  { %4661 = vtanh.f32 %v2770_v9 }
 0x9d7   :  { %4663 = vtanh.f32 %v2765_v40 }
 0x9d8   :  { %4665 = vtanh.f32 %v2773_v58 }
 0x9d9   :  { %v4172_v13 = vpop.f32.mrb[84].mxu0 }
 0x9da   :  { %v2926_v50 = vadd.f32 %v4172_v13, %v5712_v2  ;;  %v2917_v57 = vpop.f32.mrb[85].mxu0 }
 0x9db   :  { %v2918_v42 = vadd.f32 %v2917_v57, %v5708_v29  ;;  %v4173_v60 = vpop.f32.mrb[86].mxu0  ;;  %v4652_v14 = vpop.eup %4651 }
 0x9dc   :  { %v2920_v45 = vpop.f32.mrb[87].mxu0  ;;  %v4654_v61 = vpop.eup %4653  ;;  %v2929_v35 = vadd.f32 %v4173_v60, %v5716_v52  ;;  %v3278_v7 = vmul.f32 %v4652_v14, %v5745_v37  ;;  %v3011_v60 = vrot.slane %v5773_v6, 4 }
 0x9dd   :  { %4667 = vtanh.f32 %v2918_v42  ;;  %v2921_v54 = vadd.f32 %v2920_v45, %v5710_v10  ;;  %v4656_v63 = vpop.eup %4655  ;;  %v3276_v1 = vmul.f32 %v4654_v61, %v5731_v25  ;;  %v2877_v42 = vrot.slane %v2876_v59, 2 }
 0x9de   :  { %4669 = vtanh.f32 %v2926_v50  ;;  %v4658_v0 = vpop.eup %4657  ;;  %v3279_v15 = vmul.f32 %v4656_v63, %v5750_v32 }
 0x9df   :  { %4671 = vtanh.f32 %v2921_v54  ;;  %v4660_v44 = vpop.eup %4659  ;;  %v3277_v17 = vmul.f32 %v4658_v0, %v5738_v41 }
 0x9e0   :  { %v4662_v16 = vpop.eup %4661  ;;  %4673 = vtanh.f32 %v2929_v35  ;;  %v2800_v51 = vmul.f32 %v4660_v44, %v5731_v25 }
 0x9e1   :  { %v4188_v19 = vpop.f32.mrb[88].mxu0  ;;  %v4664_v5 = vpop.eup %4663  ;;  %v3280_v24 = vadd.f32 %v3277_v17, %v3276_v1  ;;  %v2802_v18 = vmul.f32 %v4662_v16, %v5745_v37  ;;  %v2878_v16 = vadd.f32 %v2877_v42, %v2876_v59 }
 0x9e2   :  { %v3062_v23 = vadd.f32 %v4188_v19, %v5712_v2  ;;  %v3053_v11 = vpop.f32.mrb[89].mxu0  ;;  %v2801_v56 = vmul.f32 %v4664_v5, %v5738_v41  ;;  %v4666_v22 = vpop.eup %4665  ;;  %v3012_v19 = vadd.f32 %v3011_v60, %v5773_v6 }
 0x9e3   :  { %v3054_v39 = vadd.f32 %v3053_v11, %v5708_v29  ;;  %v4189_v49 = vpop.f32.mrb[90].mxu0  ;;  %v3281_v9 = vadd.f32 %v3280_v24, %v3278_v7  ;;  %v2803_v50 = vmul.f32 %v4666_v22, %v5750_v32  ;;  %v2879_v22 = vrot.slane %v2878_v16, 1 }
 0x9e4   :  { %v3056_v21 = vpop.f32.mrb[91].mxu0  ;;  %v2804_v55 = vadd.f32 %v2801_v56, %v2800_v51  ;;  %v3065_v27 = vadd.f32 %v4189_v49, %v5716_v52 }
 0x9e5   :  { %4675 = vtanh.f32 %v3054_v39  ;;  %v3057_v40 = vadd.f32 %v3056_v21, %v5710_v10  ;;  %v5834_v58 = vadd.f32 %v3281_v9, %v3279_v15  ;;  %v3013_v15 = vrot.slane %v3012_v19, 2 }
 0x9e6   :  { %4677 = vtanh.f32 %v3062_v23  ;;  %v2805_v57 = vadd.f32 %v2804_v55, %v2802_v18  ;;  %v3147_v18 = vrot.slane %v5782_v62, 4 }
 0x9e7   :  { %v4668_v13 = vpop.eup %4667  ;;  %4679 = vtanh.f32 %v3057_v40 }
 0x9e8   :  { %v4670_v12 = vpop.eup %4669  ;;  %v2806_v45 = vadd.f32 %v2805_v57, %v2803_v50  ;;  %4681 = vtanh.f32 %v3065_v27  ;;  %v2936_v35 = vmul.f32 %v4668_v13, %v5731_v25  ;;  %v2880_v57 = vadd.f32 %v2879_v22, %v2878_v16 }
 0x9e9   :  { %v4672_v14 = vpop.eup %4671  ;;  %v4204_v61 = vpop.f32.mrb[92].mxu0  ;;  %v2938_v5 = vmul.f32 %v4670_v12, %v5745_v37  ;;  %v3014_v12 = vadd.f32 %v3013_v15, %v3012_v19  ;;  %v3148_v42 = vadd.f32 %v3147_v18, %v5782_v62 }
 0x9ea   :  { %v2937_v54 = vmul.f32 %v4672_v14, %v5738_v41  ;;  %v3198_v63 = vadd.f32 %v4204_v61, %v5712_v2  ;;  %v3189_v0 = vpop.f32.mrb[93].mxu0  ;;  %v4674_v44 = vpop.eup %4673  ;;  %v2807_v36 = vrot.slane %v2806_v45, 4 }
 0x9eb   :  { %v3190_v1 = vadd.f32 %v3189_v0, %v5708_v29  ;;  %v4205_v17 = vpop.f32.mrb[94].mxu0  ;;  %v2939_v2 = vmul.f32 %v4674_v44, %v5750_v32 }
 0x9ec   :  { %v2940_v7 = vadd.f32 %v2937_v54, %v2936_v35  ;;  %v3192_v24 = vpop.f32.mrb[95].mxu0  ;;  %v2808_v23 = vadd.f32 %v2807_v36, %v2806_v45  ;;  %v3201_v11 = vadd.f32 %v4205_v17, %v5716_v52  ;;  %v3149_v17 = vrot.slane %v3148_v42, 2 }
 0x9ed   :  { %4683 = vtanh.f32 %v3190_v1  ;;  %v3193_v51 = vadd.f32 %v3192_v24, %v5710_v10  ;;  %v3015_v1 = vrot.slane %v3014_v12, 1 }
 0x9ee   :  { %v2941_v56 = vadd.f32 %v2940_v7, %v2938_v5  ;;  %4685 = vtanh.f32 %v3198_v63  ;;  %v2809_v29 = vrot.slane %v2808_v23, 2  ;;  %v3283_v5 = vrot.slane %v5834_v58, 4 }
 0x9ef   :  { %v4676_v39 = vpop.eup %4675  ;;  %4687 = vtanh.f32 %v3193_v51 }
 0x9f0   :  { %v4678_v49 = vpop.eup %4677  ;;  %v2942_v6 = vadd.f32 %v2941_v56, %v2939_v2  ;;  %v2810_v9 = vadd.f32 %v2809_v29, %v2808_v23  ;;  %4689 = vtanh.f32 %v3201_v11  ;;  %v3072_v52 = vmul.f32 %v4676_v39, %v5731_v25 }
 0x9f1   :  { %v4680_v59 = vpop.eup %4679  ;;  %v3074_v13 = vmul.f32 %v4678_v49, %v5745_v37  ;;  %v3016_v56 = vadd.f32 %v3015_v1, %v3014_v12  ;;  %v3150_v39 = vadd.f32 %v3149_v17, %v3148_v42  ;;  %v3284_v29 = vadd.f32 %v3283_v5, %v5834_v58 }
 0x9f2   :  { %v2943_v21 = vrot.slane %v2942_v6, 4  ;;  %v3073_v10 = vmul.f32 %v4680_v59, %v5738_v41  ;;  %v4682_v55 = vpop.eup %4681  ;;  %v2811_v27 = vrot.slane %v2810_v9, 1 }
 0x9f3   :  { %v3075_v45 = vmul.f32 %v4682_v55, %v5750_v32  ;;  %v3151_v18 = vrot.slane %v3150_v39, 1 }
 0x9f4   :  { %v2944_v40 = vadd.f32 %v2943_v21, %v2942_v6  ;;  %v3076_v50 = vadd.f32 %v3073_v10, %v3072_v52  ;;  %v2812_v60 = vadd.f32 %v2811_v27, %v2810_v9  ;;  %v3285_v9 = vrot.slane %v3284_v29, 2 }
 0x9f5   :  { %v3152_v55 = vadd.f32 %v3151_v18, %v3150_v39 }
 0x9f6   :  { %v2945_v14 = vrot.slane %v2944_v40, 2  ;;  %v3077_v61 = vadd.f32 %v3076_v50, %v3074_v13  ;;  %v3290_v54 = vsel %vm3289_vm2, %v2812_v60, %v2880_v57  ;;  %v3286_v27 = vadd.f32 %v3285_v9, %v3284_v29 }
 0x9f7   :  { %v4684_v35 = vpop.eup %4683 }
 0x9f8   :  { %v4686_v63 = vpop.eup %4685  ;;  %v2946_v0 = vadd.f32 %v2945_v14, %v2944_v40  ;;  %v3078_v44 = vadd.f32 %v3077_v61, %v3075_v45  ;;  %v3208_v19 = vmul.f32 %v4684_v35, %v5731_v25  ;;  %v3287_v57 = vrot.slane %v3286_v27, 1 }
 0x9f9   :  { %v4688_v36 = vpop.eup %4687  ;;  %v3210_v51 = vmul.f32 %v4686_v63, %v5745_v37 }
 0x9fa   :  { %v2947_v7 = vrot.slane %v2946_v0, 1  ;;  %v3079_v16 = vrot.slane %v3078_v44, 4  ;;  %v3209_v62 = vmul.f32 %v4688_v36, %v5738_v41  ;;  %v4690_v24 = vpop.eup %4689  ;;  %v3288_v42 = vadd.f32 %v3287_v57, %v3286_v27 }
 0x9fb   :  { %v3211_v6 = vmul.f32 %v4690_v24, %v5750_v32  ;;  %v3390_v27 = vunpack.c.h.bf16 %v5994_v34  ;;  %v3493_v57 = vunpack.c.l.bf16 %v5372_v46 }
 0x9fc   :  { %v2948_v23 = vadd.f32 %v2947_v7, %v2946_v0  ;;  %v3080_v11 = vadd.f32 %v3079_v16, %v3078_v44  ;;  %v3212_v2 = vadd.f32 %v3209_v62, %v3208_v19 }
 0x9fe   :  { %v3292_v49 = vsel %vm3291_vm3, %v3290_v54, %v2948_v23  ;;  %v3081_v22 = vrot.slane %v3080_v11, 2  ;;  %v3213_v59 = vadd.f32 %v3212_v2, %v3210_v51  ;;  %v3320_v23 = vld [vmem:[%s5919_s1] sm:$0xff]  ;;  %s4729_s1 = smov [#allocation6]  }
 0x9ff   :  { %v3294_v25 = vsel %vm3293_vm4, %v3292_v49, %v3016_v56  ;;  %s3538_s6 = sshll.u32 %s4729_s1, 4  ;;  %s3539_s6 = int_to_ptr.vmem [resolvable:$true] %s3538_s6 }
 0xa00   :  { %v3082_v15 = vadd.f32 %v3081_v22, %v3080_v11  ;;  %v3214_v41 = vadd.f32 %v3213_v59, %v3211_v6  ;;  %v4728_v59 = vmov 1966171168   ;;  %s4703_s28 = scalar_lea.vmem %s3539_s6, 512  ;;  %p4708_p1 = scmp.lt.s32.totalorder %s3539_s6, %s3539_s6 }
 0xa01   :  { %p4704_p0 = scmp.ne.s32.totalorder %s3539_s6, %s4703_s28  ;;  %p4709_p2 = scmp.lt.s32.totalorder %s4703_s28, %s4703_s28 }
 0xa02   :  { %v3083_v21 = vrot.slane %v3082_v15, 1  ;;  %v3215_v52 = vrot.slane %v3214_v41, 4 }
 0xa03   :  { %p4710_p3 = por %p4709_p2, %p4708_p1 }
 0xa04   :  { %v3084_v10 = vadd.f32 %v3083_v21, %v3082_v15  ;;  %v3216_v37 = vadd.f32 %v3215_v52, %v3214_v41  ;;  %v3336_v15 = vlaneseq }
 0xa05   :  { %p4711_p4 = pnand %p4710_p3, %p4704_p0 }
 0xa06   :  { %v3296_v40 = vsel %vm3295_vm5, %v3294_v25, %v3084_v10  ;;  %v3217_v58 = vrot.slane %v3216_v37, 2  ;;  %v3334_v25 = vunpack.c.l.s4 %v4728_v59  ;;  %v3337_v18 = vshrl.u32 %v3336_v15, 7 }
 0xa07   :  { %v3298_v13 = vsel %vm3297_vm6, %v3296_v40, %v3152_v55  ;;  %v3389_v10 = vunpack.c.l.bf16 %v5994_v34  ;;  %v3391_v40 = vunpack.c.l.bf16 %v5300_v3  ;;  %v3491_v34 = vunpack.c.l.bf16 %v5432_v30 }
 0xa08   :  { %v3218_v50 = vadd.f32 %v3217_v58, %v3216_v37  ;;  %v3335_v41 = vunpack.c.0.s8 %v3334_v25  ;;  %v3392_v58 = vunpack.c.h.bf16 %v5300_v3 }
 0xa0a   :  { %v3219_v32 = vrot.slane %v3218_v50, 1  ;;  %v3338_v9 = vsub.s32 %v3335_v41, %v3337_v18 }
 0xa0c   :  { %v3220_v12 = vadd.f32 %v3219_v32, %v3218_v50  ;;  %v3394_v50 = vunpack.c.h.bf16 %v5360_v53 }
 0xa0e   :  { %v3300_v60 = vsel %vm3299_vm7, %v3298_v13, %v3220_v12  ;;  %v3393_v13 = vunpack.c.l.bf16 %v5360_v53 }
 0xa0f   :  { %v3302_v14 = vsel %vm3301_vm8, %v3300_v60, %v3288_v42  ;;  %v3407_v60 = vsub.s32 0, %v3337_v18 }
 0xa10   :  { %v3303_v45 = vrot.slane %v3302_v14, 4 }
 0xa12   :  { %v3304_v61 = vmax.f32 %v3302_v14, %v3303_v45  ;;  %v3396_v45 = vunpack.c.h.bf16 %v5420_v48 }
 0xa14   :  { %v3305_v35 = vrot.slane %v3304_v61, 2 }
 0xa16   :  { %v3306_v54 = vmax.f32 %v3304_v61, %v3305_v35  ;;  %v3492_v61 = vunpack.c.h.bf16 %v5432_v30  ;;  %v3498_v30 = vunpack.c.h.bf16 %v6011_v20 }
 0xa18   :  { %v3307_v63 = vrot.slane %v3306_v54, 1 }
 0xa1a   :  { %v3308_v0 = vmax.f32 %v3306_v54, %v3307_v63  ;;  %v3397_v63 = vunpack.c.l.bf16 %v5510_v38 }
 0xa1c   :  { %v3309_v44 = vsub.f32 %v3302_v14, %v3308_v0  ;;  %v3395_v14 = vunpack.c.l.bf16 %v5420_v48  ;;  %v3398_v0 = vunpack.c.h.bf16 %v5510_v38 }
 0xa1e   :  { %v3310_v36 = vmul.f32 1.442695, %v3309_v44  ;;  %v3489_v44 = vunpack.c.l.bf16 %v5522_v4 }
 0xa20   :  { %4691 = vpow2.f32 %v3310_v36  ;;  %v3490_v36 = vunpack.c.h.bf16 %v5522_v4  ;;  %v3483_v4 = vunpack.c.l.bf16 %v5771_v26 }
 0xa2a   :  { %v4692_v1 = vpop.eup %4691 }
 0xa2b   :  { %v3312_v17 = vrot.slane %v4692_v1, 4 }
 0xa2d   :  { %v3313_v5 = vadd.f32 %v4692_v1, %v3312_v17 }
 0xa2f   :  { %v3314_v7 = vrot.slane %v3313_v5, 2 }
 0xa31   :  { %v3315_v16 = vadd.f32 %v3314_v7, %v3313_v5  ;;  %v3399_v7 = vunpack.c.l.bf16 %v5570_v47 }
 0xa33   :  { %v3316_v19 = vrot.slane %v3315_v16, 1 }
 0xa35   :  { %v3317_v62 = vadd.f32 %v3316_v19, %v3315_v16  ;;  %v3400_v16 = vunpack.c.h.bf16 %v5570_v47 }
 0xa37   :  { %4693 = vrcp.f32 %v3317_v62  ;;  %v3485_v62 = vunpack.c.l.bf16 %v5649_v8 }
 0xa41   :  { %v4694_v24 = vpop.eup %4693 }
 0xa42   :  { %v3319_v11 = vmul.f32 %v4694_v24, %v4692_v1  ;;  %v3403_v24 = vunpack.c.l.bf16 %v5757_v43 }
 0xa44   :  { %v3321_v51 = vmul.f32 %v3320_v23, %v3319_v11  ;;  %v3404_v23 = vunpack.c.h.bf16 %v5757_v43  ;;  %v3486_v11 = vunpack.c.h.bf16 %v5649_v8 }
 0xa46   :  { %v3322_v2 = vrot.slane %v3321_v51, 4 }
 0xa48   :  { %v3323_v56 = vadd.f32 %v3322_v2, %v3321_v51 }
 0xa4a   :  { %v3324_v39 = vrot.slane %v3323_v56, 2 }
 0xa4c   :  { %v3325_v29 = vadd.f32 %v3324_v39, %v3323_v56 }
 0xa4e   :  { %v3326_v49 = vrot.slane %v3325_v29, 1 }
 0xa50   :  { %v3327_v22 = vadd.f32 %v3326_v49, %v3325_v29 }
 0xa52   :  { %v3328_v6 = vadd.f32 0.0001, %v3327_v22 }
 0xa54   :  { %4695 = vrcp.f32 %v3328_v6 }
 0xa5e   :  { %v4696_v21 = vpop.eup %4695 }
 0xa5f   :  { %v3330_v52 = vmul.f32 %v4696_v21, %v3321_v51  ;;  %v3484_v51 = vunpack.c.h.bf16 %v5771_v26 }
 0xa61   :  { %v3332_v37 = vcombine.high %v3330_v52, %v3330_v52  ;;  %v3339_v55 = vrot.slane %v3330_v52, %v3338_v9 }
 0xa63   :  { %v3346_v32 = vrot.slane %v3332_v37, %v3338_v9  ;;  %v3347_v12 = vcombine.high %v3339_v55, %v3339_v55  ;;  %v3355_v42 = vrot.slane %v3339_v55, %v3338_v9  ;;  %v3487_v55 = vunpack.c.l.bf16 %v5582_v28 }
 0xa65   :  { %v3348_v35 = vcombine.high %v3346_v32, %v3346_v32  ;;  %v3369_v3 = vrot.slane %v3347_v12, %v3338_v9  ;;  %v3377_v54 = vcombine.high %v3355_v42, %v3355_v42  ;;  %v3362_v53 = vrot.slane %v3346_v32, %v3338_v9 }
 0xa66   :  { %v3408_v5 = vrot.slane %v3355_v42, %v3407_v60 }
 0xa67   :  { %v3376_v1 = vrot.slane %v3348_v35, %v3338_v9  ;;  %v3379_v17 = vcombine.high %v3369_v3, %v3369_v3  ;;  %v3412_v48 = vrot.slane %v3369_v3, %v3407_v60  ;;  %v3416_v19 = vrot.slane %v3377_v54, %v3407_v60 }
 0xa68   :  { %v3378_v39 = vcombine.high %v3362_v53, %v3362_v53  ;;  %v3445_v47 = vmul.f32 %v3408_v5, %v3389_v10  ;;  %v3424_v22 = vrot.slane %v3362_v53, %v3407_v60  ;;  %v3446_v59 = vmul.f32 %v3408_v5, %v3390_v27 }
 0xa69   :  { %v3380_v38 = vcombine.high %v3376_v1, %v3376_v1  ;;  %v3447_v2 = vmul.f32 %v3412_v48, %v3391_v40  ;;  %v3448_v56 = vmul.f32 %v3412_v48, %v3392_v58  ;;  %v3420_v29 = vrot.slane %v3379_v17, %v3407_v60 }
 0xa6a   :  { %v3428_v6 = vrot.slane %v3376_v1, %v3407_v60  ;;  %v3449_v25 = vmul.f32 %v3416_v19, %v3393_v13  ;;  %v3450_v15 = vmul.f32 %v3416_v19, %v3394_v50  ;;  %v3499_v9 = vmul.f32 %v3483_v4, %v3408_v5 }
 0xa6b   :  { %v5885_v49 = vrot.slane %v3380_v38, %v3407_v60  ;;  %v3461_v41 = vadd.f32 %v3447_v2, %v3445_v47  ;;  %v3468_v18 = vadd.f32 %v3448_v56, %v3446_v59  ;;  %v3500_v26 = vmul.f32 %v3484_v51, %v3408_v5 }
 0xa6c   :  { %v3501_v21 = vmul.f32 %v3485_v62, %v3412_v48  ;;  %v3451_v52 = vmul.f32 %v3420_v29, %v3395_v14  ;;  %v3502_v40 = vmul.f32 %v3486_v11, %v3412_v48  ;;  %v3432_v10 = vrot.slane %v3378_v39, %v3407_v60 }
 0xa6d   :  { %v3459_v43 = vmul.f32 %v5885_v49, %v3403_v24  ;;  %v3460_v8 = vmul.f32 %v5885_v49, %v3404_v23  ;;  %v3462_v37 = vadd.f32 %v3461_v41, %v3449_v25  ;;  %v3452_v58 = vmul.f32 %v3420_v29, %v3396_v45 }
 0xa6e   :  { %v3469_v32 = vadd.f32 %v3468_v18, %v3450_v15  ;;  %v3488_v27 = vunpack.c.h.bf16 %v5582_v28  ;;  %v3401_v13 = vunpack.c.l.bf16 %v5637_v31  ;;  %v3402_v50 = vunpack.c.h.bf16 %v5637_v31 }
 0xa6f   :  { %v3453_v12 = vmul.f32 %v3424_v22, %v3397_v63  ;;  %v3463_v42 = vadd.f32 %v3462_v37, %v3451_v52  ;;  %v3454_v35 = vmul.f32 %v3424_v22, %v3398_v0  ;;  %v3455_v3 = vmul.f32 %v3428_v6, %v3399_v7 }
 0xa70   :  { %v3470_v54 = vadd.f32 %v3469_v32, %v3452_v58  ;;  %v3503_v53 = vmul.f32 %v3487_v55, %v3416_v19  ;;  %v3504_v1 = vmul.f32 %v3488_v27, %v3416_v19  ;;  %v3515_v17 = vadd.f32 %v3501_v21, %v3499_v9 }
 0xa71   :  { %v3464_v14 = vadd.f32 %v3463_v42, %v3453_v12  ;;  %v3522_v5 = vadd.f32 %v3502_v40, %v3500_v26  ;;  %v3456_v48 = vmul.f32 %v3428_v6, %v3400_v16  ;;  %v3457_v60 = vmul.f32 %v3432_v10, %v3401_v13 }
 0xa72   :  { %v3471_v45 = vadd.f32 %v3470_v54, %v3454_v35  ;;  %v3505_v62 = vmul.f32 %v3489_v44, %v3420_v29  ;;  %v3506_v28 = vmul.f32 %v3490_v36, %v3420_v29  ;;  %v3516_v23 = vadd.f32 %v3515_v17, %v3503_v53 }
 0xa73   :  { %v3465_v24 = vadd.f32 %v3464_v14, %v3455_v3  ;;  %v3523_v38 = vadd.f32 %v3522_v5, %v3504_v1  ;;  %v3458_v11 = vmul.f32 %v3432_v10, %v3402_v50  ;;  %v3494_v63 = vunpack.c.h.bf16 %v5372_v46 }
 0xa74   :  { %v3472_v31 = vadd.f32 %v3471_v45, %v3456_v48  ;;  %v3507_v0 = vmul.f32 %v3491_v34, %v3424_v22  ;;  %v3508_v19 = vmul.f32 %v3492_v61, %v3424_v22  ;;  %v3517_v4 = vadd.f32 %v3516_v23, %v3505_v62 }
 0xa75   :  { %v3466_v7 = vadd.f32 %v3465_v24, %v3457_v60  ;;  %v3524_v16 = vadd.f32 %v3523_v38, %v3506_v28  ;;  %v3495_v44 = vunpack.c.l.bf16 %v5312_v33  ;;  %v3496_v36 = vunpack.c.h.bf16 %v5312_v33 }
 0xa76   :  { %v3473_v51 = vadd.f32 %v3472_v31, %v3458_v11  ;;  %v3509_v2 = vmul.f32 %v3493_v57, %v3428_v6  ;;  %v3510_v39 = vmul.f32 %v3494_v63, %v3428_v6  ;;  %v3518_v29 = vadd.f32 %v3517_v4, %v3507_v0 }
 0xa77   :  { %v3467_v56 = vadd.f32 %v3466_v7, %v3459_v43  ;;  %v3525_v47 = vadd.f32 %v3524_v16, %v3508_v19  ;;  %v3497_v34 = vunpack.c.l.bf16 %v6011_v20  ;;  %v3511_v61 = vmul.f32 %v3495_v44, %v3432_v10 }
 0xa78   :  { %v3474_v59 = vadd.f32 %v3473_v51, %v3460_v8  ;;  %v3512_v22 = vmul.f32 %v3496_v36, %v3432_v10  ;;  %v3519_v25 = vadd.f32 %v3518_v29, %v3509_v2  ;;  %v3514_v46 = vmul.f32 %v3498_v30, %v5885_v49 }
 0xa79   :  { %v3526_v15 = vadd.f32 %v3525_v47, %v3510_v39  ;;  %3529 = vst [vmem:[#allocation6] sm:$0xff] %v3467_v56  ;;  %v3513_v33 = vmul.f32 %v3497_v34, %v5885_v49 }
 0xa7a   :  { %3530 = vst [vmem:[#allocation6 + $0x8] sm:$0xff] %v3474_v59  ;;  %v3520_v57 = vadd.f32 %v3519_v25, %v3511_v61 }
 0xa7b   :  { %v3527_v6 = vadd.f32 %v3526_v15, %v3512_v22 }
 0xa7c   :  { %v3521_v43 = vadd.f32 %v3520_v57, %v3513_v33 }
 0xa7d   :  { %v3528_v8 = vadd.f32 %v3527_v6, %v3514_v46 }
 0xa7e   :  { %3531 = vst [vmem:[#allocation6 + $0x10] sm:$0xff] %v3521_v43 }
 0xa7f   :  { %3532 = vst [vmem:[#allocation6 + $0x18] sm:$0xff] %v3528_v8 }
 0xa80   :  { %4714 = shalt.err (!%p4711_p4)
}
 0xa81   :  { %s4715_s30 = scalar_lea.hbm %s5929_s11, 512 }
 0xa82   :  { %p4716_p5 = scmp.ne.s32.totalorder %s5929_s11, %s4715_s30  ;;  %p4719_p6 = scmp.lt.u32.totalorder %s4715_s30, %s5929_s11 }
 0xa84   :  { %p4721_p7 = pnand %p4719_p6, %p4716_p5 }
 0xa86   :  { %4724 = shalt.err (!%p4721_p7)
}
 0xa87   :  { %s4730_s2 = smov 128   ;;  %s4731_s7 = smov 8  }
 0xa88   :  { %3544 = dma.vmem_to_hbm [thread:$0]  %s3539_s6, 512, %s5929_s11, [#allocation7], %s4730_s2, %s4730_s2, %s4731_s7  }
 0xa89   :  { %4725 = dma.done.wait [#allocation7], 512  }
 0xa8a   :  { %4726 = vsyncadd [#allocation7], 4294966784 }
 0xa8b   :  { %3548 = vsyncpa [#allocation7], 1 }

</bundles_post_ra>
